<compile_context>
chip_gen: v7x
topology: tpu7x:2x2x1
jax: 0.10.0
libtpu: 0.0.40
codegen_flags: <defaults>
</compile_context>

<pallas_src>
import jax
import jax.numpy as jnp
from jax import lax
from jax.experimental import pallas as pl
from jax.experimental.pallas import tpu as pltpu


# dot_general dimension-number shorthands (avoid materialized transposes)
_NN = (((1,), (0,)), ((), ()))   # a @ b
_NT = (((1,), (1,)), ((), ()))   # a @ b.T
_TN = (((0,), (0,)), ((), ()))   # a.T @ b


def _mm(a, b, dims=_NN):
    """bf16 MXU matmul with f32 accumulation."""
    return lax.dot_general(a.astype(jnp.bfloat16), b.astype(jnp.bfloat16),
                           dims, preferred_element_type=jnp.float32)


# ----------------------------------------------------------------------------
# Fused kernel: conv1+bn1+relu -> conv2+bn2+relu -> 4x SA layers -> concat.
# One batch element per grid step; everything stays in VMEM.
# ----------------------------------------------------------------------------
def _fused_kernel(x_ref,
                  c1w_ref, bn1s_ref, bn1b_ref,
                  c2w_ref, bn2s_ref, bn2b_ref,
                  qkvw_ref, qkvb_ref, tw_ref, tb_ref,
                  bns_ref, bnb_ref,
                  o_ref):
    C = x_ref.shape[1]
    CQP = qkvw_ref.shape[2] - C          # zero-padded q/k width (128-lane multiple)

    # conv1 (k=1, bias=False): the NCW->NWC transpose is folded into the matmul
    # by contracting x's channel axis (dim 0) with W's input axis (dim 0).
    x = _mm(x_ref[0], c1w_ref[...], _TN)                              # (N, C) f32
    x = jnp.maximum(x * bn1s_ref[...] + bn1b_ref[...], 0.0)
    x = jnp.maximum(_mm(x, c2w_ref[...]) * bn2s_ref[...] + bn2b_ref[...], 0.0)

    # Four stacked offset-attention layers (unrolled at trace time).
    for i in range(4):
        # Fused q/k + v projection: one MXU pass over the (C, CQP + C) weight.
        # qkv bias is zero on the q/k columns, so xq is unchanged by the add.
        xqv = _mm(x, qkvw_ref[i]) + qkvb_ref[i]                       # (N, CQP+C)
        xq = xqv[:, :CQP]                                             # (N, CQP)
        xv = xqv[:, CQP:]                                             # (N, C)

        # energy = xq @ xq^T is symmetric because q_conv and k_conv share
        # weights (bias=False).  Exploit this: build the TRANSPOSED attention
        # plane (attn_t[j, i] == attn[i, j]) directly from energy, so the big
        # (N,N) @ (N,C) contraction below is a plain NN matmul and the
        # row/col statistics come out in the orientation they are used in.
        # (Check pl.lower_as_mlir for inserted relayouts if this is changed.)
        energy = _mm(xq, xq, _NT)                                     # (N, N) f32
        m_row = jnp.max(energy, axis=0, keepdims=True)                # (1, N) == rowmax
        p_t = jnp.exp(energy - m_row)                                 # p_t[j,i] = p[i,j]
        inv_row = pl.reciprocal(jnp.sum(p_t, axis=0, keepdims=True),
                                approx=True)                          # (1, N)
        attn_t = p_t * inv_row                                        # f32, attn^T
        col_sum = jnp.sum(attn_t, axis=-1, keepdims=True)             # (N, 1) f32
        attn_t = attn_t.astype(jnp.bfloat16)                          # halve (N,N) temp

        # PyTorch x_r = bmm(x_v (C,N), attn_norm) -> in NWC layout:
        #   x_r[j, c] = invcol[j] * sum_i attn[i, j] * xv[i, c]
        # Column-sum normalization applied to the small (N, C) result instead
        # of the (N, N) plane.
        x_r = _mm(attn_t, xv)                                         # (N, C) f32
        x_r = x_r * pl.reciprocal(1e-9 + col_sum, approx=True)

        # trans_conv(x - x_r) -> BN(folded) -> ReLU ; residual add.
        t = _mm(x - x_r, tw_ref[i]) + tb_ref[i]
        x = x + jnp.maximum(t * bns_ref[i] + bnb_ref[i], 0.0)

        # Write this SA layer's output slice in NCW layout.
        o_ref[0, i * C:(i + 1) * C, :] = jnp.transpose(x, (1, 0)).astype(o_ref.dtype)


def stacked_attention(x_ncw, params):
    """x_ncw: (B, C, N) float32 — same axis convention as the PyTorch module.
    Returns (B, 4C, N)."""
    B, C, N = x_ncw.shape
    sa = params["sa"]
    CQT = sa["qkv_w"].shape[-1]          # Cq_pad + C
    const2 = lambda b: (0, 0)
    const3 = lambda b: (0, 0, 0)
    return pl.pallas_call(
        _fused_kernel,
        out_shape=jax.ShapeDtypeStruct((B, 4 * C, N), x_ncw.dtype),
        grid=(B,),
        in_specs=[
            pl.BlockSpec((1, C, N), lambda b: (b, 0, 0)),    # x (NCW)
            pl.BlockSpec((C, C), const2),                    # conv1 w  (Cin, Cout)
            pl.BlockSpec((1, C), const2),                    # bn1 scale
            pl.BlockSpec((1, C), const2),                    # bn1 shift
            pl.BlockSpec((C, C), const2),                    # conv2 w
            pl.BlockSpec((1, C), const2),                    # bn2 scale
            pl.BlockSpec((1, C), const2),                    # bn2 shift
            pl.BlockSpec((4, C, CQT), const3),               # fused q/k(+pad) | v weights
            pl.BlockSpec((4, 1, CQT), const3),               # fused bias (zeros on q/k)
            pl.BlockSpec((4, C, C), const3),                 # trans weights
            pl.BlockSpec((4, 1, C), const3),                 # trans bias
            pl.BlockSpec((4, 1, C), const3),                 # folded BN scale
            pl.BlockSpec((4, 1, C), const3),                 # folded BN shift
        ],
        out_specs=pl.BlockSpec((1, 4 * C, N), lambda b: (b, 0, 0)),
        compiler_params=pltpu.CompilerParams(
            dimension_semantics=("parallel",),               # B axis -> 2 TCs on v7x
            vmem_limit_bytes=56 * 1024 * 1024),
    )(x_ncw,
      params["conv1_w"], params["bn1_scale"], params["bn1_shift"],
      params["conv2_w"], params["bn2_scale"], params["bn2_shift"],
      sa["qkv_w"], sa["qkv_b"], sa["t_w"], sa["t_b"],
      sa["bn_scale"], sa["bn_shift"])


# ----------------------------------------------------------------------------
# Parameter init (deterministic, synthetic).  Matmul weights are stored
# pre-transposed to (C_in, C_out) in bf16; the q/k weight is zero-padded to a
# 128-lane multiple and fused with the v weight; biases / folded BN in f32.
# ----------------------------------------------------------------------------
def init_params(key, C):
    keys = iter(jax.random.split(key, 64))

    def nrm(shape, s=0.05, dtype=jnp.float32):
        return (jax.random.normal(next(keys), shape, jnp.float32) * s).astype(dtype)

    def bn_folded(shape):
        eps = 1e-5
        gamma = 1.0 + nrm(shape, 0.1)
        beta = nrm(shape, 0.1)
        mean = nrm(shape, 0.1)
        var = 1.0 + jnp.abs(nrm(shape, 0.1))
        scale = gamma / jnp.sqrt(var + eps)
        shift = beta - mean * scale
        return scale, shift

    wdt = jnp.bfloat16                     # weights feed the MXU in bf16
    Cq = C // 4
    Cq_pad = -(-Cq // 128) * 128           # zero-pad q/k width to 128-lane multiple

    params = {
        "conv1_w": nrm((C, C), dtype=wdt),
        "conv2_w": nrm((C, C), dtype=wdt),
    }
    params["bn1_scale"], params["bn1_shift"] = bn_folded((1, C))
    params["bn2_scale"], params["bn2_shift"] = bn_folded((1, C))

    # shared q/k weight (Cin, Cq) -> zero-padded; fused with v weight/bias.
    qk_w = nrm((4, C, Cq))
    qk_w = jnp.pad(qk_w, ((0, 0), (0, 0), (0, Cq_pad - Cq)))   # exact: zero cols
    v_w = nrm((4, C, C))
    v_b = nrm((4, 1, C))
    qkv_w = jnp.concatenate([qk_w, v_w], axis=-1).astype(wdt)  # (4, C, Cq_pad + C)
    qkv_b = jnp.concatenate([jnp.zeros((4, 1, Cq_pad), jnp.float32), v_b], axis=-1)

    bn_s, bn_b = bn_folded((4, 1, C))
    params["sa"] = {
        "qkv_w": qkv_w,
        "qkv_b": qkv_b,
        "t_w": nrm((4, C, C), dtype=wdt),
        "t_b": nrm((4, 1, C)),
        "bn_scale": bn_s,
        "bn_shift": bn_b,
    }
    return params


if __name__ == "__main__":
    B, C, N = 2, 128, 128
    key = jax.random.PRNGKey(0)
    k_x, k_p = jax.random.split(key)

    x = jax.random.normal(k_x, (B, C, N), jnp.float32)
    params = init_params(k_p, C)

    out = jax.jit(stacked_attention)(x, params)
    out = jax.block_until_ready(out)

    assert out.shape == (B, 4 * C, N), out.shape
    assert bool(jnp.all(jnp.isfinite(out)))
    print("KERNEL_OK")
</pallas_src>

<mosaic_0001>
module attributes {stable_mosaic.version = 11 : i64} {
  func.func @_fused_kernel(%arg0: i32, %arg1: memref<1x128x128xf32, #tpu.memory_space<vmem>>, %arg2: memref<128x128xbf16, #tpu.memory_space<vmem>>, %arg3: memref<1x128xf32, #tpu.memory_space<vmem>>, %arg4: memref<1x128xf32, #tpu.memory_space<vmem>>, %arg5: memref<128x128xbf16, #tpu.memory_space<vmem>>, %arg6: memref<1x128xf32, #tpu.memory_space<vmem>>, %arg7: memref<1x128xf32, #tpu.memory_space<vmem>>, %arg8: memref<4x128x256xbf16, #tpu.memory_space<vmem>>, %arg9: memref<4x1x256xf32, #tpu.memory_space<vmem>>, %arg10: memref<4x128x128xbf16, #tpu.memory_space<vmem>>, %arg11: memref<4x1x128xf32, #tpu.memory_space<vmem>>, %arg12: memref<4x1x128xf32, #tpu.memory_space<vmem>>, %arg13: memref<4x1x128xf32, #tpu.memory_space<vmem>>, %arg14: memref<1x512x128xf32, #tpu.memory_space<vmem>>) attributes {dimension_semantics = [#tpu.dimension_semantics<parallel>], iteration_bounds = array<i64: 2>, scalar_prefetch = 0 : i64, scratch_operands = 0 : i64, tpu.core_type = #tpu.core_type<tc>, window_params = [{transform_indices = @transform_0, window_bounds = array<i64: 1, 128, 128>}, {pipeline_mode = #tpu.pipeline_mode<synchronous>, transform_indices = @transform_1, window_bounds = array<i64: 128, 128>}, {pipeline_mode = #tpu.pipeline_mode<synchronous>, transform_indices = @transform_2, window_bounds = array<i64: 1, 128>}, {pipeline_mode = #tpu.pipeline_mode<synchronous>, transform_indices = @transform_3, window_bounds = array<i64: 1, 128>}, {pipeline_mode = #tpu.pipeline_mode<synchronous>, transform_indices = @transform_4, window_bounds = array<i64: 128, 128>}, {pipeline_mode = #tpu.pipeline_mode<synchronous>, transform_indices = @transform_5, window_bounds = array<i64: 1, 128>}, {pipeline_mode = #tpu.pipeline_mode<synchronous>, transform_indices = @transform_6, window_bounds = array<i64: 1, 128>}, {pipeline_mode = #tpu.pipeline_mode<synchronous>, transform_indices = @transform_7, window_bounds = array<i64: 4, 128, 256>}, {pipeline_mode = #tpu.pipeline_mode<synchronous>, transform_indices = @transform_8, window_bounds = array<i64: 4, 1, 256>}, {pipeline_mode = #tpu.pipeline_mode<synchronous>, transform_indices = @transform_9, window_bounds = array<i64: 4, 128, 128>}, {pipeline_mode = #tpu.pipeline_mode<synchronous>, transform_indices = @transform_10, window_bounds = array<i64: 4, 1, 128>}, {pipeline_mode = #tpu.pipeline_mode<synchronous>, transform_indices = @transform_11, window_bounds = array<i64: 4, 1, 128>}, {pipeline_mode = #tpu.pipeline_mode<synchronous>, transform_indices = @transform_12, window_bounds = array<i64: 4, 1, 128>}, {transform_indices = @transform_13, window_bounds = array<i64: 1, 512, 128>}]} {
    %c0 = arith.constant 0 : index
    %c0_0 = arith.constant 0 : index
    %c0_1 = arith.constant 0 : index
    %0 = vector.load %arg1[%c0, %c0_0, %c0_1] : memref<1x128x128xf32, #tpu.memory_space<vmem>>, vector<1x128x128xf32>
    %1 = vector.shape_cast %0 : vector<1x128x128xf32> to vector<128x128xf32>
    %c0_2 = arith.constant 0 : index
    %c0_3 = arith.constant 0 : index
    %2 = vector.load %arg2[%c0_2, %c0_3] : memref<128x128xbf16, #tpu.memory_space<vmem>>, vector<128x128xbf16>
    %3 = arith.truncf %1 : vector<128x128xf32> to vector<128x128xbf16>
    %cst = arith.constant dense<0.000000e+00> : vector<128x128xf32>
    %4 = tpu.matmul %3, %2, %cst {dimension_numbers = #tpu.dot_dimension_numbers<[0], [0], [1], [1], [0, 1, 1, 1], [], []>} : vector<128x128xbf16>, vector<128x128xbf16>, vector<128x128xf32> -> vector<128x128xf32>
    %c0_4 = arith.constant 0 : index
    %c0_5 = arith.constant 0 : index
    %5 = vector.load %arg3[%c0_4, %c0_5] : memref<1x128xf32, #tpu.memory_space<vmem>>, vector<1x128xf32>
    %6 = vector.broadcast %5 : vector<1x128xf32> to vector<128x128xf32>
    %7 = arith.mulf %4, %6 : vector<128x128xf32>
    %c0_6 = arith.constant 0 : index
    %c0_7 = arith.constant 0 : index
    %8 = vector.load %arg4[%c0_6, %c0_7] : memref<1x128xf32, #tpu.memory_space<vmem>>, vector<1x128xf32>
    %9 = vector.broadcast %8 : vector<1x128xf32> to vector<128x128xf32>
    %10 = arith.addf %7, %9 : vector<128x128xf32>
    %cst_8 = arith.constant 0.000000e+00 : f32
    %11 = vector.broadcast %cst_8 : f32 to vector<128x128xf32>
    %12 = arith.maximumf %10, %11 : vector<128x128xf32>
    %c0_9 = arith.constant 0 : index
    %c0_10 = arith.constant 0 : index
    %13 = vector.load %arg5[%c0_9, %c0_10] : memref<128x128xbf16, #tpu.memory_space<vmem>>, vector<128x128xbf16>
    %14 = arith.truncf %12 : vector<128x128xf32> to vector<128x128xbf16>
    %cst_11 = arith.constant dense<0.000000e+00> : vector<128x128xf32>
    %15 = tpu.matmul %14, %13, %cst_11 {dimension_numbers = #tpu.dot_dimension_numbers<[1], [0], [0], [1], [0, 0, 1, 1], [], []>} : vector<128x128xbf16>, vector<128x128xbf16>, vector<128x128xf32> -> vector<128x128xf32>
    %c0_12 = arith.constant 0 : index
    %c0_13 = arith.constant 0 : index
    %16 = vector.load %arg6[%c0_12, %c0_13] : memref<1x128xf32, #tpu.memory_space<vmem>>, vector<1x128xf32>
    %17 = vector.broadcast %16 : vector<1x128xf32> to vector<128x128xf32>
    %18 = arith.mulf %15, %17 : vector<128x128xf32>
    %c0_14 = arith.constant 0 : index
    %c0_15 = arith.constant 0 : index
    %19 = vector.load %arg7[%c0_14, %c0_15] : memref<1x128xf32, #tpu.memory_space<vmem>>, vector<1x128xf32>
    %20 = vector.broadcast %19 : vector<1x128xf32> to vector<128x128xf32>
    %21 = arith.addf %18, %20 : vector<128x128xf32>
    %cst_16 = arith.constant 0.000000e+00 : f32
    %22 = vector.broadcast %cst_16 : f32 to vector<128x128xf32>
    %23 = arith.maximumf %21, %22 : vector<128x128xf32>
    %c0_17 = arith.constant 0 : index
    %c0_18 = arith.constant 0 : index
    %c0_19 = arith.constant 0 : index
    %24 = vector.load %arg8[%c0_17, %c0_18, %c0_19] : memref<4x128x256xbf16, #tpu.memory_space<vmem>>, vector<1x128x256xbf16>
    %25 = vector.shape_cast %24 : vector<1x128x256xbf16> to vector<128x256xbf16>
    %26 = arith.truncf %23 : vector<128x128xf32> to vector<128x128xbf16>
    %cst_20 = arith.constant dense<0.000000e+00> : vector<128x256xf32>
    %27 = tpu.matmul %26, %25, %cst_20 {dimension_numbers = #tpu.dot_dimension_numbers<[1], [0], [0], [1], [0, 0, 1, 1], [], []>} : vector<128x128xbf16>, vector<128x256xbf16>, vector<128x256xf32> -> vector<128x256xf32>
    %c0_21 = arith.constant 0 : index
    %c0_22 = arith.constant 0 : index
    %c0_23 = arith.constant 0 : index
    %28 = vector.load %arg9[%c0_21, %c0_22, %c0_23] : memref<4x1x256xf32, #tpu.memory_space<vmem>>, vector<1x1x256xf32>
    %29 = vector.shape_cast %28 : vector<1x1x256xf32> to vector<1x256xf32>
    %30 = vector.broadcast %29 : vector<1x256xf32> to vector<128x256xf32>
    %31 = arith.addf %27, %30 : vector<128x256xf32>
    %32 = vector.extract_strided_slice %31 {offsets = [0, 0], sizes = [128, 128], strides = [1, 1]} : vector<128x256xf32> to vector<128x128xf32>
    %33 = vector.extract_strided_slice %31 {offsets = [0, 128], sizes = [128, 128], strides = [1, 1]} : vector<128x256xf32> to vector<128x128xf32>
    %34 = arith.truncf %32 : vector<128x128xf32> to vector<128x128xbf16>
    %35 = arith.truncf %32 : vector<128x128xf32> to vector<128x128xbf16>
    %cst_24 = arith.constant dense<0.000000e+00> : vector<128x128xf32>
    %36 = tpu.matmul %34, %35, %cst_24 {dimension_numbers = #tpu.dot_dimension_numbers<[1], [1], [0], [0], [0, 0, 1, 0], [], []>} : vector<128x128xbf16>, vector<128x128xbf16>, vector<128x128xf32> -> vector<128x128xf32>
    %cst_25 = arith.constant dense<0xFF800000> : vector<128xf32>
    %37 = vector.multi_reduction <maximumf>, %36, %cst_25 [0] : vector<128x128xf32> to vector<128xf32>
    %38 = vector.shape_cast %37 : vector<128xf32> to vector<1x128xf32>
    %39 = vector.broadcast %38 : vector<1x128xf32> to vector<128x128xf32>
    %40 = arith.subf %36, %39 : vector<128x128xf32>
    %41 = math.exp %40 : vector<128x128xf32>
    %cst_26 = arith.constant dense<0.000000e+00> : vector<128xf32>
    %42 = vector.multi_reduction <add>, %41, %cst_26 [0] : vector<128x128xf32> to vector<128xf32>
    %43 = vector.shape_cast %42 : vector<128xf32> to vector<1x128xf32>
    %44 = tpu.reciprocal %43 {approx = true} : vector<1x128xf32> -> vector<1x128xf32>
    %45 = vector.broadcast %44 : vector<1x128xf32> to vector<128x128xf32>
    %46 = arith.mulf %41, %45 : vector<128x128xf32>
    %cst_27 = arith.constant dense<0.000000e+00> : vector<128xf32>
    %47 = vector.multi_reduction <add>, %46, %cst_27 [1] : vector<128x128xf32> to vector<128xf32>
    %48 = vector.shape_cast %47 : vector<128xf32> to vector<128x1xf32>
    %49 = arith.truncf %46 : vector<128x128xf32> to vector<128x128xbf16>
    %50 = arith.truncf %33 : vector<128x128xf32> to vector<128x128xbf16>
    %cst_28 = arith.constant dense<0.000000e+00> : vector<128x128xf32>
    %51 = tpu.matmul %49, %50, %cst_28 {dimension_numbers = #tpu.dot_dimension_numbers<[1], [0], [0], [1], [0, 0, 1, 1], [], []>} : vector<128x128xbf16>, vector<128x128xbf16>, vector<128x128xf32> -> vector<128x128xf32>
    %cst_29 = arith.constant 9.99999971E-10 : f32
    %52 = vector.broadcast %cst_29 : f32 to vector<128x1xf32>
    %53 = arith.addf %52, %48 : vector<128x1xf32>
    %54 = tpu.reciprocal %53 {approx = true} : vector<128x1xf32> -> vector<128x1xf32>
    %55 = vector.broadcast %54 : vector<128x1xf32> to vector<128x128xf32>
    %56 = arith.mulf %51, %55 : vector<128x128xf32>
    %57 = arith.subf %23, %56 : vector<128x128xf32>
    %c0_30 = arith.constant 0 : index
    %c0_31 = arith.constant 0 : index
    %c0_32 = arith.constant 0 : index
    %58 = vector.load %arg10[%c0_30, %c0_31, %c0_32] : memref<4x128x128xbf16, #tpu.memory_space<vmem>>, vector<1x128x128xbf16>
    %59 = vector.shape_cast %58 : vector<1x128x128xbf16> to vector<128x128xbf16>
    %60 = arith.truncf %57 : vector<128x128xf32> to vector<128x128xbf16>
    %cst_33 = arith.constant dense<0.000000e+00> : vector<128x128xf32>
    %61 = tpu.matmul %60, %59, %cst_33 {dimension_numbers = #tpu.dot_dimension_numbers<[1], [0], [0], [1], [0, 0, 1, 1], [], []>} : vector<128x128xbf16>, vector<128x128xbf16>, vector<128x128xf32> -> vector<128x128xf32>
    %c0_34 = arith.constant 0 : index
    %c0_35 = arith.constant 0 : index
    %c0_36 = arith.constant 0 : index
    %62 = vector.load %arg11[%c0_34, %c0_35, %c0_36] : memref<4x1x128xf32, #tpu.memory_space<vmem>>, vector<1x1x128xf32>
    %63 = vector.shape_cast %62 : vector<1x1x128xf32> to vector<1x128xf32>
    %64 = vector.broadcast %63 : vector<1x128xf32> to vector<128x128xf32>
    %65 = arith.addf %61, %64 : vector<128x128xf32>
    %c0_37 = arith.constant 0 : index
    %c0_38 = arith.constant 0 : index
    %c0_39 = arith.constant 0 : index
    %66 = vector.load %arg12[%c0_37, %c0_38, %c0_39] : memref<4x1x128xf32, #tpu.memory_space<vmem>>, vector<1x1x128xf32>
    %67 = vector.shape_cast %66 : vector<1x1x128xf32> to vector<1x128xf32>
    %68 = vector.broadcast %67 : vector<1x128xf32> to vector<128x128xf32>
    %69 = arith.mulf %65, %68 : vector<128x128xf32>
    %c0_40 = arith.constant 0 : index
    %c0_41 = arith.constant 0 : index
    %c0_42 = arith.constant 0 : index
    %70 = vector.load %arg13[%c0_40, %c0_41, %c0_42] : memref<4x1x128xf32, #tpu.memory_space<vmem>>, vector<1x1x128xf32>
    %71 = vector.shape_cast %70 : vector<1x1x128xf32> to vector<1x128xf32>
    %72 = vector.broadcast %71 : vector<1x128xf32> to vector<128x128xf32>
    %73 = arith.addf %69, %72 : vector<128x128xf32>
    %cst_43 = arith.constant 0.000000e+00 : f32
    %74 = vector.broadcast %cst_43 : f32 to vector<128x128xf32>
    %75 = arith.maximumf %73, %74 : vector<128x128xf32>
    %76 = arith.addf %23, %75 : vector<128x128xf32>
    %77 = tpu.transpose %76, [1, 0] : vector<128x128xf32> -> vector<128x128xf32>
    %c0_44 = arith.constant 0 : index
    %c0_45 = arith.constant 0 : index
    %c0_46 = arith.constant 0 : index
    %78 = vector.load %arg14[%c0_44, %c0_45, %c0_46] : memref<1x512x128xf32, #tpu.memory_space<vmem>>, vector<1x128x128xf32>
    %79 = vector.shape_cast %78 : vector<1x128x128xf32> to vector<128x128xf32>
    %80 = vector.shape_cast %77 : vector<128x128xf32> to vector<1x128x128xf32>
    tpu.vector_store %arg14[%c0_44, %c0_45, %c0_46], %80 {strides = array<i32>} : memref<1x512x128xf32, #tpu.memory_space<vmem>>, vector<1x128x128xf32>,
    %c1 = arith.constant 1 : index
    %c0_47 = arith.constant 0 : index
    %c0_48 = arith.constant 0 : index
    %81 = vector.load %arg8[%c1, %c0_47, %c0_48] : memref<4x128x256xbf16, #tpu.memory_space<vmem>>, vector<1x128x256xbf16>
    %82 = vector.shape_cast %81 : vector<1x128x256xbf16> to vector<128x256xbf16>
    %83 = arith.truncf %76 : vector<128x128xf32> to vector<128x128xbf16>
    %cst_49 = arith.constant dense<0.000000e+00> : vector<128x256xf32>
    %84 = tpu.matmul %83, %82, %cst_49 {dimension_numbers = #tpu.dot_dimension_numbers<[1], [0], [0], [1], [0, 0, 1, 1], [], []>} : vector<128x128xbf16>, vector<128x256xbf16>, vector<128x256xf32> -> vector<128x256xf32>
    %c1_50 = arith.constant 1 : index
    %c0_51 = arith.constant 0 : index
    %c0_52 = arith.constant 0 : index
    %85 = vector.load %arg9[%c1_50, %c0_51, %c0_52] : memref<4x1x256xf32, #tpu.memory_space<vmem>>, vector<1x1x256xf32>
    %86 = vector.shape_cast %85 : vector<1x1x256xf32> to vector<1x256xf32>
    %87 = vector.broadcast %86 : vector<1x256xf32> to vector<128x256xf32>
    %88 = arith.addf %84, %87 : vector<128x256xf32>
    %89 = vector.extract_strided_slice %88 {offsets = [0, 0], sizes = [128, 128], strides = [1, 1]} : vector<128x256xf32> to vector<128x128xf32>
    %90 = vector.extract_strided_slice %88 {offsets = [0, 128], sizes = [128, 128], strides = [1, 1]} : vector<128x256xf32> to vector<128x128xf32>
    %91 = arith.truncf %89 : vector<128x128xf32> to vector<128x128xbf16>
    %92 = arith.truncf %89 : vector<128x128xf32> to vector<128x128xbf16>
    %cst_53 = arith.constant dense<0.000000e+00> : vector<128x128xf32>
    %93 = tpu.matmul %91, %92, %cst_53 {dimension_numbers = #tpu.dot_dimension_numbers<[1], [1], [0], [0], [0, 0, 1, 0], [], []>} : vector<128x128xbf16>, vector<128x128xbf16>, vector<128x128xf32> -> vector<128x128xf32>
    %cst_54 = arith.constant dense<0xFF800000> : vector<128xf32>
    %94 = vector.multi_reduction <maximumf>, %93, %cst_54 [0] : vector<128x128xf32> to vector<128xf32>
    %95 = vector.shape_cast %94 : vector<128xf32> to vector<1x128xf32>
    %96 = vector.broadcast %95 : vector<1x128xf32> to vector<128x128xf32>
    %97 = arith.subf %93, %96 : vector<128x128xf32>
    %98 = math.exp %97 : vector<128x128xf32>
    %cst_55 = arith.constant dense<0.000000e+00> : vector<128xf32>
    %99 = vector.multi_reduction <add>, %98, %cst_55 [0] : vector<128x128xf32> to vector<128xf32>
    %100 = vector.shape_cast %99 : vector<128xf32> to vector<1x128xf32>
    %101 = tpu.reciprocal %100 {approx = true} : vector<1x128xf32> -> vector<1x128xf32>
    %102 = vector.broadcast %101 : vector<1x128xf32> to vector<128x128xf32>
    %103 = arith.mulf %98, %102 : vector<128x128xf32>
    %cst_56 = arith.constant dense<0.000000e+00> : vector<128xf32>
    %104 = vector.multi_reduction <add>, %103, %cst_56 [1] : vector<128x128xf32> to vector<128xf32>
    %105 = vector.shape_cast %104 : vector<128xf32> to vector<128x1xf32>
    %106 = arith.truncf %103 : vector<128x128xf32> to vector<128x128xbf16>
    %107 = arith.truncf %90 : vector<128x128xf32> to vector<128x128xbf16>
    %cst_57 = arith.constant dense<0.000000e+00> : vector<128x128xf32>
    %108 = tpu.matmul %106, %107, %cst_57 {dimension_numbers = #tpu.dot_dimension_numbers<[1], [0], [0], [1], [0, 0, 1, 1], [], []>} : vector<128x128xbf16>, vector<128x128xbf16>, vector<128x128xf32> -> vector<128x128xf32>
    %cst_58 = arith.constant 9.99999971E-10 : f32
    %109 = vector.broadcast %cst_58 : f32 to vector<128x1xf32>
    %110 = arith.addf %109, %105 : vector<128x1xf32>
    %111 = tpu.reciprocal %110 {approx = true} : vector<128x1xf32> -> vector<128x1xf32>
    %112 = vector.broadcast %111 : vector<128x1xf32> to vector<128x128xf32>
    %113 = arith.mulf %108, %112 : vector<128x128xf32>
    %114 = arith.subf %76, %113 : vector<128x128xf32>
    %c1_59 = arith.constant 1 : index
    %c0_60 = arith.constant 0 : index
    %c0_61 = arith.constant 0 : index
    %115 = vector.load %arg10[%c1_59, %c0_60, %c0_61] : memref<4x128x128xbf16, #tpu.memory_space<vmem>>, vector<1x128x128xbf16>
    %116 = vector.shape_cast %115 : vector<1x128x128xbf16> to vector<128x128xbf16>
    %117 = arith.truncf %114 : vector<128x128xf32> to vector<128x128xbf16>
    %cst_62 = arith.constant dense<0.000000e+00> : vector<128x128xf32>
    %118 = tpu.matmul %117, %116, %cst_62 {dimension_numbers = #tpu.dot_dimension_numbers<[1], [0], [0], [1], [0, 0, 1, 1], [], []>} : vector<128x128xbf16>, vector<128x128xbf16>, vector<128x128xf32> -> vector<128x128xf32>
    %c1_63 = arith.constant 1 : index
    %c0_64 = arith.constant 0 : index
    %c0_65 = arith.constant 0 : index
    %119 = vector.load %arg11[%c1_63, %c0_64, %c0_65] : memref<4x1x128xf32, #tpu.memory_space<vmem>>, vector<1x1x128xf32>
    %120 = vector.shape_cast %119 : vector<1x1x128xf32> to vector<1x128xf32>
    %121 = vector.broadcast %120 : vector<1x128xf32> to vector<128x128xf32>
    %122 = arith.addf %118, %121 : vector<128x128xf32>
    %c1_66 = arith.constant 1 : index
    %c0_67 = arith.constant 0 : index
    %c0_68 = arith.constant 0 : index
    %123 = vector.load %arg12[%c1_66, %c0_67, %c0_68] : memref<4x1x128xf32, #tpu.memory_space<vmem>>, vector<1x1x128xf32>
    %124 = vector.shape_cast %123 : vector<1x1x128xf32> to vector<1x128xf32>
    %125 = vector.broadcast %124 : vector<1x128xf32> to vector<128x128xf32>
    %126 = arith.mulf %122, %125 : vector<128x128xf32>
    %c1_69 = arith.constant 1 : index
    %c0_70 = arith.constant 0 : index
    %c0_71 = arith.constant 0 : index
    %127 = vector.load %arg13[%c1_69, %c0_70, %c0_71] : memref<4x1x128xf32, #tpu.memory_space<vmem>>, vector<1x1x128xf32>
    %128 = vector.shape_cast %127 : vector<1x1x128xf32> to vector<1x128xf32>
    %129 = vector.broadcast %128 : vector<1x128xf32> to vector<128x128xf32>
    %130 = arith.addf %126, %129 : vector<128x128xf32>
    %cst_72 = arith.constant 0.000000e+00 : f32
    %131 = vector.broadcast %cst_72 : f32 to vector<128x128xf32>
    %132 = arith.maximumf %130, %131 : vector<128x128xf32>
    %133 = arith.addf %76, %132 : vector<128x128xf32>
    %134 = tpu.transpose %133, [1, 0] : vector<128x128xf32> -> vector<128x128xf32>
    %c0_73 = arith.constant 0 : index
    %c128 = arith.constant 128 : index
    %c0_74 = arith.constant 0 : index
    %135 = vector.load %arg14[%c0_73, %c128, %c0_74] : memref<1x512x128xf32, #tpu.memory_space<vmem>>, vector<1x128x128xf32>
    %136 = vector.shape_cast %135 : vector<1x128x128xf32> to vector<128x128xf32>
    %137 = vector.shape_cast %134 : vector<128x128xf32> to vector<1x128x128xf32>
    tpu.vector_store %arg14[%c0_73, %c128, %c0_74], %137 {strides = array<i32>} : memref<1x512x128xf32, #tpu.memory_space<vmem>>, vector<1x128x128xf32>,
    %c2 = arith.constant 2 : index
    %c0_75 = arith.constant 0 : index
    %c0_76 = arith.constant 0 : index
    %138 = vector.load %arg8[%c2, %c0_75, %c0_76] : memref<4x128x256xbf16, #tpu.memory_space<vmem>>, vector<1x128x256xbf16>
    %139 = vector.shape_cast %138 : vector<1x128x256xbf16> to vector<128x256xbf16>
    %140 = arith.truncf %133 : vector<128x128xf32> to vector<128x128xbf16>
    %cst_77 = arith.constant dense<0.000000e+00> : vector<128x256xf32>
    %141 = tpu.matmul %140, %139, %cst_77 {dimension_numbers = #tpu.dot_dimension_numbers<[1], [0], [0], [1], [0, 0, 1, 1], [], []>} : vector<128x128xbf16>, vector<128x256xbf16>, vector<128x256xf32> -> vector<128x256xf32>
    %c2_78 = arith.constant 2 : index
    %c0_79 = arith.constant 0 : index
    %c0_80 = arith.constant 0 : index
    %142 = vector.load %arg9[%c2_78, %c0_79, %c0_80] : memref<4x1x256xf32, #tpu.memory_space<vmem>>, vector<1x1x256xf32>
    %143 = vector.shape_cast %142 : vector<1x1x256xf32> to vector<1x256xf32>
    %144 = vector.broadcast %143 : vector<1x256xf32> to vector<128x256xf32>
    %145 = arith.addf %141, %144 : vector<128x256xf32>
    %146 = vector.extract_strided_slice %145 {offsets = [0, 0], sizes = [128, 128], strides = [1, 1]} : vector<128x256xf32> to vector<128x128xf32>
    %147 = vector.extract_strided_slice %145 {offsets = [0, 128], sizes = [128, 128], strides = [1, 1]} : vector<128x256xf32> to vector<128x128xf32>
    %148 = arith.truncf %146 : vector<128x128xf32> to vector<128x128xbf16>
    %149 = arith.truncf %146 : vector<128x128xf32> to vector<128x128xbf16>
    %cst_81 = arith.constant dense<0.000000e+00> : vector<128x128xf32>
    %150 = tpu.matmul %148, %149, %cst_81 {dimension_numbers = #tpu.dot_dimension_numbers<[1], [1], [0], [0], [0, 0, 1, 0], [], []>} : vector<128x128xbf16>, vector<128x128xbf16>, vector<128x128xf32> -> vector<128x128xf32>
    %cst_82 = arith.constant dense<0xFF800000> : vector<128xf32>
    %151 = vector.multi_reduction <maximumf>, %150, %cst_82 [0] : vector<128x128xf32> to vector<128xf32>
    %152 = vector.shape_cast %151 : vector<128xf32> to vector<1x128xf32>
    %153 = vector.broadcast %152 : vector<1x128xf32> to vector<128x128xf32>
    %154 = arith.subf %150, %153 : vector<128x128xf32>
    %155 = math.exp %154 : vector<128x128xf32>
    %cst_83 = arith.constant dense<0.000000e+00> : vector<128xf32>
    %156 = vector.multi_reduction <add>, %155, %cst_83 [0] : vector<128x128xf32> to vector<128xf32>
    %157 = vector.shape_cast %156 : vector<128xf32> to vector<1x128xf32>
    %158 = tpu.reciprocal %157 {approx = true} : vector<1x128xf32> -> vector<1x128xf32>
    %159 = vector.broadcast %158 : vector<1x128xf32> to vector<128x128xf32>
    %160 = arith.mulf %155, %159 : vector<128x128xf32>
    %cst_84 = arith.constant dense<0.000000e+00> : vector<128xf32>
    %161 = vector.multi_reduction <add>, %160, %cst_84 [1] : vector<128x128xf32> to vector<128xf32>
    %162 = vector.shape_cast %161 : vector<128xf32> to vector<128x1xf32>
    %163 = arith.truncf %160 : vector<128x128xf32> to vector<128x128xbf16>
    %164 = arith.truncf %147 : vector<128x128xf32> to vector<128x128xbf16>
    %cst_85 = arith.constant dense<0.000000e+00> : vector<128x128xf32>
    %165 = tpu.matmul %163, %164, %cst_85 {dimension_numbers = #tpu.dot_dimension_numbers<[1], [0], [0], [1], [0, 0, 1, 1], [], []>} : vector<128x128xbf16>, vector<128x128xbf16>, vector<128x128xf32> -> vector<128x128xf32>
    %cst_86 = arith.constant 9.99999971E-10 : f32
    %166 = vector.broadcast %cst_86 : f32 to vector<128x1xf32>
    %167 = arith.addf %166, %162 : vector<128x1xf32>
    %168 = tpu.reciprocal %167 {approx = true} : vector<128x1xf32> -> vector<128x1xf32>
    %169 = vector.broadcast %168 : vector<128x1xf32> to vector<128x128xf32>
    %170 = arith.mulf %165, %169 : vector<128x128xf32>
    %171 = arith.subf %133, %170 : vector<128x128xf32>
    %c2_87 = arith.constant 2 : index
    %c0_88 = arith.constant 0 : index
    %c0_89 = arith.constant 0 : index
    %172 = vector.load %arg10[%c2_87, %c0_88, %c0_89] : memref<4x128x128xbf16, #tpu.memory_space<vmem>>, vector<1x128x128xbf16>
    %173 = vector.shape_cast %172 : vector<1x128x128xbf16> to vector<128x128xbf16>
    %174 = arith.truncf %171 : vector<128x128xf32> to vector<128x128xbf16>
    %cst_90 = arith.constant dense<0.000000e+00> : vector<128x128xf32>
    %175 = tpu.matmul %174, %173, %cst_90 {dimension_numbers = #tpu.dot_dimension_numbers<[1], [0], [0], [1], [0, 0, 1, 1], [], []>} : vector<128x128xbf16>, vector<128x128xbf16>, vector<128x128xf32> -> vector<128x128xf32>
    %c2_91 = arith.constant 2 : index
    %c0_92 = arith.constant 0 : index
    %c0_93 = arith.constant 0 : index
    %176 = vector.load %arg11[%c2_91, %c0_92, %c0_93] : memref<4x1x128xf32, #tpu.memory_space<vmem>>, vector<1x1x128xf32>
    %177 = vector.shape_cast %176 : vector<1x1x128xf32> to vector<1x128xf32>
    %178 = vector.broadcast %177 : vector<1x128xf32> to vector<128x128xf32>
    %179 = arith.addf %175, %178 : vector<128x128xf32>
    %c2_94 = arith.constant 2 : index
    %c0_95 = arith.constant 0 : index
    %c0_96 = arith.constant 0 : index
    %180 = vector.load %arg12[%c2_94, %c0_95, %c0_96] : memref<4x1x128xf32, #tpu.memory_space<vmem>>, vector<1x1x128xf32>
    %181 = vector.shape_cast %180 : vector<1x1x128xf32> to vector<1x128xf32>
    %182 = vector.broadcast %181 : vector<1x128xf32> to vector<128x128xf32>
    %183 = arith.mulf %179, %182 : vector<128x128xf32>
    %c2_97 = arith.constant 2 : index
    %c0_98 = arith.constant 0 : index
    %c0_99 = arith.constant 0 : index
    %184 = vector.load %arg13[%c2_97, %c0_98, %c0_99] : memref<4x1x128xf32, #tpu.memory_space<vmem>>, vector<1x1x128xf32>
    %185 = vector.shape_cast %184 : vector<1x1x128xf32> to vector<1x128xf32>
    %186 = vector.broadcast %185 : vector<1x128xf32> to vector<128x128xf32>
    %187 = arith.addf %183, %186 : vector<128x128xf32>
    %cst_100 = arith.constant 0.000000e+00 : f32
    %188 = vector.broadcast %cst_100 : f32 to vector<128x128xf32>
    %189 = arith.maximumf %187, %188 : vector<128x128xf32>
    %190 = arith.addf %133, %189 : vector<128x128xf32>
    %191 = tpu.transpose %190, [1, 0] : vector<128x128xf32> -> vector<128x128xf32>
    %c0_101 = arith.constant 0 : index
    %c256 = arith.constant 256 : index
    %c0_102 = arith.constant 0 : index
    %192 = vector.load %arg14[%c0_101, %c256, %c0_102] : memref<1x512x128xf32, #tpu.memory_space<vmem>>, vector<1x128x128xf32>
    %193 = vector.shape_cast %192 : vector<1x128x128xf32> to vector<128x128xf32>
    %194 = vector.shape_cast %191 : vector<128x128xf32> to vector<1x128x128xf32>
    tpu.vector_store %arg14[%c0_101, %c256, %c0_102], %194 {strides = array<i32>} : memref<1x512x128xf32, #tpu.memory_space<vmem>>, vector<1x128x128xf32>,
    %c3 = arith.constant 3 : index
    %c0_103 = arith.constant 0 : index
    %c0_104 = arith.constant 0 : index
    %195 = vector.load %arg8[%c3, %c0_103, %c0_104] : memref<4x128x256xbf16, #tpu.memory_space<vmem>>, vector<1x128x256xbf16>
    %196 = vector.shape_cast %195 : vector<1x128x256xbf16> to vector<128x256xbf16>
    %197 = arith.truncf %190 : vector<128x128xf32> to vector<128x128xbf16>
    %cst_105 = arith.constant dense<0.000000e+00> : vector<128x256xf32>
    %198 = tpu.matmul %197, %196, %cst_105 {dimension_numbers = #tpu.dot_dimension_numbers<[1], [0], [0], [1], [0, 0, 1, 1], [], []>} : vector<128x128xbf16>, vector<128x256xbf16>, vector<128x256xf32> -> vector<128x256xf32>
    %c3_106 = arith.constant 3 : index
    %c0_107 = arith.constant 0 : index
    %c0_108 = arith.constant 0 : index
    %199 = vector.load %arg9[%c3_106, %c0_107, %c0_108] : memref<4x1x256xf32, #tpu.memory_space<vmem>>, vector<1x1x256xf32>
    %200 = vector.shape_cast %199 : vector<1x1x256xf32> to vector<1x256xf32>
    %201 = vector.broadcast %200 : vector<1x256xf32> to vector<128x256xf32>
    %202 = arith.addf %198, %201 : vector<128x256xf32>
    %203 = vector.extract_strided_slice %202 {offsets = [0, 0], sizes = [128, 128], strides = [1, 1]} : vector<128x256xf32> to vector<128x128xf32>
    %204 = vector.extract_strided_slice %202 {offsets = [0, 128], sizes = [128, 128], strides = [1, 1]} : vector<128x256xf32> to vector<128x128xf32>
    %205 = arith.truncf %203 : vector<128x128xf32> to vector<128x128xbf16>
    %206 = arith.truncf %203 : vector<128x128xf32> to vector<128x128xbf16>
    %cst_109 = arith.constant dense<0.000000e+00> : vector<128x128xf32>
    %207 = tpu.matmul %205, %206, %cst_109 {dimension_numbers = #tpu.dot_dimension_numbers<[1], [1], [0], [0], [0, 0, 1, 0], [], []>} : vector<128x128xbf16>, vector<128x128xbf16>, vector<128x128xf32> -> vector<128x128xf32>
    %cst_110 = arith.constant dense<0xFF800000> : vector<128xf32>
    %208 = vector.multi_reduction <maximumf>, %207, %cst_110 [0] : vector<128x128xf32> to vector<128xf32>
    %209 = vector.shape_cast %208 : vector<128xf32> to vector<1x128xf32>
    %210 = vector.broadcast %209 : vector<1x128xf32> to vector<128x128xf32>
    %211 = arith.subf %207, %210 : vector<128x128xf32>
    %212 = math.exp %211 : vector<128x128xf32>
    %cst_111 = arith.constant dense<0.000000e+00> : vector<128xf32>
    %213 = vector.multi_reduction <add>, %212, %cst_111 [0] : vector<128x128xf32> to vector<128xf32>
    %214 = vector.shape_cast %213 : vector<128xf32> to vector<1x128xf32>
    %215 = tpu.reciprocal %214 {approx = true} : vector<1x128xf32> -> vector<1x128xf32>
    %216 = vector.broadcast %215 : vector<1x128xf32> to vector<128x128xf32>
    %217 = arith.mulf %212, %216 : vector<128x128xf32>
    %cst_112 = arith.constant dense<0.000000e+00> : vector<128xf32>
    %218 = vector.multi_reduction <add>, %217, %cst_112 [1] : vector<128x128xf32> to vector<128xf32>
    %219 = vector.shape_cast %218 : vector<128xf32> to vector<128x1xf32>
    %220 = arith.truncf %217 : vector<128x128xf32> to vector<128x128xbf16>
    %221 = arith.truncf %204 : vector<128x128xf32> to vector<128x128xbf16>
    %cst_113 = arith.constant dense<0.000000e+00> : vector<128x128xf32>
    %222 = tpu.matmul %220, %221, %cst_113 {dimension_numbers = #tpu.dot_dimension_numbers<[1], [0], [0], [1], [0, 0, 1, 1], [], []>} : vector<128x128xbf16>, vector<128x128xbf16>, vector<128x128xf32> -> vector<128x128xf32>
    %cst_114 = arith.constant 9.99999971E-10 : f32
    %223 = vector.broadcast %cst_114 : f32 to vector<128x1xf32>
    %224 = arith.addf %223, %219 : vector<128x1xf32>
    %225 = tpu.reciprocal %224 {approx = true} : vector<128x1xf32> -> vector<128x1xf32>
    %226 = vector.broadcast %225 : vector<128x1xf32> to vector<128x128xf32>
    %227 = arith.mulf %222, %226 : vector<128x128xf32>
    %228 = arith.subf %190, %227 : vector<128x128xf32>
    %c3_115 = arith.constant 3 : index
    %c0_116 = arith.constant 0 : index
    %c0_117 = arith.constant 0 : index
    %229 = vector.load %arg10[%c3_115, %c0_116, %c0_117] : memref<4x128x128xbf16, #tpu.memory_space<vmem>>, vector<1x128x128xbf16>
    %230 = vector.shape_cast %229 : vector<1x128x128xbf16> to vector<128x128xbf16>
    %231 = arith.truncf %228 : vector<128x128xf32> to vector<128x128xbf16>
    %cst_118 = arith.constant dense<0.000000e+00> : vector<128x128xf32>
    %232 = tpu.matmul %231, %230, %cst_118 {dimension_numbers = #tpu.dot_dimension_numbers<[1], [0], [0], [1], [0, 0, 1, 1], [], []>} : vector<128x128xbf16>, vector<128x128xbf16>, vector<128x128xf32> -> vector<128x128xf32>
    %c3_119 = arith.constant 3 : index
    %c0_120 = arith.constant 0 : index
    %c0_121 = arith.constant 0 : index
    %233 = vector.load %arg11[%c3_119, %c0_120, %c0_121] : memref<4x1x128xf32, #tpu.memory_space<vmem>>, vector<1x1x128xf32>
    %234 = vector.shape_cast %233 : vector<1x1x128xf32> to vector<1x128xf32>
    %235 = vector.broadcast %234 : vector<1x128xf32> to vector<128x128xf32>
    %236 = arith.addf %232, %235 : vector<128x128xf32>
    %c3_122 = arith.constant 3 : index
    %c0_123 = arith.constant 0 : index
    %c0_124 = arith.constant 0 : index
    %237 = vector.load %arg12[%c3_122, %c0_123, %c0_124] : memref<4x1x128xf32, #tpu.memory_space<vmem>>, vector<1x1x128xf32>
    %238 = vector.shape_cast %237 : vector<1x1x128xf32> to vector<1x128xf32>
    %239 = vector.broadcast %238 : vector<1x128xf32> to vector<128x128xf32>
    %240 = arith.mulf %236, %239 : vector<128x128xf32>
    %c3_125 = arith.constant 3 : index
    %c0_126 = arith.constant 0 : index
    %c0_127 = arith.constant 0 : index
    %241 = vector.load %arg13[%c3_125, %c0_126, %c0_127] : memref<4x1x128xf32, #tpu.memory_space<vmem>>, vector<1x1x128xf32>
    %242 = vector.shape_cast %241 : vector<1x1x128xf32> to vector<1x128xf32>
    %243 = vector.broadcast %242 : vector<1x128xf32> to vector<128x128xf32>
    %244 = arith.addf %240, %243 : vector<128x128xf32>
    %cst_128 = arith.constant 0.000000e+00 : f32
    %245 = vector.broadcast %cst_128 : f32 to vector<128x128xf32>
    %246 = arith.maximumf %244, %245 : vector<128x128xf32>
    %247 = arith.addf %190, %246 : vector<128x128xf32>
    %248 = tpu.transpose %247, [1, 0] : vector<128x128xf32> -> vector<128x128xf32>
    %c0_129 = arith.constant 0 : index
    %c384 = arith.constant 384 : index
    %c0_130 = arith.constant 0 : index
    %249 = vector.load %arg14[%c0_129, %c384, %c0_130] : memref<1x512x128xf32, #tpu.memory_space<vmem>>, vector<1x128x128xf32>
    %250 = vector.shape_cast %249 : vector<1x128x128xf32> to vector<128x128xf32>
    %251 = vector.shape_cast %248 : vector<128x128xf32> to vector<1x128x128xf32>
    tpu.vector_store %arg14[%c0_129, %c384, %c0_130], %251 {strides = array<i32>} : memref<1x512x128xf32, #tpu.memory_space<vmem>>, vector<1x128x128xf32>,
    return
  }
  func.func @transform_0(%arg0: i32) -> (i32, i32, i32) {
    %c0_i32 = arith.constant 0 : i32
    %c0_i32_0 = arith.constant 0 : i32
    %c0_i32_1 = arith.constant 0 : i32
    return %arg0, %c0_i32, %c0_i32_0 : i32, i32, i32
  }
  func.func @transform_1(%arg0: i32) -> (i32, i32) {
    %c0_i32 = arith.constant 0 : i32
    %c0_i32_0 = arith.constant 0 : i32
    %c0_i32_1 = arith.constant 0 : i32
    return %c0_i32, %c0_i32_0 : i32, i32
  }
  func.func @transform_2(%arg0: i32) -> (i32, i32) {
    %c0_i32 = arith.constant 0 : i32
    %c0_i32_0 = arith.constant 0 : i32
    %c0_i32_1 = arith.constant 0 : i32
    return %c0_i32, %c0_i32_0 : i32, i32
  }
  func.func @transform_3(%arg0: i32) -> (i32, i32) {
    %c0_i32 = arith.constant 0 : i32
    %c0_i32_0 = arith.constant 0 : i32
    %c0_i32_1 = arith.constant 0 : i32
    return %c0_i32, %c0_i32_0 : i32, i32
  }
  func.func @transform_4(%arg0: i32) -> (i32, i32) {
    %c0_i32 = arith.constant 0 : i32
    %c0_i32_0 = arith.constant 0 : i32
    %c0_i32_1 = arith.constant 0 : i32
    return %c0_i32, %c0_i32_0 : i32, i32
  }
  func.func @transform_5(%arg0: i32) -> (i32, i32) {
    %c0_i32 = arith.constant 0 : i32
    %c0_i32_0 = arith.constant 0 : i32
    %c0_i32_1 = arith.constant 0 : i32
    return %c0_i32, %c0_i32_0 : i32, i32
  }
  func.func @transform_6(%arg0: i32) -> (i32, i32) {
    %c0_i32 = arith.constant 0 : i32
    %c0_i32_0 = arith.constant 0 : i32
    %c0_i32_1 = arith.constant 0 : i32
    return %c0_i32, %c0_i32_0 : i32, i32
  }
  func.func @transform_7(%arg0: i32) -> (i32, i32, i32) {
    %c0_i32 = arith.constant 0 : i32
    %c0_i32_0 = arith.constant 0 : i32
    %c0_i32_1 = arith.constant 0 : i32
    %c0_i32_2 = arith.constant 0 : i32
    return %c0_i32, %c0_i32_0, %c0_i32_1 : i32, i32, i32
  }
  func.func @transform_8(%arg0: i32) -> (i32, i32, i32) {
    %c0_i32 = arith.constant 0 : i32
    %c0_i32_0 = arith.constant 0 : i32
    %c0_i32_1 = arith.constant 0 : i32
    %c0_i32_2 = arith.constant 0 : i32
    return %c0_i32, %c0_i32_0, %c0_i32_1 : i32, i32, i32
  }
  func.func @transform_9(%arg0: i32) -> (i32, i32, i32) {
    %c0_i32 = arith.constant 0 : i32
    %c0_i32_0 = arith.constant 0 : i32
    %c0_i32_1 = arith.constant 0 : i32
    %c0_i32_2 = arith.constant 0 : i32
    return %c0_i32, %c0_i32_0, %c0_i32_1 : i32, i32, i32
  }
  func.func @transform_10(%arg0: i32) -> (i32, i32, i32) {
    %c0_i32 = arith.constant 0 : i32
    %c0_i32_0 = arith.constant 0 : i32
    %c0_i32_1 = arith.constant 0 : i32
    %c0_i32_2 = arith.constant 0 : i32
    return %c0_i32, %c0_i32_0, %c0_i32_1 : i32, i32, i32
  }
  func.func @transform_11(%arg0: i32) -> (i32, i32, i32) {
    %c0_i32 = arith.constant 0 : i32
    %c0_i32_0 = arith.constant 0 : i32
    %c0_i32_1 = arith.constant 0 : i32
    %c0_i32_2 = arith.constant 0 : i32
    return %c0_i32, %c0_i32_0, %c0_i32_1 : i32, i32, i32
  }
  func.func @transform_12(%arg0: i32) -> (i32, i32, i32) {
    %c0_i32 = arith.constant 0 : i32
    %c0_i32_0 = arith.constant 0 : i32
    %c0_i32_1 = arith.constant 0 : i32
    %c0_i32_2 = arith.constant 0 : i32
    return %c0_i32, %c0_i32_0, %c0_i32_1 : i32, i32, i32
  }
  func.func @transform_13(%arg0: i32) -> (i32, i32, i32) {
    %c0_i32 = arith.constant 0 : i32
    %c0_i32_0 = arith.constant 0 : i32
    %c0_i32_1 = arith.constant 0 : i32
    return %arg0, %c0_i32, %c0_i32_0 : i32, i32, i32
  }
}

</mosaic_0001>

<bundles_post_ra>
// kernel: stacked_attention.1
= control target key start
LH: loop header
LB: loop body
LE: loop exit
PB: predicated region body
PF: predicated region fallthrough
CT: control target
= control target key end

     0   :  { %s8213_s0 = inlined_call_operand.hbm [shape: f32[2,128,128], index: 0, kind: input, shape index: {}]   ;;  %s8214_s1 = inlined_call_operand.hbm [shape: bf16[128,128], index: 1, kind: input, shape index: {}]   ;;  %s8215_s2 = inlined_call_operand.vmem [shape: f32[1,128], index: 2, kind: input, shape index: {}]   ;;  %s8216_s3 = inlined_call_operand.vmem [shape: f32[1,128], index: 3, kind: input, shape index: {}]   ;;  %s8217_s4 = inlined_call_operand.hbm [shape: bf16[128,128], index: 4, kind: input, shape index: {}]   ;;  %s8218_s5 = inlined_call_operand.hbm [shape: f32[1,128], index: 5, kind: input, shape index: {}]   ;;  %s8219_s6 = inlined_call_operand.hbm [shape: f32[1,128], index: 6, kind: input, shape index: {}]   ;;  %s8220_s7 = inlined_call_operand.hbm [shape: bf16[4,128,256], index: 7, kind: input, shape index: {}]   ;;  %s8221_s8 = inlined_call_operand.vmem [shape: f32[4,1,256], index: 8, kind: input, shape index: {}]   ;;  %s8222_s9 = inlined_call_operand.hbm [shape: bf16[4,128,128], index: 9, kind: input, shape index: {}]   ;;  %s8223_s10 = inlined_call_operand.vmem [shape: f32[4,1,128], index: 10, kind: input, shape index: {}]   ;;  %s8224_s11 = inlined_call_operand.vmem [shape: f32[4,1,128], index: 11, kind: input, shape index: {}]   ;;  %s8225_s12 = inlined_call_operand.vmem [shape: f32[4,1,128], index: 12, kind: input, shape index: {}]   ;;  %s8226_s13 = inlined_call_operand.hbm [shape: f32[2,512,128], index: 13, kind: output, shape index: {}]  }
   0x1   :  { %8278 = sst [smem:[#allocation43_spill]] %s8213_s0 }
   0x2   :  { %8279 = sst [smem:[#allocation44_spill]] %s8214_s1 }
   0x3   :  { %8280 = sst [smem:[#allocation45_spill]] %s8218_s5 }
   0x4   :  { %8281 = sst [smem:[#allocation46_spill]] %s8221_s8 }
   0x5   :  { %8282 = sst [smem:[#allocation47_spill]] %s8223_s10 }
   0x6   :  { %8283 = sst [smem:[#allocation48_spill]] %s8224_s11 }
   0x7   :  { %8284 = sst [smem:[#allocation49_spill]] %s8225_s12 }
   0x8   :  { %8285 = sst [smem:[#allocation50_spill]] %s8226_s13 }
   0x9   :  { %18 = vsyncpa [#allocation3], 0 }
   0xa   :  { %20 = vsyncpa [#allocation3 + $0x1], 0 }
   0xb   :  { %21 = vsyncpa [#allocation6], 0 }
   0xc   :  { %22 = vsyncpa [#allocation9], 0 }
   0xd   :  { %23 = vsyncpa [#allocation12], 0 }
   0xe   :  { %24 = vsyncpa [#allocation4], 0 }
   0xf   :  { %26 = vsyncpa [#allocation4 + $0x1], 0  ;;  %s6732_s25 = smov 0   ;;  %s6734_s26 = smov 0  }
  0x10   :  { %s6736_s27 = smov 0   ;;  %s6738_s28 = smov 0  }
  0x11 LB: > { %s6647_s29 = smov [#allocation5]   ;;  %s6753_s14 = sadd.s32 4294967295, %s6645_s28   ;;  %s6645_s28 = sphi %s6738_s28, %s8365_s28   ;;  %s6641_s27 = sphi %s6736_s27, %s8364_s27   ;;  %s6637_s26 = sphi %s6734_s26, %s8363_s26   ;;  %s6633_s25 = sphi %s6732_s25, %s8362_s25  }
  0x12   : > { %s353_s30 = sshll.u32 %s6647_s29, 4  ;;  %p5008_p0 = scmp.ge.s32.totalorder %s6645_s28, 1  ;;  %s6758_s30 = int_to_ptr.vmem [resolvable:$true] %s353_s30 }
  0x13   : > { %p8236_p1 = scmp.eq.s32.totalorder %s6753_s14, 0  ;;  %p341_p2 = scmp.lt.s32.totalorder %s6645_s28, 3 }
  0x14   : > { %s6648_s16 = smov [#allocation8]   ;;  %s6649_s19 = smov [#allocation11]  }
  0x15   : > { %p6760_p3 = pnand %p5008_p0, %p341_p2  ;;  %s386_s17 = sshll.u32 %s6648_s16, 4  ;;  %s6773_s17 = int_to_ptr.vmem [resolvable:$true] %s386_s17 }
  0x16   : > { %s407_s20 = sshll.u32 %s6649_s19, 4  ;;  %s8288_s1 = sld [smem:[#allocation44_spill]]  ;;  %s6775_s20 = int_to_ptr.vmem [resolvable:$true] %s407_s20 }
  0x17   : > { %s8286_s15 = scalar_select %p6760_p3, 1, 0 }
  0x18   : > { %p5875_p5 = pneg %p6760_p3 }
  0x1a   : > { %p6769_p6 = pnand %p5875_p5, %p8236_p1 }
  0x1c   : > { %s6369_s23 = scalar_lea.hbm %s8288_s1, 1024  ;;  %p6785_p8 = pneg %p6769_p6 }
  0x1d   : > { %p6370_p7 = scmp.ne.s32.totalorder %s8288_s1, %s6369_s23  ;;  %p6376_p11 = scmp.lt.u32.totalorder %s6369_s23, %s8288_s1 }
  0x1f   : > { %p6372_p9 = pnand %p6785_p8, %p6370_p7 }
  0x21   : > { %p6373_p10 = pneg %p6372_p9 }
  0x23   : > { %p6378_p12 = pnand %p6376_p11, %p6373_p10 }
  0x25   : > { %6381 = shalt.err (!%p6378_p12)
}
  0x26   : > { %s6382_s21 = scalar_lea.vmem %s6758_s30, 1024  ;;  %p6390_p5 = scmp.lt.s32.totalorder %s6758_s30, %s6758_s30 }
  0x27   : > { %p6383_p13 = scmp.ne.s32.totalorder %s6758_s30, %s6382_s21  ;;  %p6391_p4 = scmp.lt.s32.totalorder %s6382_s21, %s6382_s21 }
  0x29   : > { %p6385_p0 = pnand %p6383_p13, %p6785_p8  ;;  %p6392_p7 = por %p6391_p4, %p6390_p5 }
  0x2b   : > { %p6386_p2 = pneg %p6385_p0 }
  0x2d   : > { %p6393_p9 = pnand %p6392_p7, %p6386_p2 }
  0x2f   : > { %6396 = shalt.err (!%p6393_p9)
}
  0x30   : > { %s8232_s22 = smov 64   ;;  %s8234_s13 = smov 4  }
  0x31   : > { %5878 = dma.hbm_to_vmem [thread:$0]  (!%p6769_p6), %s8288_s1, 1024, %s6758_s30, [#allocation6], %s8232_s22, %s8232_s22, %s8234_s13  }
  0x32   : > { %s8290_s5 = sld [smem:[#allocation45_spill]] }
  0x38   : > { %s6397_s21 = scalar_lea.hbm %s8290_s5, 16 }
  0x39   : > { %p6398_p4 = scmp.ne.s32.totalorder %s8290_s5, %s6397_s21  ;;  %p6404_p12 = scmp.lt.u32.totalorder %s6397_s21, %s8290_s5 }
  0x3b   : > { %p6400_p10 = pnand %p6398_p4, %p6785_p8 }
  0x3d   : > { %p6401_p11 = pneg %p6400_p10 }
  0x3f   : > { %p6406_p13 = pnand %p6404_p12, %p6401_p11 }
  0x41   : > { %6409 = shalt.err (!%p6406_p13)
}
  0x42   : > { %s6410_s30 = scalar_lea.vmem %s6773_s17, 16  ;;  %s6417_s11 = scalar_lea.vmem %s6773_s17, 32 }
  0x43   : > { %p6411_p0 = scmp.ne.s32.totalorder %s6773_s17, %s6410_s30  ;;  %p6418_p7 = scmp.lt.s32.totalorder %s6773_s17, %s6773_s17 }
  0x44   : > { %p6419_p9 = scmp.lt.s32.totalorder %s6417_s11, %s6410_s30 }
  0x45   : > { %p6413_p2 = pnand %p6411_p0, %p6785_p8 }
  0x46   : > { %p6420_p4 = por %p6419_p9, %p6418_p7 }
  0x47   : > { %p6414_p5 = pneg %p6413_p2 }
  0x49   : > { %p6421_p10 = pnand %p6420_p4, %p6414_p5 }
  0x4b   : > { %6424 = shalt.err (!%p6421_p10)
}
  0x4c   : > { %5884 = dma.hbm_to_vmem [thread:$0]  (!%p6769_p6), %s8290_s5, 16, %s6773_s17, [#allocation9]  }
  0x4d   : > { %s6425_s24 = scalar_lea.hbm %s8220_s7, 8192 }
  0x4e   : > { %p6426_p11 = scmp.ne.s32.totalorder %s8220_s7, %s6425_s24  ;;  %p6432_p0 = scmp.lt.u32.totalorder %s6425_s24, %s8220_s7 }
  0x50   : > { %p6428_p12 = pnand %p6426_p11, %p6785_p8 }
  0x52   : > { %p6429_p13 = pneg %p6428_p12 }
  0x54   : > { %p6434_p2 = pnand %p6432_p0, %p6429_p13 }
  0x56   : > { %6437 = shalt.err (!%p6434_p2)
}
  0x57   : > { %s6438_s17 = scalar_lea.vmem %s6775_s20, 8192  ;;  %p6446_p4 = scmp.lt.s32.totalorder %s6775_s20, %s6775_s20 }
  0x58   : > { %p6439_p5 = scmp.ne.s32.totalorder %s6775_s20, %s6438_s17  ;;  %p6447_p10 = scmp.lt.s32.totalorder %s6438_s17, %s6438_s17 }
  0x5a   : > { %p6441_p7 = pnand %p6439_p5, %p6785_p8  ;;  %p6448_p11 = por %p6447_p10, %p6446_p4 }
  0x5c   : > { %p6442_p9 = pneg %p6441_p7 }
  0x5e   : > { %p6449_p12 = pnand %p6448_p11, %p6442_p9 }
  0x60   : > { %6452 = shalt.err (!%p6449_p12)
}
  0x61   : > { %s6652_s11 = smov 128   ;;  %s6653_s8 = smov 8  }
  0x62   : > { %5890 = dma.hbm_to_vmem [thread:$0]  (!%p6769_p6), %s8220_s7, 8192, %s6775_s20, [#allocation12], %s6652_s11, %s6652_s11, %s6653_s8  }
  0x63   : > { %s6654_s23 = smov [#allocation7]   ;;  %s6655_s29 = smov [#allocation10]  }
  0x64   : > { %s372_s24 = sshll.u32 %s6654_s23, 4  ;;  %s397_s19 = sshll.u32 %s6655_s29, 4  ;;  %s373_s24 = int_to_ptr.vmem [resolvable:$true] %s372_s24  ;;  %s398_s19 = int_to_ptr.vmem [resolvable:$true] %s397_s19 }
  0x65   : > { %s6453_s17 = scalar_lea.hbm %s8217_s4, 1024 }
  0x66   : > { %p6454_p13 = scmp.ne.s32.totalorder %s8217_s4, %s6453_s17  ;;  %p6460_p5 = scmp.lt.u32.totalorder %s6453_s17, %s8217_s4 }
  0x68   : > { %p6456_p0 = pnand %p6454_p13, %p6785_p8 }
  0x6a   : > { %p6457_p2 = pneg %p6456_p0 }
  0x6c   : > { %p6462_p7 = pnand %p6460_p5, %p6457_p2 }
  0x6e   : > { %6465 = shalt.err (!%p6462_p7)
}
  0x6f   : > { %s6466_s20 = scalar_lea.vmem %s373_s24, 1024  ;;  %p6474_p11 = scmp.lt.s32.totalorder %s373_s24, %s373_s24 }
  0x70   : > { %p6467_p9 = scmp.ne.s32.totalorder %s373_s24, %s6466_s20  ;;  %p6475_p12 = scmp.lt.s32.totalorder %s6466_s20, %s6466_s20 }
  0x72   : > { %p6469_p4 = pnand %p6467_p9, %p6785_p8  ;;  %p6476_p1 = por %p6475_p12, %p6474_p11 }
  0x74   : > { %p6470_p10 = pneg %p6469_p4 }
  0x76   : > { %p6477_p3 = pnand %p6476_p1, %p6470_p10 }
  0x78   : > { %6480 = shalt.err (!%p6477_p3)
}
  0x79   : > { %s8291_s22 = smov 4   ;;  %s8292_s13 = smov 64  }
  0x7a   : > { %5881 = dma.hbm_to_vmem [thread:$0]  (!%p6769_p6), %s8217_s4, 1024, %s373_s24, [#allocation6], %s8292_s13, %s8292_s13, %s8291_s22  }
  0x7b   : > { %s6481_s23 = scalar_lea.hbm %s8219_s6, 16 }
  0x7c   : > { %p6482_p1 = scmp.ne.s32.totalorder %s8219_s6, %s6481_s23  ;;  %p6488_p0 = scmp.lt.u32.totalorder %s6481_s23, %s8219_s6 }
  0x7e   : > { %p6484_p3 = pnand %p6482_p1, %p6785_p8 }
  0x80   : > { %p6485_p13 = pneg %p6484_p3 }
  0x82   : > { %p6490_p2 = pnand %p6488_p0, %p6485_p13 }
  0x84   : > { %6493 = shalt.err (!%p6490_p2)
}
  0x85   : > { %s6494_s20 = scalar_lea.vmem %s398_s19, 16  ;;  %s6501_s24 = scalar_lea.vmem %s398_s19, 32 }
  0x86   : > { %p6495_p5 = scmp.ne.s32.totalorder %s398_s19, %s6494_s20  ;;  %p6502_p4 = scmp.lt.s32.totalorder %s398_s19, %s398_s19 }
  0x87   : > { %p6503_p10 = scmp.lt.s32.totalorder %s6501_s24, %s6494_s20 }
  0x88   : > { %p6497_p7 = pnand %p6495_p5, %p6785_p8 }
  0x89   : > { %p6504_p11 = por %p6503_p10, %p6502_p4 }
  0x8a   : > { %p6498_p9 = pneg %p6497_p7 }
  0x8c   : > { %p6505_p12 = pnand %p6504_p11, %p6498_p9 }
  0x8e   : > { %6508 = shalt.err (!%p6505_p12)
}
  0x8f   : > { %5887 = dma.hbm_to_vmem [thread:$0]  (!%p6769_p6), %s8219_s6, 16, %s398_s19, [#allocation9]  }
  0x90   : > { %s6656_s10 = smov [#allocation13]   ;;  %s6509_s21 = scalar_lea.hbm %s8222_s9, 4096 }
  0x91   : > { %s423_s12 = sshll.u32 %s6656_s10, 4  ;;  %p6510_p1 = scmp.ne.s32.totalorder %s8222_s9, %s6509_s21  ;;  %s424_s12 = int_to_ptr.vmem [resolvable:$true] %s423_s12 }
  0x92   : > { %p6516_p0 = scmp.lt.u32.totalorder %s6509_s21, %s8222_s9 }
  0x93   : > { %p6512_p3 = pnand %p6510_p1, %p6785_p8 }
  0x95   : > { %p6513_p13 = pneg %p6512_p3 }
  0x97   : > { %p6518_p2 = pnand %p6516_p0, %p6513_p13 }
  0x99   : > { %6521 = shalt.err (!%p6518_p2)
}
  0x9a   : > { %s6522_s19 = scalar_lea.vmem %s424_s12, 4096  ;;  %p6530_p4 = scmp.lt.s32.totalorder %s424_s12, %s424_s12 }
  0x9b   : > { %p6523_p5 = scmp.ne.s32.totalorder %s424_s12, %s6522_s19  ;;  %p6531_p10 = scmp.lt.s32.totalorder %s6522_s19, %s6522_s19 }
  0x9d   : > { %p6525_p7 = pnand %p6523_p5, %p6785_p8  ;;  %p6532_p11 = por %p6531_p10, %p6530_p4 }
  0x9f   : > { %p6526_p9 = pneg %p6525_p7 }
  0xa1   : > { %p6533_p12 = pnand %p6532_p11, %p6526_p9 }
  0xa3   : > { %6536 = shalt.err (!%p6533_p12)
}
  0xa4   : > { %5893 = dma.hbm_to_vmem [thread:$0]  (!%p6769_p6), %s8222_s9, 4096, %s424_s12, [#allocation12], %s8292_s13, %s8292_s13, %s8291_s22  }
  0xa5   : > { %s5007_s18 = sadd.s32 4294967294, %s6645_s28   ;;  %s6921_s16 = sadd.s32 1, %s6645_s28  }
  0xa6   : > { %s36_s10 = ssub.s32 %s6645_s28, %s6921_s16  ;;  %s39_s23 = sadd.s32 1, %s6641_s27 }
  0xa7   : > { %p37_p8 = scmp.eq.s32.totalorder %s36_s10, 0  ;;  %p46_p1 = scmp.ne.s32.totalorder %s6641_s27, %s6637_s26 }
  0xa8   : > { %p47_p3 = scmp.eq.s32.totalorder %s6645_s28, 0  ;;  %p52_p13 = scmp.ne.s32.totalorder %s6637_s26, %s6633_s25 }
  0xa9   : > { %s6932_s29 = scalar_select %p37_p8, %s6641_s27, %s39_s23  }
  0xaa   : > { %p6934_p0 = por %p47_p3, %p46_p1  ;;  %p8294_p2 = scmp.eq.s32.totalorder %s6753_s14, 0 }
  0xab   : > { %p328_p5 = scmp.eq.s32.totalorder %s6753_s14, 1  ;;  %p334_p7 = scmp.eq.s32.totalorder %s5007_s18, 1 }
  0xac   : > { %p6940_p6 = por %p8294_p2, %p52_p13  ;;  %p5908_p9 = scmp.lt.s32.totalorder %s6645_s28, 2 }
  0xad   : > { %s446_s13 = sand.u32 1, %s6641_s27   ;;  %p6947_p4 = por %p328_p5, %p46_p1 }
  0xae   : > { %p6951_p10 = por %p334_p7, %p52_p13  ;;  %s5016_s17 = sshll.u32 %s446_s13, 7 }
  0xaf   : > { %s8296_s12 = scalar_select %p6947_p4, 1, 0 }
  0xb0   : > { %s8297_s30 = scalar_select %p6951_p10, 1, 0 }
  0xb1   : > { %s5173_s20 = sshll.u32 %s6645_s28, 11  ;;  %s8298_s0 = sld [smem:[#allocation43_spill]] }
  0xb2   : > { %s450_s5 = scalar_lea.vmem [#allocation2], %s5016_s17  ;;  %p6965_p11 = pnand %p5908_p9, %p6934_p0 }
  0xb3   : > { %s457_s18 = sshll.u32 %s450_s5, 4  ;;  %s6969_s23 = scalar_lea.sflag [#allocation3], %s446_s13  ;;  %s6961_s18 = int_to_ptr.vmem [resolvable:$true] %s457_s18 }
  0xb4   : > { %p6539_p8 = pneg %p6965_p11 }
  0xb7   : > { %s6959_s1 = scalar_lea.hbm %s8298_s0, %s5173_s20  ;;  %s6542_s21 = scalar_lea.hbm %s8298_s0, 4096 }
  0xb8   : > { %s6537_s24 = scalar_lea.hbm %s6959_s1, 2048  ;;  %p6543_p13 = scmp.lt.u32.totalorder %s6959_s1, %s8298_s0 }
  0xb9   : > { %p6538_p12 = scmp.ne.s32.totalorder %s6959_s1, %s6537_s24  ;;  %p6544_p0 = scmp.lt.u32.totalorder %s6542_s21, %s6537_s24 }
  0xba   : > { %p6546_p5 = scmp.lt.u32.totalorder %s6537_s24, %s6959_s1 }
  0xbb   : > { %p6540_p1 = pnand %p6539_p8, %p6538_p12  ;;  %p6545_p2 = por %p6544_p0, %p6543_p13 }
  0xbd   : > { %p6541_p3 = pneg %p6540_p1  ;;  %p6547_p7 = por %p6546_p5, %p6545_p2 }
  0xbf   : > { %p6548_p9 = pnand %p6547_p7, %p6541_p3 }
  0xc1   : > { %6551 = shalt.err (!%p6548_p9)
}
  0xc2   : > { %s6552_s13 = scalar_lea.vmem %s6961_s18, 2048  ;;  %s6657_s17 = smov [#allocation2]  }
  0xc3   : > { %p6553_p12 = scmp.ne.s32.totalorder %s6961_s18, %s6552_s13  ;;  %s6557_s20 = sshll.u32 %s6657_s17, 4  ;;  %s6558_s20 = int_to_ptr.vmem [resolvable:$false] %s6557_s20 }
  0xc4   : > { %s6559_s19 = scalar_lea.vmem %s6558_s20, 4096  ;;  %p6560_p4 = scmp.lt.s32.totalorder %s6961_s18, %s6558_s20 }
  0xc5   : > { %p6555_p1 = pnand %p6553_p12, %p6539_p8  ;;  %p6561_p13 = scmp.lt.s32.totalorder %s6559_s19, %s6552_s13 }
  0xc7   : > { %p6556_p10 = pneg %p6555_p1  ;;  %p6562_p0 = por %p6561_p13, %p6560_p4 }
  0xc9   : > { %p6563_p2 = pnand %p6562_p0, %p6556_p10 }
  0xcb   : > { %6566 = shalt.err (!%p6563_p2)
}
  0xcc   : > { %5897 = dma.hbm_to_vmem [thread:$0]  (!%p6965_p11), %s6959_s1, 2048, %s6961_s18, %s6969_s23, %s6652_s11, %s6652_s11, %s6653_s8  }
  0xcd   : > { %p8300_p8 = scmp.ne.s32.totalorder %s8286_s15, 0 }
  0xcf   : > { %469 = sbr.rel (%p8300_p8) target bundleno = 5241 (0x1479), region = 72 }
  0xd6   : > { %s7003_s24 = sand.u32 1, %s6637_s26  }
  0xd7   : > { %s5020_s21 = sshll.u32 %s7003_s24, 7  ;;  %s472_s5 = scalar_lea.sflag [#allocation3], %s7003_s24 }
  0xd8   : > { %s7007_s13 = scalar_lea.vmem [#allocation2], %s5020_s21 }
  0xd9   : > { %6612 = dma.done.wait (%p6940_p6), %s472_s5, 2048  }
  0xda   : > { %6614 = vsyncadd (%p6940_p6), %s472_s5, 4294965248  ;;  %p8301_p4 = scmp.eq.s32.totalorder %s6753_s14, 0 }
  0xdc   : > { %6616 = dma.done.wait (%p8301_p4), [#allocation6], 2048   ;;  %p8302_p10 = pmov %p8301_p4 }
  0xdd   : > { %p8303_p11 = pmov %p8301_p4 }
  0xde   : > { %6618 = vsyncadd (%p8302_p10), [#allocation6], 4294965248 }
  0xdf   : > { %6620 = dma.done.wait (%p8303_p11), [#allocation9], 32   ;;  %p8304_p3 = pmov %p8301_p4 }
  0xe1   : > { %6622 = vsyncadd (%p8304_p3), [#allocation9], 4294967264  ;;  %p8305_p5 = pmov %p8304_p3 }
  0xe2   : > { %p8306_p7 = pmov %p8304_p3 }
  0xe3   : > { %6624 = dma.done.wait (%p8305_p5), [#allocation12], 12288  }
  0xe4   : > { %6626 = vsyncadd (%p8306_p7), [#allocation12], 4294955008  ;;  %v543_v0 = vld [vmem:[%s7007_s13] sm:$0xff]  ;;  %v544_v1 = vld [vmem:[%s7007_s13 + $0x8] sm:$0xff]  ;;  %s8307_s10 = sld [smem:[#allocation46_spill]]  ;;  %s8308_s20 = sld [smem:[#allocation47_spill]] }
  0xe5   : > { %v545_v2 = vld [vmem:[%s7007_s13 + $0x10] sm:$0xff]  ;;  %v575_v3 = vpack.c.bf16 %v544_v1, %v543_v0  ;;  %v546_v4 = vld [vmem:[%s7007_s13 + $0x18] sm:$0xff]  ;;  %v547_v6 = vld [vmem:[%s7007_s13 + $0x20] sm:$0xff]  ;;  %s8309_s5 = sld [smem:[#allocation48_spill]]  ;;  %s8310_s11 = sld [smem:[#allocation49_spill]] }
  0xe6   : > { %v576_v5 = vpack.c.bf16 %v546_v4, %v545_v2  ;;  %v548_v7 = vld [vmem:[%s7007_s13 + $0x28] sm:$0xff]  ;;  %v549_v8 = vld [vmem:[%s7007_s13 + $0x30] sm:$0xff]  ;;  %v5961_v9 = vld [vmem:[#allocation5] sm:$0xff]   ;;  %s5174_s19 = sshll.u32 %s6753_s14, 13  ;;  %s8358_s22 = sld [smem:[#allocation50_spill]] }
  0xe7   : > { %583 = vxpose.xlu0.c.b16.start [1/8] %v575_v3, 128  ;;  %v577_v10 = vpack.c.bf16 %v548_v7, %v547_v6  ;;  %v5962_v11 = vld [vmem:[#allocation5 + $0x8] sm:$0xff]   ;;  %v550_v12 = vld [vmem:[%s7007_s13 + $0x38] sm:$0xff]  ;;  %5399 = vmatprep.subr.bf16.mxu0 %v5961_v9  ;;  %v5963_v13 = vld [vmem:[#allocation5 + $0x10] sm:$0xff]   ;;  %s4864_s18 = scalar_lea.sflag [#allocation4], %s7003_s24  ;;  %p8359_p9 = scmp.ne.s32.totalorder %s8296_s12, 0 }
  0xe8   : > { %5400 = vmatpush3.bf16.msra.mxu0 %v5961_v9  ;;  %v578_v14 = vpack.c.bf16 %v550_v12, %v549_v8  ;;  %v551_v15 = vld [vmem:[%s7007_s13 + $0x40] sm:$0xff]  ;;  %v552_v16 = vld [vmem:[%s7007_s13 + $0x48] sm:$0xff]  ;;  %v5964_v17 = vld [vmem:[#allocation5 + $0x18] sm:$0xff]   ;;  %s6659_s14 = smov [#allocation14]  }
  0xe9   : > { %5401 = vmatprep.subr.bf16.mxu0 %v5962_v11  ;;  %v553_v18 = vld [vmem:[%s7007_s13 + $0x50] sm:$0xff]  ;;  %v5969_v19 = vld [vmem:[#allocation7] sm:$0xff]   ;;  %v579_v20 = vpack.c.bf16 %v552_v16, %v551_v15  ;;  %v5970_v21 = vld [vmem:[#allocation7 + $0x8] sm:$0xff]   ;;  %s6571_s17 = sshll.u32 %s6659_s14, 4  ;;  %s6572_s17 = int_to_ptr.vmem [resolvable:$false] %s6571_s17 }
  0xea   : > { %v554_v22 = vld [vmem:[%s7007_s13 + $0x58] sm:$0xff]  ;;  %5431 = vmatprep.subr.bf16.mxu1 %v5969_v19  ;;  %v5965_v23 = vld [vmem:[#allocation5 + $0x20] sm:$0xff]   ;;  %v556_v25 = vld [vmem:[%s7007_s13 + $0x68] sm:$0xff]  ;;  %s6573_s0 = scalar_lea.vmem %s6572_s17, 16384 }
  0xeb   : > { %584 = vxpose.xlu0.c.b16.cont [2/8] %v576_v5, 128  ;;  %5432 = vmatpush3.bf16.msra.mxu1 %v5969_v19  ;;  %v555_v24 = vld [vmem:[%s7007_s13 + $0x60] sm:$0xff]  ;;  %v5971_v26 = vld [vmem:[#allocation7 + $0x10] sm:$0xff]   ;;  %v580_v27 = vpack.c.bf16 %v554_v22, %v553_v18  ;;  %v5966_v28 = vld [vmem:[#allocation5 + $0x28] sm:$0xff]  }
  0xec   : > { %5402 = vmatpush3.bf16.msra.mxu0 %v5962_v11  ;;  %5433 = vmatprep.subr.bf16.mxu1 %v5970_v21  ;;  %v5972_v29 = vld [vmem:[#allocation7 + $0x18] sm:$0xff]   ;;  %v557_v30 = vld [vmem:[%s7007_s13 + $0x70] sm:$0xff]  ;;  %v581_v32 = vpack.c.bf16 %v556_v25, %v555_v24  ;;  %v5973_v34 = vld [vmem:[#allocation7 + $0x20] sm:$0xff]   ;;  %s8166_s1 = scalar_lea.hbm %s8358_s22, %s5174_s19 }
  0xed   : > { %5403 = vmatprep.subr.bf16.mxu0 %v5963_v13  ;;  %v558_v31 = vld [vmem:[%s7007_s13 + $0x78] sm:$0xff]  ;;  %v5967_v33 = vld [vmem:[#allocation5 + $0x30] sm:$0xff]   ;;  %v5974_v45 = vld [vmem:[#allocation7 + $0x28] sm:$0xff]   ;;  %s5027_s13 = sshll.u32 %s7003_s24, 9 }
  0xee   : > { %v582_v35 = vpack.c.bf16 %v558_v31, %v557_v30  ;;  %v5968_v36 = vld [vmem:[#allocation5 + $0x38] sm:$0xff]   ;;  %v5975_v46 = vld [vmem:[#allocation7 + $0x30] sm:$0xff]   ;;  %v5977_v48 = vld [vmem:[#allocation11] ss:$8 sps:$4 sm:$0xff]   ;;  %s8017_s15 = scalar_lea.vmem [#allocation14], %s5027_s13 }
  0xef   : > { %585 = vxpose.xlu0.c.b16.cont [3/8] %v577_v10, 128  ;;  %5434 = vmatpush3.bf16.msra.mxu1 %v5970_v21  ;;  %v5976_v47 = vld [vmem:[#allocation7 + $0x38] sm:$0xff]   ;;  %v5979_v49 = vld [vmem:[#allocation11 + $0x4] ss:$8 sps:$4 sm:$0xff]   ;;  %v5983_v53 = vld [vmem:[#allocation11 + $0x20] ss:$8 sps:$4 sm:$0xff]   ;;  %s4877_s21 = sshll.u32 %s8017_s15, 4  ;;  %s8168_s21 = int_to_ptr.vmem [resolvable:$true] %s4877_s21 }
  0xf0   : > { %5404 = vmatpush3.bf16.msra.mxu0 %v5963_v13  ;;  %5435 = vmatprep.subr.bf16.mxu1 %v5971_v26  ;;  %v5982_v50 = vld [vmem:[#allocation11 + $0x14] ss:$8 sps:$4 sm:$0xff]   ;;  %v5980_v51 = vld [vmem:[#allocation11 + $0x10] ss:$8 sps:$4 sm:$0xff]   ;;  %v5985_v52 = vld [vmem:[#allocation11 + $0x24] ss:$8 sps:$4 sm:$0xff]   ;;  %p6574_p13 = scmp.lt.s32.totalorder %s8168_s21, %s6572_s17 }
  0xf1   : > { %5405 = vmatprep.subr.bf16.mxu0 %v5964_v17  ;;  %v5988_v54 = vld [vmem:[#allocation11 + $0x34] ss:$8 sps:$4 sm:$0xff]   ;;  %v5986_v55 = vld [vmem:[#allocation11 + $0x30] ss:$8 sps:$4 sm:$0xff]   ;;  %v5991_v56 = vld [vmem:[#allocation11 + $0x44] ss:$8 sps:$4 sm:$0xff]  }
  0xf2   : > { %v5989_v57 = vld [vmem:[#allocation11 + $0x40] ss:$8 sps:$4 sm:$0xff]   ;;  %v5994_v58 = vld [vmem:[#allocation11 + $0x54] ss:$8 sps:$4 sm:$0xff]   ;;  %v5992_v59 = vld [vmem:[#allocation11 + $0x50] ss:$8 sps:$4 sm:$0xff]  }
  0xf3   : > { %586 = vxpose.xlu0.c.b16.cont [4/8] %v578_v14, 128  ;;  %5436 = vmatpush3.bf16.msra.mxu1 %v5971_v26  ;;  %v7044_v60 = vld [vmem:[%s8215_s2] ss:$0 sm:$0xff]  ;;  %s6567_s23 = scalar_lea.vmem %s8168_s21, 8192 }
  0xf4   : > { %5406 = vmatpush3.bf16.msra.mxu0 %v5964_v17  ;;  %5437 = vmatprep.subr.bf16.mxu1 %v5972_v29  ;;  %v7049_v62 = vld [vmem:[%s8216_s3] ss:$0 sm:$0xff]  ;;  %p6568_p6 = scmp.ne.s32.totalorder %s8168_s21, %s6567_s23  ;;  %p6575_p0 = scmp.lt.s32.totalorder %s6573_s0, %s6567_s23 }
  0xf5   : > { %5407 = vmatprep.subr.bf16.mxu0 %v5965_v23 }
  0xf6   : > { %p6569_p12 = pnand %p6568_p6, %p8359_p9  ;;  %p6576_p2 = por %p6575_p0, %p6574_p13 }
  0xf7   : > { %587 = vxpose.xlu0.c.b16.cont [5/8] %v579_v20, 128  ;;  %5438 = vmatpush3.bf16.msra.mxu1 %v5972_v29 }
  0xf8   : > { %5408 = vmatpush3.bf16.msra.mxu0 %v5965_v23  ;;  %5439 = vmatprep.subr.bf16.mxu1 %v5973_v34  ;;  %p6570_p1 = pneg %p6569_p12 }
  0xf9   : > { %5409 = vmatprep.subr.bf16.mxu0 %v5966_v28 }
  0xfa   : > { %p6577_p8 = pnand %p6576_p2, %p6570_p1 }
  0xfb   : > { %588 = vxpose.xlu0.c.b16.cont [6/8] %v580_v27, 128  ;;  %5440 = vmatpush3.bf16.msra.mxu1 %v5973_v34 }
  0xfc   : > { %5410 = vmatpush3.bf16.msra.mxu0 %v5966_v28  ;;  %5441 = vmatprep.subr.bf16.mxu1 %v5974_v45 }
  0xfd   : > { %5411 = vmatprep.subr.bf16.mxu0 %v5967_v33 }
  0xff   : > { %589 = vxpose.xlu0.c.b16.cont [7/8] %v581_v32, 128  ;;  %5442 = vmatpush3.bf16.msra.mxu1 %v5974_v45 }
 0x100   : > { %5412 = vmatpush3.bf16.msra.mxu0 %v5967_v33  ;;  %5443 = vmatprep.subr.bf16.mxu1 %v5975_v46 }
 0x101   : > { %5413 = vmatprep.subr.bf16.mxu0 %v5968_v36 }
 0x103   : > { %590 = vxpose.xlu0.c.b16.end [8/8] %v582_v35, 128  ;;  %5444 = vmatpush3.bf16.msra.mxu1 %v5975_v46 }
 0x104   : > { %5414 = vmatpush3.bf16.msra.mxu0 %v5968_v36  ;;  %5445 = vmatprep.subr.bf16.mxu1 %v5976_v47 }
 0x105   : > { %1153 = vmatprep.subr.bf16.mxu0 %v5979_v49 }
 0x107   : > { %5446 = vmatpush3.bf16.msra.mxu1 %v5976_v47 }
 0x14d   : > { %v591_v37 = vpop.trf.xlu0 }
 0x14e   : > { %5415 = vmatprep.mubr.bf16.mxu0 %v591_v37 }
 0x151   : > { %v592_v38 = vpop.trf.xlu0 }
 0x152   : > { %5416 = vmatmul.mubr.bf16.vlgmr.msra.gmra.mrb[0].mxu0 %v592_v38 }
 0x153   : > { %1154 = vmatpush1.bf16.msra.mxu0 %v5977_v48 }
 0x154   : > { %1155 = vmatprep.subr.bf16.mxu0 %v5982_v50 }
 0x155   : > { %v593_v39 = vpop.trf.xlu0 }
 0x156   : > { %5419 = vmatprep.mubr.bf16.mxu0 %v593_v39 }
 0x157   : > { %1156 = vmatpush1.bf16.msra.mxu0 %v5980_v51 }
 0x158   : > { %1157 = vmatprep.subr.bf16.mxu0 %v5985_v52 }
 0x159   : > { %v594_v40 = vpop.trf.xlu0 }
 0x15a   : > { %5420 = vmatmul.mubr.bf16.gmra.mrb[4].mxu0 %v594_v40 }
 0x15b   : > { %1158 = vmatpush1.bf16.msra.mxu0 %v5983_v53 }
 0x15c   : > { %1159 = vmatprep.subr.bf16.mxu0 %v5988_v54 }
 0x15d   : > { %v595_v41 = vpop.trf.xlu0 }
 0x15e   : > { %5423 = vmatprep.mubr.bf16.mxu0 %v595_v41 }
 0x15f   : > { %1160 = vmatpush1.bf16.msra.mxu0 %v5986_v55 }
 0x160   : > { %1161 = vmatprep.subr.bf16.mxu0 %v5991_v56 }
 0x161   : > { %v596_v42 = vpop.trf.xlu0 }
 0x162   : > { %5424 = vmatmul.mubr.bf16.gmra.mrb[8].mxu0 %v596_v42 }
 0x163   : > { %1162 = vmatpush1.bf16.msra.mxu0 %v5989_v57 }
 0x164   : > { %1163 = vmatprep.subr.bf16.mxu0 %v5994_v58 }
 0x165   : > { %v597_v43 = vpop.trf.xlu0 }
 0x166   : > { %5427 = vmatprep.mubr.bf16.mxu0 %v597_v43 }
 0x167   : > { %1164 = vmatpush1.bf16.msra.mxu0 %v5992_v59 }
 0x169   : > { %v598_v44 = vpop.trf.xlu0 }
 0x16a   : > { %5428 = vmatmul.mubr.bf16.gmra.mrb[12].mxu0 %v598_v44 }
 0x225   : > { %v5417_v61 = vpop.f32.mrb[0].mxu0 }
 0x226   : > { %v753_v63 = vmul.f32 %v5417_v61, %v7044_v60  ;;  %v681_v0 = vpop.f32.mrb[1].mxu0 }
 0x227   : > { %v751_v1 = vmul.f32 %v7044_v60, %v681_v0  ;;  %v5418_v2 = vpop.f32.mrb[2].mxu0 }
 0x228   : > { %v776_v3 = vadd.f32 %v7049_v62, %v753_v63  ;;  %v754_v4 = vmul.f32 %v5418_v2, %v7044_v60  ;;  %v684_v5 = vpop.f32.mrb[3].mxu0 }
 0x229   : > { %v752_v6 = vmul.f32 %v7044_v60, %v684_v5  ;;  %v774_v7 = vadd.f32 %v7049_v62, %v751_v1 }
 0x22a   : > { %v777_v8 = vadd.f32 %v7049_v62, %v754_v4  ;;  %v792_v10 = vmax.f32 %v776_v3, 0.0 }
 0x22b   : > { %v775_v9 = vadd.f32 %v7049_v62, %v752_v6  ;;  %v790_v13 = vmax.f32 %v774_v7, 0.0 }
 0x22c   : > { %v793_v11 = vmax.f32 %v777_v8, 0.0  ;;  %v5997_v8 = vld [vmem:[#allocation11 + $0x64] ss:$8 sps:$4 sm:$0xff]  }
 0x22d   : > { %v5421_v12 = vpop.f32.mrb[4].mxu0  ;;  %v791_v14 = vmax.f32 %v775_v9, 0.0  ;;  %v5995_v9 = vld [vmem:[#allocation11 + $0x60] ss:$8 sps:$4 sm:$0xff]   ;;  %1165 = vmatprep.subr.bf16.mxu0 %v5997_v8 }
 0x22e   : > { %v757_v15 = vmul.f32 %v5421_v12, %v7044_v60  ;;  %v697_v16 = vpop.f32.mrb[5].mxu0  ;;  %v823_v17 = vpack.c.bf16 %v793_v11, %v792_v10  ;;  %1166 = vmatpush1.bf16.msra.mxu0 %v5995_v9  ;;  %v6000_v10 = vld [vmem:[#allocation11 + $0x74] ss:$8 sps:$4 sm:$0xff]   ;;  %v5998_v11 = vld [vmem:[#allocation11 + $0x70] ss:$8 sps:$4 sm:$0xff]  }
 0x22f   : > { %v755_v18 = vmul.f32 %v7044_v60, %v697_v16  ;;  %v5422_v19 = vpop.f32.mrb[6].mxu0  ;;  %v822_v20 = vpack.c.bf16 %v791_v14, %v790_v13  ;;  %1167 = vmatprep.subr.bf16.mxu0 %v6000_v10  ;;  %v7084_v12 = vld [vmem:[#allocation8] ss:$0 sm:$0xff]  ;;  %v7086_v13 = vld [vmem:[#allocation10] ss:$0 sm:$0xff] }
 0x230   : > { %v780_v21 = vadd.f32 %v7049_v62, %v757_v15  ;;  %v758_v22 = vmul.f32 %v5422_v19, %v7044_v60  ;;  %v700_v23 = vpop.f32.mrb[7].mxu0 }
 0x231   : > { %v778_v24 = vadd.f32 %v7049_v62, %v755_v18  ;;  %v756_v25 = vmul.f32 %v7044_v60, %v700_v23  ;;  %5447 = vmatprep.mubr.bf16.mxu1 %v822_v20 }
 0x232   : > { %v796_v26 = vmax.f32 %v780_v21, 0.0  ;;  %v781_v27 = vadd.f32 %v7049_v62, %v758_v22  ;;  %5448 = vmatmul.mubr.bf16.vlgmr.msra.gmra.mrb[0].mxu1 %v823_v17  ;;  %1168 = vmatpush1.bf16.msra.mxu0 %v5998_v11 }
 0x233   : > { %v794_v28 = vmax.f32 %v778_v24, 0.0  ;;  %v779_v29 = vadd.f32 %v7049_v62, %v756_v25 }
 0x234   : > { %v797_v30 = vmax.f32 %v781_v27, 0.0 }
 0x235   : > { %v795_v31 = vmax.f32 %v779_v29, 0.0  ;;  %v5425_v32 = vpop.f32.mrb[8].mxu0 }
 0x236   : > { %v825_v33 = vpack.c.bf16 %v797_v30, %v796_v26  ;;  %v761_v34 = vmul.f32 %v5425_v32, %v7044_v60  ;;  %v713_v35 = vpop.f32.mrb[9].mxu0 }
 0x237   : > { %v824_v36 = vpack.c.bf16 %v795_v31, %v794_v28  ;;  %v759_v37 = vmul.f32 %v7044_v60, %v713_v35  ;;  %v5426_v38 = vpop.f32.mrb[10].mxu0 }
 0x238   : > { %v784_v39 = vadd.f32 %v7049_v62, %v761_v34  ;;  %v762_v40 = vmul.f32 %v5426_v38, %v7044_v60  ;;  %v716_v41 = vpop.f32.mrb[11].mxu0 }
 0x239   : > { %5451 = vmatprep.mubr.bf16.mxu1 %v824_v36  ;;  %v782_v42 = vadd.f32 %v7049_v62, %v759_v37  ;;  %v760_v43 = vmul.f32 %v7044_v60, %v716_v41 }
 0x23a   : > { %5452 = vmatmul.mubr.bf16.gmra.mrb[4].mxu1 %v825_v33  ;;  %v800_v44 = vmax.f32 %v784_v39, 0.0  ;;  %v785_v45 = vadd.f32 %v7049_v62, %v762_v40 }
 0x23b   : > { %v798_v46 = vmax.f32 %v782_v42, 0.0  ;;  %v783_v47 = vadd.f32 %v7049_v62, %v760_v43 }
 0x23c   : > { %v801_v48 = vmax.f32 %v785_v45, 0.0 }
 0x23d   : > { %v799_v49 = vmax.f32 %v783_v47, 0.0  ;;  %v5429_v50 = vpop.f32.mrb[12].mxu0 }
 0x23e   : > { %v827_v51 = vpack.c.bf16 %v801_v48, %v800_v44  ;;  %v765_v52 = vmul.f32 %v5429_v50, %v7044_v60  ;;  %v729_v53 = vpop.f32.mrb[13].mxu0 }
 0x23f   : > { %v826_v54 = vpack.c.bf16 %v799_v49, %v798_v46  ;;  %v763_v55 = vmul.f32 %v7044_v60, %v729_v53  ;;  %v5430_v56 = vpop.f32.mrb[14].mxu0 }
 0x240   : > { %v788_v57 = vadd.f32 %v7049_v62, %v765_v52  ;;  %v766_v58 = vmul.f32 %v5430_v56, %v7044_v60  ;;  %v732_v59 = vpop.f32.mrb[15].mxu0 }
 0x241   : > { %5455 = vmatprep.mubr.bf16.mxu1 %v826_v54  ;;  %v786_v61 = vadd.f32 %v7049_v62, %v763_v55  ;;  %v764_v63 = vmul.f32 %v7044_v60, %v732_v59  ;;  %v8239_v60 = vmov 0  }
 0x242   : > { %5456 = vmatmul.mubr.bf16.gmra.mrb[8].mxu1 %v827_v51  ;;  %v804_v0 = vmax.f32 %v788_v57, 0.0  ;;  %v789_v1 = vadd.f32 %v7049_v62, %v766_v58  ;;  %1185 = vmatprep.mubr.bf16.mxu0 %v8239_v60 }
 0x243   : > { %v802_v2 = vmax.f32 %v786_v61, 0.0  ;;  %v787_v3 = vadd.f32 %v7049_v62, %v764_v63 }
 0x244   : > { %v805_v4 = vmax.f32 %v789_v1, 0.0 }
 0x245   : > { %v803_v5 = vmax.f32 %v787_v3, 0.0 }
 0x246   : > { %v829_v6 = vpack.c.bf16 %v805_v4, %v804_v0 }
 0x247   : > { %v828_v7 = vpack.c.bf16 %v803_v5, %v802_v2 }
 0x249   : > { %5459 = vmatprep.mubr.bf16.mxu1 %v828_v7 }
 0x24a   : > { %5460 = vmatmul.mubr.bf16.gmra.mrb[12].mxu1 %v829_v6 }
 0x305   : > { %v5449_v62 = vpop.f32.mrb[0].mxu1 }
 0x306   : > { %v912_v14 = vpop.f32.mrb[1].mxu1  ;;  %v984_v22 = vmul.f32 %v5449_v62, %v7084_v12 }
 0x307   : > { %v982_v15 = vmul.f32 %v7084_v12, %v912_v14  ;;  %v5450_v16 = vpop.f32.mrb[2].mxu1 }
 0x308   : > { %v915_v17 = vpop.f32.mrb[3].mxu1  ;;  %v985_v20 = vmul.f32 %v5450_v16, %v7084_v12  ;;  %v1007_v31 = vadd.f32 %v7086_v13, %v984_v22 }
 0x309   : > { %v1005_v18 = vadd.f32 %v7086_v13, %v982_v15  ;;  %v983_v19 = vmul.f32 %v7084_v12, %v915_v17 }
 0x30a   : > { %v1008_v27 = vadd.f32 %v7086_v13, %v985_v20  ;;  %v7107_v35 = vmax.f32 %v1007_v31, 0.0 }
 0x30b   : > { %v1006_v21 = vadd.f32 %v7086_v13, %v983_v19  ;;  %v7094_v23 = vmax.f32 %v1005_v18, 0.0 }
 0x30c   : > { %v7103_v32 = vmax.f32 %v1008_v27, 0.0 }
 0x30d   : > { %v7096_v24 = vmax.f32 %v1006_v21, 0.0  ;;  %v5453_v25 = vpop.f32.mrb[4].mxu1 }
 0x30e   : > { %v928_v26 = vpop.f32.mrb[5].mxu1  ;;  %v1054_v40 = vpack.c.bf16 %v7103_v32, %v7107_v35  ;;  %v988_v43 = vmul.f32 %v5453_v25, %v7084_v12 }
 0x30f   : > { %v1053_v28 = vpack.c.bf16 %v7096_v24, %v7094_v23  ;;  %v5454_v29 = vpop.f32.mrb[6].mxu1  ;;  %v986_v33 = vmul.f32 %v7084_v12, %v928_v26 }
 0x310   : > { %v931_v30 = vpop.f32.mrb[7].mxu1  ;;  %v989_v45 = vmul.f32 %v5454_v29, %v7084_v12  ;;  %v1011_v49 = vadd.f32 %v7086_v13, %v988_v43 }
 0x311   : > { %1186 = vmatmul.mubr.bf16.vlgmr.msra.gmra.mrb[16].mxu0 %v1053_v28  ;;  %v987_v34 = vmul.f32 %v7084_v12, %v931_v30  ;;  %v1009_v38 = vadd.f32 %v7086_v13, %v986_v33 }
 0x312   : > { %1195 = vmatprep.mubr.bf16.mxu0 %v8239_v60  ;;  %v1012_v50 = vadd.f32 %v7086_v13, %v989_v45  ;;  %v7125_v54 = vmax.f32 %v1011_v49, 0.0 }
 0x313   : > { %v1010_v39 = vadd.f32 %v7086_v13, %v987_v34  ;;  %v7115_v44 = vmax.f32 %v1009_v38, 0.0 }
 0x314   : > { %v7127_v55 = vmax.f32 %v1012_v50, 0.0 }
 0x315   : > { %v5457_v36 = vpop.f32.mrb[8].mxu1  ;;  %v7118_v46 = vmax.f32 %v1010_v39, 0.0 }
 0x316   : > { %v944_v37 = vpop.f32.mrb[9].mxu1  ;;  %v1056_v61 = vpack.c.bf16 %v7127_v55, %v7125_v54  ;;  %v992_v63 = vmul.f32 %v5457_v36, %v7084_v12 }
 0x317   : > { %v5458_v41 = vpop.f32.mrb[10].mxu1  ;;  %v1055_v51 = vpack.c.bf16 %v7118_v46, %v7115_v44  ;;  %v990_v56 = vmul.f32 %v7084_v12, %v944_v37 }
 0x318   : > { %v947_v42 = vpop.f32.mrb[11].mxu1  ;;  %v993_v1 = vmul.f32 %v5458_v41, %v7084_v12  ;;  %v1015_v3 = vadd.f32 %v7086_v13, %v992_v63 }
 0x319   : > { %1196 = vmatmul.mubr.bf16.gmra.mrb[20].mxu0 %v1054_v40  ;;  %v991_v57 = vmul.f32 %v7084_v12, %v947_v42  ;;  %v1013_v58 = vadd.f32 %v7086_v13, %v990_v56 }
 0x31a   : > { %1205 = vmatprep.mubr.bf16.mxu0 %v8239_v60  ;;  %v1016_v4 = vadd.f32 %v7086_v13, %v993_v1  ;;  %v7147_v6 = vmax.f32 %v1015_v3, 0.0 }
 0x31b   : > { %v1014_v59 = vadd.f32 %v7086_v13, %v991_v57  ;;  %v7137_v0 = vmax.f32 %v1013_v58, 0.0 }
 0x31c   : > { %v7149_v7 = vmax.f32 %v1016_v4, 0.0 }
 0x31d   : > { %v5461_v47 = vpop.f32.mrb[12].mxu1  ;;  %v7140_v2 = vmax.f32 %v1014_v59, 0.0 }
 0x31e   : > { %v960_v48 = vpop.f32.mrb[13].mxu1  ;;  %v1058_v62 = vpack.c.bf16 %v7149_v7, %v7147_v6  ;;  %v996_v14 = vmul.f32 %v5461_v47, %v7084_v12 }
 0x31f   : > { %v5462_v52 = vpop.f32.mrb[14].mxu1  ;;  %v1057_v5 = vpack.c.bf16 %v7140_v2, %v7137_v0  ;;  %v994_v8 = vmul.f32 %v7084_v12, %v960_v48 }
 0x320   : > { %v963_v53 = vpop.f32.mrb[15].mxu1  ;;  %v997_v16 = vmul.f32 %v5462_v52, %v7084_v12  ;;  %v1019_v18 = vadd.f32 %v7086_v13, %v996_v14 }
 0x321   : > { %1206 = vmatmul.mubr.bf16.gmra.mrb[24].mxu0 %v1055_v51  ;;  %v995_v9 = vmul.f32 %v7084_v12, %v963_v53  ;;  %v1017_v10 = vadd.f32 %v7086_v13, %v994_v8  ;;  %v1063_v12 = vlaneseq }
 0x322   : > { %1215 = vmatprep.mubr.bf16.mxu0 %v8239_v60  ;;  %v1020_v19 = vadd.f32 %v7086_v13, %v997_v16  ;;  %v7169_v21 = vmax.f32 %v1019_v18, 0.0 }
 0x323   : > { %v1018_v11 = vadd.f32 %v7086_v13, %v995_v9  ;;  %v7159_v15 = vmax.f32 %v1017_v10, 0.0  ;;  %v1064_v26 = vshrl.u32 %v1063_v12, 7  ;;  %v1061_v13 = vld [vmem:[%s8307_s10] sm:$0x3] }
 0x324   : > { %v7171_v22 = vmax.f32 %v1020_v19, 0.0 }
 0x325   : > { %v7162_v17 = vmax.f32 %v1018_v11, 0.0  ;;  %v7175_v27 = vsub.s32 0, %v1064_v26  ;;  %v7180_v28 = vsub.s32 1, %v1064_v26 }
 0x326   : > { %v1060_v25 = vpack.c.bf16 %v7171_v22, %v7169_v21 }
 0x327   : > { %v1059_v20 = vpack.c.bf16 %v7162_v17, %v7159_v15  ;;  %v7183_v29 = vrot.slane %v1061_v13, %v7175_v27  ;;  %v7186_v31 = vrot.slane %v1061_v13, %v7180_v28 }
 0x329   : > { %1216 = vmatmul.mubr.bf16.gmra.mrb[28].mxu0 %v1056_v61 }
 0x32a   : > { %1225 = vmatprep.mubr.bf16.mxu0 %v8239_v60 }
 0x331   : > { %1226 = vmatmul.mubr.bf16.gmra.mrb[32].mxu0 %v1057_v5 }
 0x332   : > { %1235 = vmatprep.mubr.bf16.mxu0 %v8239_v60 }
 0x339   : > { %1236 = vmatmul.mubr.bf16.gmra.mrb[36].mxu0 %v1058_v62 }
 0x33a   : > { %1245 = vmatprep.mubr.bf16.mxu0 %v8239_v60 }
 0x341   : > { %1246 = vmatmul.mubr.bf16.gmra.mrb[40].mxu0 %v1059_v20 }
 0x342   : > { %1255 = vmatprep.mubr.bf16.mxu0 %v8239_v60 }
 0x349   : > { %1256 = vmatmul.mubr.bf16.gmra.mrb[44].mxu0 %v1060_v25 }
 0x3e4   : > { %v1187_v30 = vpop.f32.mrb[16].mxu0 }
 0x3e5   : > { %v1189_v33 = vpop.f32.mrb[17].mxu0  ;;  %v1188_v36 = vadd.f32 %v1187_v30, %v7183_v29 }
 0x3e6   : > { %v1191_v34 = vpop.f32.mrb[18].mxu0  ;;  %v1190_v39 = vadd.f32 %v1189_v33, %v7186_v31 }
 0x3e7   : > { %v1192_v37 = vadd.f32 %v1191_v34, %v7183_v29  ;;  %v1193_v38 = vpop.f32.mrb[19].mxu0 }
 0x3e8   : > { %v1194_v40 = vadd.f32 %v1193_v38, %v7186_v31 }
 0x3e9   : > { %v1266_v41 = vpack.c.bf16 %v1192_v37, %v1188_v36 }
 0x3ea   : > { %v1518_v42 = vpack.c.bf16 %v1194_v40, %v1190_v39 }
 0x3eb   : > { %5463 = vmatprep.subr.bf16.mxu1 %v1266_v41  ;;  %5479 = vmatprep.mubr.bf16.mxu1 %v1266_v41 }
 0x3ec   : > { %v1197_v43 = vpop.f32.mrb[20].mxu0  ;;  %5464 = vmatpush3.bf16.xpose.msra.mxu1 %v1266_v41  ;;  %5495 = vmatprep.subr.bf16.mxu0 %v1518_v42 }
 0x3ed   : > { %v1199_v45 = vpop.f32.mrb[21].mxu0  ;;  %5496 = vmatpush3.bf16.msra.mxu0 %v1518_v42  ;;  %v1198_v48 = vadd.f32 %v1197_v43, %v7183_v29 }
 0x3ee   : > { %v1201_v47 = vpop.f32.mrb[22].mxu0  ;;  %v1200_v51 = vadd.f32 %v1199_v45, %v7186_v31 }
 0x3ef   : > { %v1202_v49 = vadd.f32 %v1201_v47, %v7183_v29  ;;  %v1203_v50 = vpop.f32.mrb[23].mxu0 }
 0x3f0   : > { %v1204_v52 = vadd.f32 %v1203_v50, %v7186_v31 }
 0x3f1   : > { %v7196_v53 = vpack.c.bf16 %v1202_v49, %v1198_v48 }
 0x3f2   : > { %v1519_v56 = vpack.c.bf16 %v1204_v52, %v1200_v51 }
 0x3f3   : > { %5465 = vmatprep.subr.bf16.mxu1 %v7196_v53 }
 0x3f4   : > { %v1207_v57 = vpop.f32.mrb[24].mxu0  ;;  %5466 = vmatpush3.bf16.xpose.msra.mxu1 %v7196_v53  ;;  %5497 = vmatprep.subr.bf16.mxu0 %v1519_v56 }
 0x3f5   : > { %v1209_v58 = vpop.f32.mrb[25].mxu0  ;;  %5498 = vmatpush3.bf16.msra.mxu0 %v1519_v56  ;;  %v1208_v61 = vadd.f32 %v1207_v57, %v7183_v29 }
 0x3f6   : > { %v1211_v59 = vpop.f32.mrb[26].mxu0  ;;  %v1210_v3 = vadd.f32 %v1209_v58, %v7186_v31 }
 0x3f7   : > { %v1212_v63 = vadd.f32 %v1211_v59, %v7183_v29  ;;  %v1213_v1 = vpop.f32.mrb[27].mxu0 }
 0x3f8   : > { %v1214_v4 = vadd.f32 %v1213_v1, %v7186_v31 }
 0x3f9   : > { %v7204_v5 = vpack.c.bf16 %v1212_v63, %v1208_v61 }
 0x3fa   : > { %v1520_v8 = vpack.c.bf16 %v1214_v4, %v1210_v3 }
 0x3fb   : > { %5467 = vmatprep.subr.bf16.mxu1 %v7204_v5 }
 0x3fc   : > { %v1217_v9 = vpop.f32.mrb[28].mxu0  ;;  %5468 = vmatpush3.bf16.xpose.msra.mxu1 %v7204_v5  ;;  %5499 = vmatprep.subr.bf16.mxu0 %v1520_v8 }
 0x3fd   : > { %v1219_v10 = vpop.f32.mrb[29].mxu0  ;;  %5500 = vmatpush3.bf16.msra.mxu0 %v1520_v8  ;;  %v1218_v62 = vadd.f32 %v1217_v9, %v7183_v29 }
 0x3fe   : > { %v1221_v11 = vpop.f32.mrb[30].mxu0  ;;  %v1220_v18 = vadd.f32 %v1219_v10, %v7186_v31 }
 0x3ff   : > { %v1222_v14 = vadd.f32 %v1221_v11, %v7183_v29  ;;  %v1223_v16 = vpop.f32.mrb[31].mxu0 }
 0x400   : > { %v1224_v19 = vadd.f32 %v1223_v16, %v7186_v31 }
 0x401   : > { %v7212_v20 = vpack.c.bf16 %v1222_v14, %v1218_v62 }
 0x402   : > { %v1521_v25 = vpack.c.bf16 %v1224_v19, %v1220_v18 }
 0x403   : > { %5469 = vmatprep.subr.bf16.mxu1 %v7212_v20 }
 0x404   : > { %v1227_v12 = vpop.f32.mrb[32].mxu0  ;;  %5470 = vmatpush3.bf16.xpose.msra.mxu1 %v7212_v20  ;;  %5501 = vmatprep.subr.bf16.mxu0 %v1521_v25 }
 0x405   : > { %v1229_v26 = vpop.f32.mrb[33].mxu0  ;;  %5502 = vmatpush3.bf16.msra.mxu0 %v1521_v25  ;;  %v1228_v30 = vadd.f32 %v1227_v12, %v7183_v29 }
 0x406   : > { %v1231_v13 = vpop.f32.mrb[34].mxu0  ;;  %v1230_v36 = vadd.f32 %v1229_v26, %v7186_v31 }
 0x407   : > { %v1232_v33 = vadd.f32 %v1231_v13, %v7183_v29  ;;  %v1233_v34 = vpop.f32.mrb[35].mxu0 }
 0x408   : > { %v1234_v37 = vadd.f32 %v1233_v34, %v7186_v31 }
 0x409   : > { %v1270_v38 = vpack.c.bf16 %v1232_v33, %v1228_v30 }
 0x40a   : > { %v1522_v39 = vpack.c.bf16 %v1234_v37, %v1230_v36 }
 0x40b   : > { %5471 = vmatprep.subr.bf16.mxu1 %v1270_v38 }
 0x40c   : > { %v1237_v40 = vpop.f32.mrb[36].mxu0  ;;  %5472 = vmatpush3.bf16.xpose.msra.mxu1 %v1270_v38  ;;  %5503 = vmatprep.subr.bf16.mxu0 %v1522_v39 }
 0x40d   : > { %v1239_v41 = vpop.f32.mrb[37].mxu0  ;;  %5504 = vmatpush3.bf16.msra.mxu0 %v1522_v39  ;;  %v1238_v43 = vadd.f32 %v1237_v40, %v7183_v29 }
 0x40e   : > { %v1241_v42 = vpop.f32.mrb[38].mxu0  ;;  %v1240_v48 = vadd.f32 %v1239_v41, %v7186_v31 }
 0x40f   : > { %v1242_v45 = vadd.f32 %v1241_v42, %v7183_v29  ;;  %v1243_v47 = vpop.f32.mrb[39].mxu0 }
 0x410   : > { %v1244_v49 = vadd.f32 %v1243_v47, %v7186_v31 }
 0x411   : > { %v1271_v50 = vpack.c.bf16 %v1242_v45, %v1238_v43 }
 0x412   : > { %v1523_v51 = vpack.c.bf16 %v1244_v49, %v1240_v48 }
 0x413   : > { %5473 = vmatprep.subr.bf16.mxu1 %v1271_v50 }
 0x414   : > { %v1247_v52 = vpop.f32.mrb[40].mxu0  ;;  %5474 = vmatpush3.bf16.xpose.msra.mxu1 %v1271_v50  ;;  %5505 = vmatprep.subr.bf16.mxu0 %v1523_v51 }
 0x415   : > { %v1249_v56 = vpop.f32.mrb[41].mxu0  ;;  %5506 = vmatpush3.bf16.msra.mxu0 %v1523_v51  ;;  %v1248_v58 = vadd.f32 %v1247_v52, %v7183_v29 }
 0x416   : > { %v1251_v57 = vpop.f32.mrb[42].mxu0  ;;  %v1250_v63 = vadd.f32 %v1249_v56, %v7186_v31 }
 0x417   : > { %v1252_v59 = vadd.f32 %v1251_v57, %v7183_v29  ;;  %v1253_v61 = vpop.f32.mrb[43].mxu0 }
 0x418   : > { %v1254_v1 = vadd.f32 %v1253_v61, %v7186_v31 }
 0x419   : > { %v1272_v3 = vpack.c.bf16 %v1252_v59, %v1248_v58 }
 0x41a   : > { %v1524_v4 = vpack.c.bf16 %v1254_v1, %v1250_v63 }
 0x41b   : > { %5475 = vmatprep.subr.bf16.mxu1 %v1272_v3 }
 0x41c   : > { %v1257_v8 = vpop.f32.mrb[44].mxu0  ;;  %5476 = vmatpush3.bf16.xpose.msra.mxu1 %v1272_v3  ;;  %5507 = vmatprep.subr.bf16.mxu0 %v1524_v4 }
 0x41d   : > { %v1259_v9 = vpop.f32.mrb[45].mxu0  ;;  %5508 = vmatpush3.bf16.msra.mxu0 %v1524_v4  ;;  %v1258_v11 = vadd.f32 %v1257_v8, %v7183_v29 }
 0x41e   : > { %v1261_v10 = vpop.f32.mrb[46].mxu0  ;;  %v1260_v16 = vadd.f32 %v1259_v9, %v7186_v31 }
 0x41f   : > { %v1262_v62 = vadd.f32 %v1261_v10, %v7183_v29  ;;  %v1263_v14 = vpop.f32.mrb[47].mxu0 }
 0x420   : > { %v1264_v18 = vadd.f32 %v1263_v14, %v7186_v31 }
 0x421   : > { %v1273_v19 = vpack.c.bf16 %v1262_v62, %v1258_v11 }
 0x422   : > { %v1525_v25 = vpack.c.bf16 %v1264_v18, %v1260_v16 }
 0x423   : > { %5477 = vmatprep.subr.bf16.mxu1 %v1273_v19 }
 0x424   : > { %5478 = vmatpush3.bf16.xpose.msra.mxu1 %v1273_v19  ;;  %5509 = vmatprep.subr.bf16.mxu0 %v1525_v25 }
 0x425   : > { %5510 = vmatpush3.bf16.msra.mxu0 %v1525_v25 }
 0x42b   : > { %5480 = vmatmul.mubr.bf16.vlgmr.msra.gmra.mrb[16].mxu1 %v7196_v53 }
 0x42c   : > { %5483 = vmatprep.mubr.bf16.mxu1 %v7204_v5 }
 0x433   : > { %5484 = vmatmul.mubr.bf16.gmra.mrb[20].mxu1 %v7212_v20 }
 0x434   : > { %5487 = vmatprep.mubr.bf16.mxu1 %v1270_v38 }
 0x43b   : > { %5488 = vmatmul.mubr.bf16.gmra.mrb[24].mxu1 %v1271_v50 }
 0x43c   : > { %5491 = vmatprep.mubr.bf16.mxu1 %v1272_v3 }
 0x443   : > { %5492 = vmatmul.mubr.bf16.gmra.mrb[28].mxu1 %v1273_v19 }
 0x4fe   : > { %v5481_v29 = vpop.f32.mrb[16].mxu1 }
 0x4ff   : > { %v1308_v12 = vpop.f32.mrb[17].mxu1 }
 0x500   : > { %v5482_v26 = vpop.f32.mrb[18].mxu1 }
 0x501   : > { %v1311_v31 = vpop.f32.mrb[19].mxu1 }
 0x506   : > { %v5485_v13 = vpop.f32.mrb[20].mxu1 }
 0x507   : > { %v1373_v30 = vmax.f32 %v5481_v29, %v5485_v13  ;;  %v1324_v33 = vpop.f32.mrb[21].mxu1 }
 0x508   : > { %v1371_v34 = vmax.f32 %v1308_v12, %v1324_v33  ;;  %v5486_v36 = vpop.f32.mrb[22].mxu1 }
 0x509   : > { %v1374_v37 = vmax.f32 %v5482_v26, %v5486_v36  ;;  %v1327_v39 = vpop.f32.mrb[23].mxu1 }
 0x50a   : > { %v1372_v53 = vmax.f32 %v1311_v31, %v1327_v39 }
 0x50e   : > { %v7235_v40 = vpop.f32.mrb[24].mxu1 }
 0x50f   : > { %v1377_v5 = vmax.f32 %v1373_v30, %v7235_v40  ;;  %v1340_v20 = vpop.f32.mrb[25].mxu1 }
 0x510   : > { %v1375_v38 = vmax.f32 %v1371_v34, %v1340_v20  ;;  %v7238_v41 = vpop.f32.mrb[26].mxu1 }
 0x511   : > { %v1378_v42 = vmax.f32 %v1374_v37, %v7238_v41  ;;  %v1343_v43 = vpop.f32.mrb[27].mxu1 }
 0x512   : > { %v1376_v45 = vmax.f32 %v1372_v53, %v1343_v43 }
 0x516   : > { %v7241_v47 = vpop.f32.mrb[28].mxu1 }
 0x517   : > { %v1381_v48 = vmax.f32 %v1377_v5, %v7241_v47  ;;  %v7244_v49 = vpop.f32.mrb[29].mxu1 }
 0x518   : > { %v1379_v50 = vmax.f32 %v1375_v38, %v7244_v49  ;;  %v7247_v51 = vpop.f32.mrb[30].mxu1 }
 0x519   : > { %v1382_v52 = vmax.f32 %v1378_v42, %v7247_v51  ;;  %v7250_v56 = vpop.f32.mrb[31].mxu1 }
 0x51a   : > { %v1380_v57 = vmax.f32 %v1376_v45, %v7250_v56 }
 0x51b   : > { %v1384_v58 = vmax.f32 %v1381_v48, %v1382_v52 }
 0x51c   : > { %v1383_v59 = vmax.f32 %v1379_v50, %v1380_v57 }
 0x51e   : > { %v1385_v61 = vmax.f32 %v1383_v59, %v1384_v58 }
 0x520   : > { %v1386_v63 = vrot.slane %v1385_v61, 4 }
 0x522   : > { %v1387_v1 = vmax.f32 %v1385_v61, %v1386_v63 }
 0x524   : > { %v1388_v3 = vrot.slane %v1387_v1, 2 }
 0x526   : > { %v1389_v4 = vmax.f32 %v1387_v1, %v1388_v3 }
 0x528   : > { %v1390_v8 = vrot.slane %v1389_v4, 1 }
 0x52a   : > { %v1391_v9 = vmax.f32 %v1389_v4, %v1390_v8 }
 0x52c   : > { %v1405_v10 = vsub.f32 %v7250_v56, %v1391_v9  ;;  %v1392_v11 = vsub.f32 %v1308_v12, %v1391_v9  ;;  %v1393_v62 = vsub.f32 %v1311_v31, %v1391_v9  ;;  %v1394_v14 = vsub.f32 %v5481_v29, %v1391_v9 }
 0x52d   : > { %v1395_v16 = vsub.f32 %v5482_v26, %v1391_v9  ;;  %v1396_v18 = vsub.f32 %v1324_v33, %v1391_v9  ;;  %v1397_v19 = vsub.f32 %v1327_v39, %v1391_v9  ;;  %v1398_v25 = vsub.f32 %v5485_v13, %v1391_v9 }
 0x52e   : > { %v1399_v30 = vsub.f32 %v5486_v36, %v1391_v9  ;;  %v1400_v34 = vsub.f32 %v1340_v20, %v1391_v9  ;;  %v1401_v37 = vsub.f32 %v1343_v43, %v1391_v9  ;;  %v1402_v53 = vsub.f32 %v7235_v40, %v1391_v9 }
 0x52f   : > { %v1403_v5 = vsub.f32 %v7238_v41, %v1391_v9  ;;  %v1404_v38 = vsub.f32 %v7244_v49, %v1391_v9  ;;  %v1406_v42 = vsub.f32 %v7241_v47, %v1391_v9  ;;  %v1407_v45 = vsub.f32 %v7247_v51, %v1391_v9 }
 0x530   : > { %v1408_v12 = vmul.f32 1.442695, %v1392_v11  ;;  %v1410_v31 = vmul.f32 1.442695, %v1393_v62  ;;  %v1412_v29 = vmul.f32 1.442695, %v1394_v14 }
 0x531   : > { %v1414_v26 = vmul.f32 1.442695, %v1395_v16  ;;  %v1416_v13 = vmul.f32 1.442695, %v1396_v18  ;;  %v1418_v33 = vmul.f32 1.442695, %v1397_v19 }
 0x532   : > { %6105 = vpow2.f32 %v1408_v12  ;;  %v1420_v36 = vmul.f32 1.442695, %v1398_v25  ;;  %v1422_v39 = vmul.f32 1.442695, %v1399_v30  ;;  %v1424_v41 = vmul.f32 1.442695, %v1400_v34 }
 0x533   : > { %6107 = vpow2.f32 %v1410_v31  ;;  %v1426_v48 = vmul.f32 1.442695, %v1401_v37  ;;  %v1428_v51 = vmul.f32 1.442695, %v1402_v53  ;;  %v1430_v57 = vmul.f32 1.442695, %v1403_v5 }
 0x534   : > { %6109 = vpow2.f32 %v1412_v29  ;;  %v1432_v61 = vmul.f32 1.442695, %v1404_v38  ;;  %v1434_v3 = vmul.f32 1.442695, %v1405_v10  ;;  %v1436_v9 = vmul.f32 1.442695, %v1406_v42 }
 0x535   : > { %6111 = vpow2.f32 %v1414_v26  ;;  %v1438_v14 = vmul.f32 1.442695, %v1407_v45 }
 0x536   : > { %6113 = vpow2.f32 %v1416_v13 }
 0x537   : > { %6115 = vpow2.f32 %v1418_v33 }
 0x538   : > { %6117 = vpow2.f32 %v1420_v36 }
 0x539   : > { %6119 = vpow2.f32 %v1422_v39 }
 0x53a   : > { %6121 = vpow2.f32 %v1424_v41 }
 0x53b   : > { %6123 = vpow2.f32 %v1426_v48 }
 0x53c   : > { %v6106_v40 = vpop.eup %6105  ;;  %6125 = vpow2.f32 %v1428_v51 }
 0x53d   : > { %v6108_v20 = vpop.eup %6107  ;;  %6127 = vpow2.f32 %v1430_v57 }
 0x53e   : > { %v1440_v43 = vadd.f32 %v6108_v20, %v6106_v40  ;;  %v6110_v47 = vpop.eup %6109  ;;  %6129 = vpow2.f32 %v1432_v61 }
 0x53f   : > { %v6112_v50 = vpop.eup %6111  ;;  %6131 = vpow2.f32 %v1434_v3 }
 0x540   : > { %v1441_v49 = vadd.f32 %v6110_v47, %v1440_v43  ;;  %v6114_v56 = vpop.eup %6113  ;;  %6133 = vpow2.f32 %v1436_v9 }
 0x541   : > { %v6116_v59 = vpop.eup %6115  ;;  %6135 = vpow2.f32 %v1438_v14 }
 0x542   : > { %v1442_v52 = vadd.f32 %v6112_v50, %v1441_v49  ;;  %v6118_v1 = vpop.eup %6117 }
 0x543   : > { %v6120_v8 = vpop.eup %6119 }
 0x544   : > { %v1443_v58 = vadd.f32 %v6114_v56, %v1442_v52  ;;  %v6122_v62 = vpop.eup %6121 }
 0x545   : > { %v6124_v18 = vpop.eup %6123 }
 0x546   : > { %v1444_v63 = vadd.f32 %v6116_v59, %v1443_v58  ;;  %v6126_v25 = vpop.eup %6125 }
 0x547   : > { %v6128_v34 = vpop.eup %6127 }
 0x548   : > { %v1445_v4 = vadd.f32 %v6118_v1, %v1444_v63  ;;  %v6130_v53 = vpop.eup %6129 }
 0x549   : > { %v6132_v5 = vpop.eup %6131 }
 0x54a   : > { %v1446_v11 = vadd.f32 %v6120_v8, %v1445_v4  ;;  %v6134_v12 = vpop.eup %6133 }
 0x54b   : > { %v6136_v42 = vpop.eup %6135 }
 0x54c   : > { %v1447_v16 = vadd.f32 %v6122_v62, %v1446_v11 }
 0x54e   : > { %v1448_v19 = vadd.f32 %v6124_v18, %v1447_v16 }
 0x550   : > { %v1449_v30 = vadd.f32 %v6126_v25, %v1448_v19 }
 0x552   : > { %v1450_v37 = vadd.f32 %v6128_v34, %v1449_v30 }
 0x554   : > { %v1451_v10 = vadd.f32 %v6130_v53, %v1450_v37 }
 0x556   : > { %v1452_v38 = vadd.f32 %v6132_v5, %v1451_v10  ;;  %v6008_v10 = vld [vmem:[#allocation13 + $0x38] sm:$0xff]  }
 0x558   : > { %v1453_v31 = vadd.f32 %v6134_v12, %v1452_v38  ;;  %v6011_v38 = vld [vmem:[#allocation11 + $0x84] ss:$8 sps:$4 sm:$0xff]  }
 0x559   : > { %2107 = vmatprep.subr.bf16.mxu0 %v6011_v38 }
 0x55a   : > { %v1454_v29 = vadd.f32 %v6136_v42, %v1453_v31  ;;  %v6012_v31 = vld [vmem:[#allocation11 + $0x90] ss:$8 sps:$4 sm:$0xff]  }
 0x55c   : > { %v1455_v26 = vrot.slane %v1454_v29, 4 }
 0x55e   : > { %v1456_v13 = vadd.f32 %v1455_v26, %v1454_v29  ;;  %v6015_v29 = vld [vmem:[#allocation11 + $0xa0] ss:$8 sps:$4 sm:$0xff]   ;;  %v6020_v26 = vld [vmem:[#allocation11 + $0xb4] ss:$8 sps:$4 sm:$0xff]  }
 0x560   : > { %v1457_v45 = vrot.slane %v1456_v13, 2 }
 0x562   : > { %v1458_v33 = vadd.f32 %v1457_v45, %v1456_v13  ;;  %v6018_v13 = vld [vmem:[#allocation11 + $0xb0] ss:$8 sps:$4 sm:$0xff]   ;;  %v6023_v45 = vld [vmem:[#allocation11 + $0xc4] ss:$8 sps:$4 sm:$0xff]  }
 0x564   : > { %v1459_v36 = vrot.slane %v1458_v33, 1 }
 0x566   : > { %v1460_v39 = vadd.f32 %v1459_v36, %v1458_v33  ;;  %v6021_v33 = vld [vmem:[#allocation11 + $0xc0] ss:$8 sps:$4 sm:$0xff]  }
 0x568   : > { %6137 = vrcp.f32 %v1460_v39 }
 0x572   : > { %v6138_v41 = vpop.eup %6137 }
 0x573   : > { %v1470_v43 = vmul.f32 %v6138_v41, %v6122_v62  ;;  %v1471_v48 = vmul.f32 %v6138_v41, %v6124_v18  ;;  %v1462_v49 = vmul.f32 %v6138_v41, %v6106_v40  ;;  %v1463_v51 = vmul.f32 %v6138_v41, %v6108_v20 }
 0x574   : > { %v1464_v52 = vmul.f32 %v6138_v41, %v6110_v47  ;;  %v1465_v57 = vmul.f32 %v6138_v41, %v6112_v50  ;;  %v1474_v58 = vmul.f32 %v6138_v41, %v6130_v53  ;;  %v1475_v61 = vmul.f32 %v6138_v41, %v6132_v5  ;;  %v6007_v53 = vld [vmem:[#allocation13 + $0x30] sm:$0xff]   ;;  %v6009_v5 = vld [vmem:[#allocation11 + $0x80] ss:$8 sps:$4 sm:$0xff]  }
 0x575   : > { %1494 = vadd.xlane.f32.xlu0 %v1470_v43  ;;  %v1514_v63 = vpack.c.bf16 %v1471_v48, %v1470_v43  ;;  %1478 = vadd.xlane.f32.xlu1 %v1462_v49  ;;  %v1510_v3 = vpack.c.bf16 %v1463_v51, %v1462_v49  ;;  %v1466_v4 = vmul.f32 %v6138_v41, %v6114_v56  ;;  %v6001_v56 = vld [vmem:[#allocation13] sm:$0xff]  }
 0x576   : > { %v1511_v9 = vpack.c.bf16 %v1465_v57, %v1464_v52  ;;  %v1516_v11 = vpack.c.bf16 %v1475_v61, %v1474_v58  ;;  %v1467_v14 = vmul.f32 %v6138_v41, %v6116_v59  ;;  %v1476_v16 = vmul.f32 %v6138_v41, %v6134_v12  ;;  %v6002_v59 = vld [vmem:[#allocation13 + $0x8] sm:$0xff]   ;;  %5527 = vmatprep.subr.bf16.mxu1 %v6001_v56  ;;  %v6014_v12 = vld [vmem:[#allocation11 + $0x94] ss:$8 sps:$4 sm:$0xff]  }
 0x577   : > { %5511 = vmatprep.mubr.bf16.mxu0 %v1510_v3  ;;  %v1477_v19 = vmul.f32 %v6138_v41, %v6136_v42  ;;  %v1468_v30 = vmul.f32 %v6138_v41, %v6118_v1  ;;  %v1469_v62 = vmul.f32 %v6138_v41, %v6120_v8  ;;  %v1472_v18 = vmul.f32 %v6138_v41, %v6126_v25  ;;  %v6003_v1 = vld [vmem:[#allocation13 + $0x10] sm:$0xff]   ;;  %v6004_v8 = vld [vmem:[#allocation13 + $0x18] sm:$0xff]   ;;  %v6005_v25 = vld [vmem:[#allocation13 + $0x20] sm:$0xff]  }
 0x578   : > { %5512 = vmatmul.mubr.bf16.vlgmr.msra.gmra.mrb[48].mxu0 %v1511_v9  ;;  %v1512_v40 = vpack.c.bf16 %v1467_v14, %v1466_v4  ;;  %v1473_v20 = vmul.f32 %v6138_v41, %v6128_v34  ;;  %5528 = vmatpush3.bf16.msra.mxu1 %v6001_v56  ;;  %v6006_v34 = vld [vmem:[#allocation13 + $0x28] sm:$0xff]  }
 0x579   : > { %1504 = vadd.xlane.f32.xlu0 %v1475_v61  ;;  %1480 = vadd.xlane.f32.xlu1 %v1463_v51  ;;  %v1517_v47 = vpack.c.bf16 %v1477_v19, %v1476_v16  ;;  %v1513_v50 = vpack.c.bf16 %v1469_v62, %v1468_v30  ;;  %v6017_v42 = vld [vmem:[#allocation11 + $0xa4] ss:$8 sps:$4 sm:$0xff]  }
 0x57a   : > { %5515 = vmatprep.mubr.bf16.mxu0 %v1512_v40  ;;  %v1515_v37 = vpack.c.bf16 %v1473_v20, %v1472_v18  ;;  %5529 = vmatprep.subr.bf16.mxu1 %v6002_v59 }
 0x57b   : > { %2108 = vmatpush1.bf16.msra.mxu0 %v6009_v5 }
 0x57c   : > { %5530 = vmatpush3.bf16.msra.mxu1 %v6002_v59  ;;  %2109 = vmatprep.subr.bf16.mxu0 %v6014_v12 }
 0x57d   : > { %1508 = vadd.xlane.f32.xlu0 %v1477_v19  ;;  %1482 = vadd.xlane.f32.xlu1 %v1464_v52 }
 0x57e   : > { %5531 = vmatprep.subr.bf16.mxu1 %v6003_v1 }
 0x57f   : > { %2110 = vmatpush1.bf16.msra.mxu0 %v6012_v31 }
 0x580   : > { %5516 = vmatmul.mubr.bf16.gmra.mrb[52].mxu0 %v1513_v50  ;;  %5532 = vmatpush3.bf16.msra.mxu1 %v6003_v1 }
 0x581   : > { %1484 = vadd.xlane.f32.xlu1 %v1465_v57  ;;  %5519 = vmatprep.mubr.bf16.mxu0 %v1514_v63 }
 0x582   : > { %5533 = vmatprep.subr.bf16.mxu1 %v6004_v8  ;;  %2111 = vmatprep.subr.bf16.mxu0 %v6017_v42 }
 0x583   : > { %2112 = vmatpush1.bf16.msra.mxu0 %v6015_v29 }
 0x584   : > { %5534 = vmatpush3.bf16.msra.mxu1 %v6004_v8  ;;  %2113 = vmatprep.subr.bf16.mxu0 %v6020_v26 }
 0x585   : > { %1486 = vadd.xlane.f32.xlu1 %v1466_v4  ;;  %5535 = vmatprep.subr.bf16.mxu1 %v6005_v25 }
 0x587   : > { %2114 = vmatpush1.bf16.msra.mxu0 %v6018_v13 }
 0x588   : > { %5520 = vmatmul.mubr.bf16.gmra.mrb[56].mxu0 %v1515_v37  ;;  %5536 = vmatpush3.bf16.msra.mxu1 %v6005_v25 }
 0x589   : > { %1488 = vadd.xlane.f32.xlu1 %v1467_v14  ;;  %5523 = vmatprep.mubr.bf16.mxu0 %v1516_v11 }
 0x58a   : > { %5537 = vmatprep.subr.bf16.mxu1 %v6006_v34  ;;  %2115 = vmatprep.subr.bf16.mxu0 %v6023_v45 }
 0x58b   : > { %2116 = vmatpush1.bf16.msra.mxu0 %v6021_v33 }
 0x58c   : > { %5538 = vmatpush3.bf16.msra.mxu1 %v6006_v34 }
 0x58d   : > { %1490 = vadd.xlane.f32.xlu1 %v1468_v30  ;;  %5539 = vmatprep.subr.bf16.mxu1 %v6007_v53 }
 0x590   : > { %5524 = vmatmul.mubr.bf16.gmra.mrb[60].mxu0 %v1517_v47  ;;  %5540 = vmatpush3.bf16.msra.mxu1 %v6007_v53 }
 0x591   : > { %1492 = vadd.xlane.f32.xlu1 %v1469_v62  ;;  %2139 = vmatprep.mubr.bf16.mxu0 %v8239_v60 }
 0x592   : > { %5541 = vmatprep.subr.bf16.mxu1 %v6008_v10 }
 0x594   : > { %5542 = vmatpush3.bf16.msra.mxu1 %v6008_v10 }
 0x595   : > { %1496 = vadd.xlane.f32.xlu1 %v1471_v48 }
 0x599   : > { %1498 = vadd.xlane.f32.xlu1 %v1472_v18 }
 0x59d   : > { %1500 = vadd.xlane.f32.xlu1 %v1473_v20 }
 0x5a1   : > { %1502 = vadd.xlane.f32.xlu1 %v1474_v58 }
 0x5a5   : > { %1506 = vadd.xlane.f32.xlu1 %v1476_v16 }
 0x602   : > { %v1479_v36 = vpop.xlane.xlu1 %1478  ;;  %v1495_v19 = vpop.xlane.xlu0 %1494 }
 0x603   : > { %v1623_v61 = vadd.f32 1e-09, %v1479_v36  ;;  %v1631_v25 = vadd.f32 1e-09, %v1495_v19 }
 0x606   : > { %v1481_v39 = vpop.xlane.xlu1 %1480  ;;  %v1505_v34 = vpop.xlane.xlu0 %1504 }
 0x607   : > { %v1624_v3 = vadd.f32 1e-09, %v1481_v39 }
 0x60a   : > { %v1483_v41 = vpop.xlane.xlu1 %1482 }
 0x60b   : > { %v1625_v58 = vadd.f32 1e-09, %v1483_v41 }
 0x60d   : > { %6139 = vrcp.f32 %v1625_v58 }
 0x60e   : > { %v1485_v43 = vpop.xlane.xlu1 %1484  ;;  %6141 = vrcp.f32 %v1623_v61 }
 0x60f   : > { %v1626_v63 = vadd.f32 1e-09, %v1485_v43  ;;  %v1509_v43 = vpop.xlane.xlu0 %1508 }
 0x611   : > { %6143 = vrcp.f32 %v1626_v63 }
 0x612   : > { %v1487_v48 = vpop.xlane.xlu1 %1486  ;;  %6145 = vrcp.f32 %v1624_v3 }
 0x613   : > { %v1627_v11 = vadd.f32 1e-09, %v1487_v48 }
 0x616   : > { %v1489_v49 = vpop.xlane.xlu1 %1488 }
 0x617   : > { %v1628_v30 = vadd.f32 1e-09, %v1489_v49  ;;  %v6140_v62 = vpop.eup %6139 }
 0x618   : > { %v6142_v40 = vpop.eup %6141 }
 0x61a   : > { %v1491_v51 = vpop.xlane.xlu1 %1490 }
 0x61b   : > { %v1629_v9 = vadd.f32 1e-09, %v1491_v51  ;;  %v6144_v37 = vpop.eup %6143 }
 0x61c   : > { %v6146_v8 = vpop.eup %6145 }
 0x61d   : > { %6147 = vrcp.f32 %v1629_v9  ;;  %v1638_v9 = vadd.f32 1e-09, %v1509_v43 }
 0x61e   : > { %v1493_v52 = vpop.xlane.xlu1 %1492  ;;  %6149 = vrcp.f32 %v1627_v11 }
 0x61f   : > { %v1630_v16 = vadd.f32 1e-09, %v1493_v52 }
 0x621   : > { %6151 = vrcp.f32 %v1630_v16 }
 0x622   : > { %v1497_v57 = vpop.xlane.xlu1 %1496  ;;  %6153 = vrcp.f32 %v1628_v30 }
 0x623   : > { %v1632_v12 = vadd.f32 1e-09, %v1497_v57 }
 0x626   : > { %v1499_v4 = vpop.xlane.xlu1 %1498 }
 0x627   : > { %v1633_v56 = vadd.f32 1e-09, %v1499_v4  ;;  %v6148_v33 = vpop.eup %6147 }
 0x628   : > { %v6150_v41 = vpop.eup %6149 }
 0x629   : > { %6155 = vrcp.f32 %v1633_v56 }
 0x62a   : > { %v1501_v14 = vpop.xlane.xlu1 %1500  ;;  %6157 = vrcp.f32 %v1631_v25 }
 0x62b   : > { %v1634_v5 = vadd.f32 1e-09, %v1501_v14  ;;  %v6152_v51 = vpop.eup %6151  ;;  %v1636_v14 = vadd.f32 1e-09, %v1505_v34 }
 0x62c   : > { %v6154_v61 = vpop.eup %6153 }
 0x62d   : > { %6159 = vrcp.f32 %v1634_v5 }
 0x62e   : > { %v1503_v20 = vpop.xlane.xlu1 %1502  ;;  %6161 = vrcp.f32 %v1632_v12 }
 0x62f   : > { %v1635_v63 = vadd.f32 1e-09, %v1503_v20 }
 0x632   : > { %v1507_v13 = vpop.xlane.xlu1 %1506 }
 0x633   : > { %v1637_v52 = vadd.f32 1e-09, %v1507_v13 }
 0x635   : > { %6163 = vrcp.f32 %v1637_v52 }
 0x636   : > { %6165 = vrcp.f32 %v1635_v63 }
 0x637   : > { %6167 = vrcp.f32 %v1638_v9  ;;  %v6024_v9 = vld [vmem:[#allocation11 + $0xd0] ss:$8 sps:$4 sm:$0xff]  }
 0x638   : > { %6169 = vrcp.f32 %v1636_v14  ;;  %v6029_v14 = vld [vmem:[#allocation11 + $0xe4] ss:$8 sps:$4 sm:$0xff]  }
 0x64b   : > { %v5513_v18 = vpop.f32.mrb[48].mxu0 }
 0x64c   : > { %v1657_v47 = vmul.f32 %v6140_v62, %v5513_v18  ;;  %v1560_v50 = vpop.f32.mrb[49].mxu0 }
 0x64d   : > { %v1655_v59 = vmul.f32 %v6142_v40, %v1560_v50  ;;  %v5514_v1 = vpop.f32.mrb[50].mxu0  ;;  %v6156_v40 = vpop.eup %6155 }
 0x64e   : > { %v1658_v53 = vmul.f32 %v6144_v37, %v5514_v1  ;;  %v1563_v10 = vpop.f32.mrb[51].mxu0  ;;  %v1673_v31 = vsub.f32 %v7107_v35, %v1657_v47  ;;  %v6158_v50 = vpop.eup %6157 }
 0x64f   : > { %v1656_v38 = vmul.f32 %v6146_v8, %v1563_v10  ;;  %v1671_v29 = vsub.f32 %v7094_v23, %v1655_v59  ;;  %v6160_v59 = vpop.eup %6159 }
 0x650   : > { %v1674_v42 = vsub.f32 %v7103_v32, %v1658_v53  ;;  %v6162_v25 = vpop.eup %6161 }
 0x651   : > { %v1672_v26 = vsub.f32 %v7096_v24, %v1656_v38 }
 0x652   : > { %v1704_v45 = vpack.c.bf16 %v1674_v42, %v1673_v31 }
 0x653   : > { %v5517_v36 = vpop.f32.mrb[52].mxu0  ;;  %v1703_v39 = vpack.c.bf16 %v1672_v26, %v1671_v29  ;;  %v6164_v29 = vpop.eup %6163 }
 0x654   : > { %v1661_v48 = vmul.f32 %v6148_v33, %v5517_v36  ;;  %v1576_v49 = vpop.f32.mrb[53].mxu0 }
 0x655   : > { %v1659_v57 = vmul.f32 %v6150_v41, %v1576_v49  ;;  %v5518_v58 = vpop.f32.mrb[54].mxu0  ;;  %5543 = vmatprep.mubr.bf16.mxu1 %v1703_v39 }
 0x656   : > { %v1662_v3 = vmul.f32 %v6152_v51, %v5518_v58  ;;  %v1579_v4 = vpop.f32.mrb[55].mxu0  ;;  %5544 = vmatmul.mubr.bf16.vlgmr.msra.gmra.mrb[32].mxu1 %v1704_v45  ;;  %v1677_v16 = vsub.f32 %v7125_v54, %v1661_v48  ;;  %v6166_v45 = vpop.eup %6165 }
 0x657   : > { %v1660_v11 = vmul.f32 %v6154_v61, %v1579_v4  ;;  %v1675_v30 = vsub.f32 %v7115_v44, %v1659_v57  ;;  %v6168_v39 = vpop.eup %6167 }
 0x658   : > { %v1678_v19 = vsub.f32 %v7127_v55, %v1662_v3  ;;  %v6170_v48 = vpop.eup %6169 }
 0x659   : > { %v1676_v62 = vsub.f32 %v7118_v46, %v1660_v11  ;;  %v6026_v11 = vld [vmem:[#allocation11 + $0xd4] ss:$8 sps:$4 sm:$0xff]  }
 0x65a   : > { %v1706_v18 = vpack.c.bf16 %v1678_v19, %v1677_v16  ;;  %2117 = vmatprep.subr.bf16.mxu0 %v6026_v11  ;;  %v6027_v16 = vld [vmem:[#allocation11 + $0xe0] ss:$8 sps:$4 sm:$0xff]   ;;  %v6030_v19 = vld [vmem:[#allocation11 + $0xf0] ss:$8 sps:$4 sm:$0xff]  }
 0x65b   : > { %v5521_v20 = vpop.f32.mrb[56].mxu0  ;;  %v1705_v47 = vpack.c.bf16 %v1676_v62, %v1675_v30  ;;  %2118 = vmatpush1.bf16.msra.mxu0 %v6024_v9  ;;  %v6032_v30 = vld [vmem:[#allocation11 + $0xf4] ss:$8 sps:$4 sm:$0xff]  }
 0x65c   : > { %v1665_v37 = vmul.f32 %v6156_v40, %v5521_v20  ;;  %v1592_v56 = vpop.f32.mrb[57].mxu0  ;;  %2119 = vmatprep.subr.bf16.mxu0 %v6029_v14  ;;  %v7279_v62 = vld [vmem:[%s8308_s20] ss:$0 sm:$0xff] }
 0x65d   : > { %v1663_v1 = vmul.f32 %v6158_v50, %v1592_v56  ;;  %v5522_v8 = vpop.f32.mrb[58].mxu0  ;;  %5547 = vmatprep.mubr.bf16.mxu1 %v1705_v47  ;;  %v7284_v40 = vld [vmem:[%s8309_s5] ss:$0 sm:$0xff] }
 0x65e   : > { %v1666_v34 = vmul.f32 %v6160_v59, %v5522_v8  ;;  %v1595_v53 = vpop.f32.mrb[59].mxu0  ;;  %5548 = vmatmul.mubr.bf16.gmra.mrb[36].mxu1 %v1706_v18  ;;  %v1681_v5 = vsub.f32 %v7147_v6, %v1665_v37  ;;  %v7291_v56 = vld [vmem:[%s8310_s11] ss:$0 sm:$0xff] }
 0x65f   : > { %v1664_v10 = vmul.f32 %v6162_v25, %v1595_v53  ;;  %v1679_v12 = vsub.f32 %v7137_v0, %v1663_v1  ;;  %2120 = vmatpush1.bf16.msra.mxu0 %v6027_v16 }
 0x660   : > { %v1682_v38 = vsub.f32 %v7149_v7, %v1666_v34  ;;  %2121 = vmatprep.subr.bf16.mxu0 %v6032_v30 }
 0x661   : > { %v1680_v31 = vsub.f32 %v7140_v2, %v1664_v10 }
 0x662   : > { %v1708_v42 = vpack.c.bf16 %v1682_v38, %v1681_v5 }
 0x663   : > { %v5525_v26 = vpop.f32.mrb[60].mxu0  ;;  %v1707_v13 = vpack.c.bf16 %v1680_v31, %v1679_v12  ;;  %2122 = vmatpush1.bf16.msra.mxu0 %v6030_v19 }
 0x664   : > { %v1669_v33 = vmul.f32 %v6164_v29, %v5525_v26  ;;  %v1608_v36 = vpop.f32.mrb[61].mxu0 }
 0x665   : > { %v1667_v41 = vmul.f32 %v6166_v45, %v1608_v36  ;;  %v5526_v43 = vpop.f32.mrb[62].mxu0  ;;  %5551 = vmatprep.mubr.bf16.mxu1 %v1707_v13 }
 0x666   : > { %v1670_v49 = vmul.f32 %v6168_v39, %v5526_v43  ;;  %v1611_v51 = vpop.f32.mrb[63].mxu0  ;;  %5552 = vmatmul.mubr.bf16.gmra.mrb[40].mxu1 %v1708_v42  ;;  %v1685_v57 = vsub.f32 %v7169_v21, %v1669_v33 }
 0x667   : > { %v1668_v52 = vmul.f32 %v6170_v48, %v1611_v51  ;;  %v1683_v61 = vsub.f32 %v7159_v15, %v1667_v41 }
 0x668   : > { %v1686_v58 = vsub.f32 %v7171_v22, %v1670_v49 }
 0x669   : > { %v1684_v63 = vsub.f32 %v7162_v17, %v1668_v52 }
 0x66a   : > { %v1710_v3 = vpack.c.bf16 %v1686_v58, %v1685_v57 }
 0x66b   : > { %v1709_v4 = vpack.c.bf16 %v1684_v63, %v1683_v61 }
 0x66d   : > { %5555 = vmatprep.mubr.bf16.mxu1 %v1709_v4 }
 0x66e   : > { %5556 = vmatmul.mubr.bf16.gmra.mrb[44].mxu1 %v1710_v3 }
 0x729   : > { %v5545_v18 = vpop.f32.mrb[32].mxu1 }
 0x72a   : > { %v1800_v20 = vpop.f32.mrb[33].mxu1  ;;  %v1809_v37 = vadd.f32 %v5545_v18, %v7279_v62 }
 0x72b   : > { %v1801_v47 = vadd.f32 %v7279_v62, %v1800_v20  ;;  %v5546_v50 = vpop.f32.mrb[34].mxu1 }
 0x72c   : > { %v1812_v59 = vadd.f32 %v5546_v50, %v7279_v62  ;;  %v1803_v1 = vpop.f32.mrb[35].mxu1  ;;  %v1872_v5 = vmul.f32 %v7284_v40, %v1809_v37 }
 0x72d   : > { %v1870_v8 = vmul.f32 %v7284_v40, %v1801_v47  ;;  %v1804_v25 = vadd.f32 %v7279_v62, %v1803_v1 }
 0x72e   : > { %v1873_v53 = vmul.f32 %v7284_v40, %v1812_v59  ;;  %v1895_v45 = vadd.f32 %v7291_v56, %v1872_v5 }
 0x72f   : > { %v1893_v34 = vadd.f32 %v7291_v56, %v1870_v8  ;;  %v1871_v10 = vmul.f32 %v7284_v40, %v1804_v25 }
 0x730   : > { %v1896_v29 = vadd.f32 %v7291_v56, %v1873_v53  ;;  %v1911_v52 = vmax.f32 %v1895_v45, 0.0 }
 0x731   : > { %v1909_v38 = vmax.f32 %v1893_v34, 0.0  ;;  %v1894_v12 = vadd.f32 %v7291_v56, %v1871_v10  ;;  %v5549_v31 = vpop.f32.mrb[36].mxu1 }
 0x732   : > { %v1816_v42 = vpop.f32.mrb[37].mxu1  ;;  %v1912_v48 = vmax.f32 %v1896_v29, 0.0  ;;  %v7322_v9 = vadd.f32 %v1911_v52, %v7107_v35  ;;  %v1825_v11 = vadd.f32 %v5549_v31, %v7279_v62 }
 0x733   : > { %v1910_v26 = vmax.f32 %v1894_v12, 0.0  ;;  %v5550_v13 = vpop.f32.mrb[38].mxu1  ;;  %v7304_v36 = vadd.f32 %v1909_v38, %v7094_v23  ;;  %v1817_v41 = vadd.f32 %v7279_v62, %v1816_v42 }
 0x734   : > { %v1819_v33 = vpop.f32.mrb[39].mxu1  ;;  %v1828_v61 = vadd.f32 %v5550_v13, %v7279_v62  ;;  %v1876_v30 = vmul.f32 %v7284_v40, %v1825_v11 }
 0x735   : > { %v7307_v39 = vadd.f32 %v1910_v26, %v7096_v24  ;;  %v1820_v43 = vadd.f32 %v7279_v62, %v1819_v33  ;;  %v1874_v57 = vmul.f32 %v7284_v40, %v1817_v41  ;;  %v7317_v24 = vadd.f32 %v1912_v48, %v7103_v32 }
 0x736   : > { %v1877_v16 = vmul.f32 %v7284_v40, %v1828_v61  ;;  %v1899_v8 = vadd.f32 %v7291_v56, %v1876_v30 }
 0x737   : > { %v1875_v49 = vmul.f32 %v7284_v40, %v1820_v43  ;;  %v2006_v51 = vpack.c.bf16 %v7307_v39, %v7304_v36  ;;  %v1897_v14 = vadd.f32 %v7291_v56, %v1874_v57  ;;  %v2007_v32 = vpack.c.bf16 %v7317_v24, %v7322_v9 }
 0x738   : > { %v1900_v35 = vadd.f32 %v7291_v56, %v1877_v16  ;;  %v1915_v38 = vmax.f32 %v1899_v8, 0.0 }
 0x739   : > { %v5553_v58 = vpop.f32.mrb[40].mxu1  ;;  %2140 = vmatmul.mubr.bf16.vlgmr.msra.gmra.mrb[64].mxu0 %v2006_v51  ;;  %v1898_v63 = vadd.f32 %v7291_v56, %v1875_v49  ;;  %v1913_v18 = vmax.f32 %v1897_v14, 0.0 }
 0x73a   : > { %v1832_v23 = vpop.f32.mrb[41].mxu1  ;;  %2149 = vmatprep.mubr.bf16.mxu0 %v8239_v60  ;;  %v1916_v53 = vmax.f32 %v1900_v35, 0.0  ;;  %v7352_v42 = vadd.f32 %v1915_v38, %v7125_v54  ;;  %v1841_v29 = vadd.f32 %v5553_v58, %v7279_v62 }
 0x73b   : > { %v5554_v3 = vpop.f32.mrb[42].mxu1  ;;  %v1914_v19 = vmax.f32 %v1898_v63, 0.0  ;;  %v7338_v25 = vadd.f32 %v1913_v18, %v7115_v44  ;;  %v1833_v34 = vadd.f32 %v7279_v62, %v1832_v23 }
 0x73c   : > { %v1835_v4 = vpop.f32.mrb[43].mxu1  ;;  %v7347_v12 = vadd.f32 %v1916_v53, %v7127_v55  ;;  %v1844_v44 = vadd.f32 %v5554_v3, %v7279_v62  ;;  %v1880_v55 = vmul.f32 %v7284_v40, %v1841_v29 }
 0x73d   : > { %v7333_v50 = vadd.f32 %v1914_v19, %v7118_v46  ;;  %v1836_v37 = vadd.f32 %v7279_v62, %v1835_v4  ;;  %v1878_v46 = vmul.f32 %v7284_v40, %v1833_v34 }
 0x73e   : > { %8311 = vst [vmem:[#allocation20_spill] sm:$0xff] %v7347_v12  ;;  %v1881_v13 = vmul.f32 %v7284_v40, %v1844_v44  ;;  %v2009_v33 = vpack.c.bf16 %v7347_v12, %v7352_v42  ;;  %v1903_v49 = vadd.f32 %v7291_v56, %v1880_v55 }
 0x73f   : > { %v1879_v10 = vmul.f32 %v7284_v40, %v1836_v37  ;;  %v2008_v5 = vpack.c.bf16 %v7333_v50, %v7338_v25  ;;  %v1901_v26 = vadd.f32 %v7291_v56, %v1878_v46 }
 0x740   : > { %v1904_v43 = vadd.f32 %v7291_v56, %v1881_v13  ;;  %v1919_v61 = vmax.f32 %v1903_v49, 0.0 }
 0x741   : > { %v5557_v20 = vpop.f32.mrb[44].mxu1  ;;  %2150 = vmatmul.mubr.bf16.gmra.mrb[68].mxu0 %v2007_v32  ;;  %v1902_v31 = vadd.f32 %v7291_v56, %v1879_v10  ;;  %v1917_v41 = vmax.f32 %v1901_v26, 0.0 }
 0x742   : > { %v1848_v47 = vpop.f32.mrb[45].mxu1  ;;  %2159 = vmatprep.mubr.bf16.mxu0 %v8239_v60  ;;  %v1920_v57 = vmax.f32 %v1904_v43, 0.0  ;;  %v7382_v4 = vadd.f32 %v1919_v61, %v7147_v6  ;;  %v1857_v11 = vadd.f32 %v5557_v20, %v7279_v62 }
 0x743   : > { %v5558_v59 = vpop.f32.mrb[46].mxu1  ;;  %v1918_v45 = vmax.f32 %v1902_v31, 0.0  ;;  %v7368_v51 = vadd.f32 %v1917_v41, %v7137_v0  ;;  %v1849_v52 = vadd.f32 %v7279_v62, %v1848_v47 }
 0x744   : > { %v1851_v1 = vpop.f32.mrb[47].mxu1  ;;  %v1860_v0 = vadd.f32 %v5558_v59, %v7279_v62  ;;  %8315 = vst [vmem:[#allocation24_spill] sm:$0xff] %v7382_v4 }
 0x745   : > { %v7363_v54 = vadd.f32 %v1918_v45, %v7140_v2  ;;  %v1852_v48 = vadd.f32 %v7279_v62, %v1851_v1  ;;  %8313 = vst [vmem:[#allocation22_spill] sm:$0xff] %v7368_v51  ;;  %v1882_v63 = vmul.f32 %v7284_v40, %v1849_v52  ;;  %v7377_v2 = vadd.f32 %v1920_v57, %v7149_v7 }
 0x746   : > { %v1885_v16 = vmul.f32 %v7284_v40, %v1860_v0  ;;  %v1884_v7 = vmul.f32 %v7284_v40, %v1857_v11 }
 0x747   : > { %8312 = vst [vmem:[#allocation21_spill] sm:$0xff] %v7363_v54  ;;  %v1883_v58 = vmul.f32 %v7284_v40, %v1852_v48  ;;  %v2010_v23 = vpack.c.bf16 %v7363_v54, %v7368_v51  ;;  %8314 = vst [vmem:[#allocation23_spill] sm:$0xff] %v7377_v2  ;;  %v1905_v14 = vadd.f32 %v7291_v56, %v1882_v63 }
 0x748   : > { %v2011_v32 = vpack.c.bf16 %v7377_v2, %v7382_v4  ;;  %v1908_v18 = vadd.f32 %v7291_v56, %v1885_v16  ;;  %v1907_v62 = vadd.f32 %v7291_v56, %v1884_v7 }
 0x749   : > { %2160 = vmatmul.mubr.bf16.gmra.mrb[72].mxu0 %v2008_v5  ;;  %v1906_v3 = vadd.f32 %v7291_v56, %v1883_v58  ;;  %v1921_v30 = vmax.f32 %v1905_v14, 0.0 }
 0x74a   : > { %2169 = vmatprep.mubr.bf16.mxu0 %v8239_v60  ;;  %v1924_v47 = vmax.f32 %v1908_v18, 0.0  ;;  %v1923_v37 = vmax.f32 %v1907_v62, 0.0 }
 0x74b   : > { %v1922_v19 = vmax.f32 %v1906_v3, 0.0  ;;  %v7397_v20 = vadd.f32 %v1921_v30, %v7159_v15  ;;  %v5075_v15 = vld [vmem:[%s8307_s10 + $0x2] sm:$0x3] }
 0x74c   : > { %v7403_v40 = vadd.f32 %v1924_v47, %v7171_v22  ;;  %v7406_v59 = vadd.f32 %v1923_v37, %v7169_v21  ;;  %v7414_v56 = vrot.slane %v5075_v15, %v7175_v27  ;;  %v7417_v8 = vrot.slane %v5075_v15, %v7180_v28 }
 0x74d   : > { %v7393_v6 = vadd.f32 %v1922_v19, %v7162_v17  ;;  %8317 = vst [vmem:[#allocation26_spill] sm:$0xff] %v7397_v20 }
 0x74e   : > { %8318 = vst [vmem:[#allocation27_spill] sm:$0xff] %v7403_v40  ;;  %8319 = vst [vmem:[#allocation28_spill] sm:$0xff] %v7406_v59  ;;  %v2013_v17 = vpack.c.bf16 %v7403_v40, %v7406_v59 }
 0x74f   : > { %8316 = vst [vmem:[#allocation25_spill] sm:$0xff] %v7393_v6  ;;  %v2012_v35 = vpack.c.bf16 %v7393_v6, %v7397_v20 }
 0x751   : > { %2170 = vmatmul.mubr.bf16.gmra.mrb[76].mxu0 %v2009_v33 }
 0x752   : > { %2179 = vmatprep.mubr.bf16.mxu0 %v8239_v60 }
 0x759   : > { %2180 = vmatmul.mubr.bf16.gmra.mrb[80].mxu0 %v2010_v23 }
 0x75a   : > { %2189 = vmatprep.mubr.bf16.mxu0 %v8239_v60 }
 0x761   : > { %2190 = vmatmul.mubr.bf16.gmra.mrb[84].mxu0 %v2011_v32 }
 0x762   : > { %2199 = vmatprep.mubr.bf16.mxu0 %v8239_v60 }
 0x769   : > { %2200 = vmatmul.mubr.bf16.gmra.mrb[88].mxu0 %v2012_v35 }
 0x76a   : > { %2209 = vmatprep.mubr.bf16.mxu0 %v8239_v60 }
 0x771   : > { %2210 = vmatmul.mubr.bf16.gmra.mrb[92].mxu0 %v2013_v17 }
 0x80c   : > { %v2141_v1 = vpop.f32.mrb[64].mxu0 }
 0x80d   : > { %v2143_v22 = vpop.f32.mrb[65].mxu0  ;;  %v2142_v21 = vadd.f32 %v2141_v1, %v7414_v56 }
 0x80e   : > { %v2145_v34 = vpop.f32.mrb[66].mxu0  ;;  %v2144_v5 = vadd.f32 %v2143_v22, %v7417_v8 }
 0x80f   : > { %v2146_v53 = vadd.f32 %v2145_v34, %v7414_v56  ;;  %v2147_v10 = vpop.f32.mrb[67].mxu0 }
 0x810   : > { %v2148_v38 = vadd.f32 %v2147_v10, %v7417_v8 }
 0x811   : > { %v2220_v46 = vpack.c.bf16 %v2146_v53, %v2142_v21 }
 0x812   : > { %v2472_v44 = vpack.c.bf16 %v2148_v38, %v2144_v5 }
 0x813   : > { %5559 = vmatprep.subr.bf16.mxu1 %v2220_v46  ;;  %5575 = vmatprep.mubr.bf16.mxu1 %v2220_v46 }
 0x814   : > { %v2151_v31 = vpop.f32.mrb[68].mxu0  ;;  %5560 = vmatpush3.bf16.xpose.msra.mxu1 %v2220_v46  ;;  %5591 = vmatprep.subr.bf16.mxu0 %v2472_v44 }
 0x815   : > { %v2153_v29 = vpop.f32.mrb[69].mxu0  ;;  %5592 = vmatpush3.bf16.msra.mxu0 %v2472_v44  ;;  %v2152_v13 = vadd.f32 %v2151_v31, %v7414_v56 }
 0x816   : > { %v2155_v26 = vpop.f32.mrb[70].mxu0  ;;  %v2154_v55 = vadd.f32 %v2153_v29, %v7417_v8 }
 0x817   : > { %v2156_v45 = vadd.f32 %v2155_v26, %v7414_v56  ;;  %v2157_v33 = vpop.f32.mrb[71].mxu0 }
 0x818   : > { %v2158_v41 = vadd.f32 %v2157_v33, %v7417_v8 }
 0x819   : > { %v7427_v43 = vpack.c.bf16 %v2156_v45, %v2152_v13 }
 0x81a   : > { %v2473_v48 = vpack.c.bf16 %v2158_v41, %v2154_v55 }
 0x81b   : > { %5561 = vmatprep.subr.bf16.mxu1 %v7427_v43 }
 0x81c   : > { %v2161_v49 = vpop.f32.mrb[72].mxu0  ;;  %5562 = vmatpush3.bf16.xpose.msra.mxu1 %v7427_v43  ;;  %5593 = vmatprep.subr.bf16.mxu0 %v2473_v48 }
 0x81d   : > { %v2163_v52 = vpop.f32.mrb[73].mxu0  ;;  %5594 = vmatpush3.bf16.msra.mxu0 %v2473_v48  ;;  %v2162_v58 = vadd.f32 %v2161_v49, %v7414_v56 }
 0x81e   : > { %v2165_v57 = vpop.f32.mrb[74].mxu0  ;;  %v2164_v63 = vadd.f32 %v2163_v52, %v7417_v8 }
 0x81f   : > { %v2166_v23 = vadd.f32 %v2165_v57, %v7414_v56  ;;  %v2167_v61 = vpop.f32.mrb[75].mxu0 }
 0x820   : > { %v2168_v0 = vadd.f32 %v2167_v61, %v7417_v8 }
 0x821   : > { %v7435_v3 = vpack.c.bf16 %v2166_v23, %v2162_v58 }
 0x822   : > { %v2474_v11 = vpack.c.bf16 %v2168_v0, %v2164_v63 }
 0x823   : > { %5563 = vmatprep.subr.bf16.mxu1 %v7435_v3 }
 0x824   : > { %v2171_v14 = vpop.f32.mrb[76].mxu0  ;;  %5564 = vmatpush3.bf16.xpose.msra.mxu1 %v7435_v3  ;;  %5595 = vmatprep.subr.bf16.mxu0 %v2474_v11 }
 0x825   : > { %v2173_v16 = vpop.f32.mrb[77].mxu0  ;;  %5596 = vmatpush3.bf16.msra.mxu0 %v2474_v11  ;;  %v2172_v32 = vadd.f32 %v2171_v14, %v7414_v56 }
 0x826   : > { %v2175_v19 = vpop.f32.mrb[78].mxu0  ;;  %v2174_v18 = vadd.f32 %v2173_v16, %v7417_v8 }
 0x827   : > { %v2176_v7 = vadd.f32 %v2175_v19, %v7414_v56  ;;  %v2177_v30 = vpop.f32.mrb[79].mxu0 }
 0x828   : > { %v2178_v62 = vadd.f32 %v2177_v30, %v7417_v8 }
 0x829   : > { %v7443_v47 = vpack.c.bf16 %v2176_v7, %v2172_v32 }
 0x82a   : > { %v2475_v35 = vpack.c.bf16 %v2178_v62, %v2174_v18 }
 0x82b   : > { %5565 = vmatprep.subr.bf16.mxu1 %v7443_v47 }
 0x82c   : > { %v2181_v37 = vpop.f32.mrb[80].mxu0  ;;  %5566 = vmatpush3.bf16.xpose.msra.mxu1 %v7443_v47  ;;  %5597 = vmatprep.subr.bf16.mxu0 %v2475_v35 }
 0x82d   : > { %v2183_v17 = vpop.f32.mrb[81].mxu0  ;;  %5598 = vmatpush3.bf16.msra.mxu0 %v2475_v35  ;;  %v2182_v1 = vadd.f32 %v2181_v37, %v7414_v56 }
 0x82e   : > { %v2185_v15 = vpop.f32.mrb[82].mxu0  ;;  %v2184_v21 = vadd.f32 %v2183_v17, %v7417_v8 }
 0x82f   : > { %v2186_v22 = vadd.f32 %v2185_v15, %v7414_v56  ;;  %v2187_v34 = vpop.f32.mrb[83].mxu0 }
 0x830   : > { %v2188_v53 = vadd.f32 %v2187_v34, %v7417_v8 }
 0x831   : > { %v2224_v10 = vpack.c.bf16 %v2186_v22, %v2182_v1 }
 0x832   : > { %v2476_v5 = vpack.c.bf16 %v2188_v53, %v2184_v21 }
 0x833   : > { %5567 = vmatprep.subr.bf16.mxu1 %v2224_v10 }
 0x834   : > { %v2191_v38 = vpop.f32.mrb[84].mxu0  ;;  %5568 = vmatpush3.bf16.xpose.msra.mxu1 %v2224_v10  ;;  %5599 = vmatprep.subr.bf16.mxu0 %v2476_v5 }
 0x835   : > { %v2193_v46 = vpop.f32.mrb[85].mxu0  ;;  %5600 = vmatpush3.bf16.msra.mxu0 %v2476_v5  ;;  %v2192_v31 = vadd.f32 %v2191_v38, %v7414_v56 }
 0x836   : > { %v2195_v44 = vpop.f32.mrb[86].mxu0  ;;  %v2194_v13 = vadd.f32 %v2193_v46, %v7417_v8 }
 0x837   : > { %v2196_v29 = vadd.f32 %v2195_v44, %v7414_v56  ;;  %v2197_v26 = vpop.f32.mrb[87].mxu0 }
 0x838   : > { %v2198_v45 = vadd.f32 %v2197_v26, %v7417_v8 }
 0x839   : > { %v2225_v33 = vpack.c.bf16 %v2196_v29, %v2192_v31 }
 0x83a   : > { %v2477_v55 = vpack.c.bf16 %v2198_v45, %v2194_v13 }
 0x83b   : > { %5569 = vmatprep.subr.bf16.mxu1 %v2225_v33 }
 0x83c   : > { %v2201_v41 = vpop.f32.mrb[88].mxu0  ;;  %5570 = vmatpush3.bf16.xpose.msra.mxu1 %v2225_v33  ;;  %5601 = vmatprep.subr.bf16.mxu0 %v2477_v55 }
 0x83d   : > { %v2203_v48 = vpop.f32.mrb[89].mxu0  ;;  %5602 = vmatpush3.bf16.msra.mxu0 %v2477_v55  ;;  %v2202_v52 = vadd.f32 %v2201_v41, %v7414_v56 }
 0x83e   : > { %v2205_v49 = vpop.f32.mrb[90].mxu0  ;;  %v2204_v23 = vadd.f32 %v2203_v48, %v7417_v8 }
 0x83f   : > { %v2206_v57 = vadd.f32 %v2205_v49, %v7414_v56  ;;  %v2207_v58 = vpop.f32.mrb[91].mxu0 }
 0x840   : > { %v2208_v61 = vadd.f32 %v2207_v58, %v7417_v8 }
 0x841   : > { %v2226_v63 = vpack.c.bf16 %v2206_v57, %v2202_v52 }
 0x842   : > { %v2478_v0 = vpack.c.bf16 %v2208_v61, %v2204_v23 }
 0x843   : > { %5571 = vmatprep.subr.bf16.mxu1 %v2226_v63 }
 0x844   : > { %v2211_v11 = vpop.f32.mrb[92].mxu0  ;;  %5572 = vmatpush3.bf16.xpose.msra.mxu1 %v2226_v63  ;;  %5603 = vmatprep.subr.bf16.mxu0 %v2478_v0 }
 0x845   : > { %v2213_v14 = vpop.f32.mrb[93].mxu0  ;;  %5604 = vmatpush3.bf16.msra.mxu0 %v2478_v0  ;;  %v2212_v19 = vadd.f32 %v2211_v11, %v7414_v56 }
 0x846   : > { %v2215_v16 = vpop.f32.mrb[94].mxu0  ;;  %v2214_v30 = vadd.f32 %v2213_v14, %v7417_v8 }
 0x847   : > { %v2216_v32 = vadd.f32 %v2215_v16, %v7414_v56  ;;  %v2217_v7 = vpop.f32.mrb[95].mxu0 }
 0x848   : > { %v2218_v18 = vadd.f32 %v2217_v7, %v7417_v8 }
 0x849   : > { %v2227_v62 = vpack.c.bf16 %v2216_v32, %v2212_v19 }
 0x84a   : > { %v2479_v35 = vpack.c.bf16 %v2218_v18, %v2214_v30 }
 0x84b   : > { %5573 = vmatprep.subr.bf16.mxu1 %v2227_v62 }
 0x84c   : > { %5574 = vmatpush3.bf16.xpose.msra.mxu1 %v2227_v62  ;;  %5605 = vmatprep.subr.bf16.mxu0 %v2479_v35 }
 0x84d   : > { %5606 = vmatpush3.bf16.msra.mxu0 %v2479_v35 }
 0x853   : > { %5576 = vmatmul.mubr.bf16.vlgmr.msra.gmra.mrb[48].mxu1 %v7427_v43 }
 0x854   : > { %5579 = vmatprep.mubr.bf16.mxu1 %v7435_v3 }
 0x85b   : > { %5580 = vmatmul.mubr.bf16.gmra.mrb[52].mxu1 %v7443_v47 }
 0x85c   : > { %5583 = vmatprep.mubr.bf16.mxu1 %v2224_v10 }
 0x863   : > { %5584 = vmatmul.mubr.bf16.gmra.mrb[56].mxu1 %v2225_v33 }
 0x864   : > { %5587 = vmatprep.mubr.bf16.mxu1 %v2226_v63 }
 0x86b   : > { %5588 = vmatmul.mubr.bf16.gmra.mrb[60].mxu1 %v2227_v62 }
 0x926   : > { %v5577_v56 = vpop.f32.mrb[48].mxu1 }
 0x927   : > { %v2262_v37 = vpop.f32.mrb[49].mxu1 }
 0x928   : > { %v5578_v17 = vpop.f32.mrb[50].mxu1 }
 0x929   : > { %v2265_v8 = vpop.f32.mrb[51].mxu1 }
 0x92e   : > { %v5581_v15 = vpop.f32.mrb[52].mxu1 }
 0x92f   : > { %v2327_v1 = vmax.f32 %v5577_v56, %v5581_v15  ;;  %v2278_v22 = vpop.f32.mrb[53].mxu1 }
 0x930   : > { %v2325_v34 = vmax.f32 %v2262_v37, %v2278_v22  ;;  %v5582_v21 = vpop.f32.mrb[54].mxu1 }
 0x931   : > { %v2328_v53 = vmax.f32 %v5578_v17, %v5582_v21  ;;  %v2281_v5 = vpop.f32.mrb[55].mxu1 }
 0x932   : > { %v2326_v43 = vmax.f32 %v2265_v8, %v2281_v5 }
 0x936   : > { %v7466_v38 = vpop.f32.mrb[56].mxu1 }
 0x937   : > { %v2331_v3 = vmax.f32 %v2327_v1, %v7466_v38  ;;  %v2294_v47 = vpop.f32.mrb[57].mxu1 }
 0x938   : > { %v2329_v10 = vmax.f32 %v2325_v34, %v2294_v47  ;;  %v7469_v46 = vpop.f32.mrb[58].mxu1 }
 0x939   : > { %v2332_v44 = vmax.f32 %v2328_v53, %v7469_v46  ;;  %v2297_v31 = vpop.f32.mrb[59].mxu1 }
 0x93a   : > { %v2330_v29 = vmax.f32 %v2326_v43, %v2297_v31 }
 0x93e   : > { %v7472_v26 = vpop.f32.mrb[60].mxu1 }
 0x93f   : > { %v2335_v13 = vmax.f32 %v2331_v3, %v7472_v26  ;;  %v7475_v45 = vpop.f32.mrb[61].mxu1 }
 0x940   : > { %v2333_v33 = vmax.f32 %v2329_v10, %v7475_v45  ;;  %v7478_v55 = vpop.f32.mrb[62].mxu1 }
 0x941   : > { %v2336_v41 = vmax.f32 %v2332_v44, %v7478_v55  ;;  %v7481_v48 = vpop.f32.mrb[63].mxu1 }
 0x942   : > { %v2334_v49 = vmax.f32 %v2330_v29, %v7481_v48 }
 0x943   : > { %v2338_v52 = vmax.f32 %v2335_v13, %v2336_v41 }
 0x944   : > { %v2337_v57 = vmax.f32 %v2333_v33, %v2334_v49 }
 0x946   : > { %v2339_v58 = vmax.f32 %v2337_v57, %v2338_v52 }
 0x948   : > { %v2340_v23 = vrot.slane %v2339_v58, 4 }
 0x94a   : > { %v2341_v61 = vmax.f32 %v2339_v58, %v2340_v23 }
 0x94c   : > { %v2342_v63 = vrot.slane %v2341_v61, 2 }
 0x94e   : > { %v2343_v0 = vmax.f32 %v2341_v61, %v2342_v63 }
 0x950   : > { %v2344_v11 = vrot.slane %v2343_v0, 1 }
 0x952   : > { %v2345_v14 = vmax.f32 %v2343_v0, %v2344_v11 }
 0x954   : > { %v2359_v16 = vsub.f32 %v7481_v48, %v2345_v14  ;;  %v2346_v19 = vsub.f32 %v2262_v37, %v2345_v14  ;;  %v2347_v32 = vsub.f32 %v2265_v8, %v2345_v14  ;;  %v2348_v7 = vsub.f32 %v5577_v56, %v2345_v14 }
 0x955   : > { %v2349_v30 = vsub.f32 %v5578_v17, %v2345_v14  ;;  %v2350_v18 = vsub.f32 %v2278_v22, %v2345_v14  ;;  %v2351_v62 = vsub.f32 %v2281_v5, %v2345_v14  ;;  %v2352_v35 = vsub.f32 %v5581_v15, %v2345_v14 }
 0x956   : > { %v2353_v1 = vsub.f32 %v5582_v21, %v2345_v14  ;;  %v2354_v34 = vsub.f32 %v2294_v47, %v2345_v14  ;;  %v2355_v53 = vsub.f32 %v2297_v31, %v2345_v14  ;;  %v2356_v43 = vsub.f32 %v7466_v38, %v2345_v14 }
 0x957   : > { %v2357_v3 = vsub.f32 %v7469_v46, %v2345_v14  ;;  %v2358_v10 = vsub.f32 %v7475_v45, %v2345_v14  ;;  %v2360_v44 = vsub.f32 %v7472_v26, %v2345_v14  ;;  %v2361_v29 = vsub.f32 %v7478_v55, %v2345_v14 }
 0x958   : > { %v2362_v37 = vmul.f32 1.442695, %v2346_v19  ;;  %v2364_v8 = vmul.f32 1.442695, %v2347_v32  ;;  %v2366_v56 = vmul.f32 1.442695, %v2348_v7 }
 0x959   : > { %v2368_v17 = vmul.f32 1.442695, %v2349_v30  ;;  %v2370_v15 = vmul.f32 1.442695, %v2350_v18  ;;  %v2372_v22 = vmul.f32 1.442695, %v2351_v62 }
 0x95a   : > { %6171 = vpow2.f32 %v2362_v37  ;;  %v2374_v21 = vmul.f32 1.442695, %v2352_v35  ;;  %v2376_v5 = vmul.f32 1.442695, %v2353_v1  ;;  %v2378_v46 = vmul.f32 1.442695, %v2354_v34 }
 0x95b   : > { %6173 = vpow2.f32 %v2364_v8  ;;  %v2380_v13 = vmul.f32 1.442695, %v2355_v53  ;;  %v2382_v55 = vmul.f32 1.442695, %v2356_v43  ;;  %v2384_v49 = vmul.f32 1.442695, %v2357_v3 }
 0x95c   : > { %6175 = vpow2.f32 %v2366_v56  ;;  %v2386_v58 = vmul.f32 1.442695, %v2358_v10  ;;  %v2388_v63 = vmul.f32 1.442695, %v2359_v16  ;;  %v2390_v14 = vmul.f32 1.442695, %v2360_v44 }
 0x95d   : > { %6177 = vpow2.f32 %v2368_v17  ;;  %v2392_v7 = vmul.f32 1.442695, %v2361_v29 }
 0x95e   : > { %6179 = vpow2.f32 %v2370_v15 }
 0x95f   : > { %6181 = vpow2.f32 %v2372_v22 }
 0x960   : > { %6183 = vpow2.f32 %v2374_v21 }
 0x961   : > { %6185 = vpow2.f32 %v2376_v5 }
 0x962   : > { %6187 = vpow2.f32 %v2378_v46 }
 0x963   : > { %6189 = vpow2.f32 %v2380_v13 }
 0x964   : > { %v6172_v38 = vpop.eup %6171  ;;  %6191 = vpow2.f32 %v2382_v55 }
 0x965   : > { %v6174_v47 = vpop.eup %6173  ;;  %6193 = vpow2.f32 %v2384_v49 }
 0x966   : > { %v2394_v31 = vadd.f32 %v6174_v47, %v6172_v38  ;;  %v6176_v26 = vpop.eup %6175  ;;  %6195 = vpow2.f32 %v2386_v58 }
 0x967   : > { %v6178_v33 = vpop.eup %6177  ;;  %6197 = vpow2.f32 %v2388_v63 }
 0x968   : > { %v2395_v45 = vadd.f32 %v6176_v26, %v2394_v31  ;;  %v6180_v48 = vpop.eup %6179  ;;  %6199 = vpow2.f32 %v2390_v14 }
 0x969   : > { %v6182_v57 = vpop.eup %6181  ;;  %6201 = vpow2.f32 %v2392_v7 }
 0x96a   : > { %v2396_v41 = vadd.f32 %v6178_v33, %v2395_v45  ;;  %v6184_v61 = vpop.eup %6183 }
 0x96b   : > { %v6186_v11 = vpop.eup %6185 }
 0x96c   : > { %v2397_v52 = vadd.f32 %v6180_v48, %v2396_v41  ;;  %v6188_v32 = vpop.eup %6187 }
 0x96d   : > { %v6190_v18 = vpop.eup %6189 }
 0x96e   : > { %v2398_v23 = vadd.f32 %v6182_v57, %v2397_v52  ;;  %v6192_v35 = vpop.eup %6191 }
 0x96f   : > { %v6194_v34 = vpop.eup %6193 }
 0x970   : > { %v2399_v0 = vadd.f32 %v6184_v61, %v2398_v23  ;;  %v6196_v43 = vpop.eup %6195 }
 0x971   : > { %v6198_v3 = vpop.eup %6197 }
 0x972   : > { %v2400_v19 = vadd.f32 %v6186_v11, %v2399_v0  ;;  %v6200_v37 = vpop.eup %6199 }
 0x973   : > { %v6202_v44 = vpop.eup %6201 }
 0x974   : > { %v2401_v30 = vadd.f32 %v6188_v32, %v2400_v19 }
 0x976   : > { %v2402_v62 = vadd.f32 %v6190_v18, %v2401_v30 }
 0x978   : > { %v2403_v1 = vadd.f32 %v6192_v35, %v2402_v62 }
 0x97a   : > { %v2404_v53 = vadd.f32 %v6194_v34, %v2403_v1 }
 0x97c   : > { %v2405_v16 = vadd.f32 %v6196_v43, %v2404_v53  ;;  %v6038_v53 = vld [vmem:[#allocation13 + $0x68] sm:$0xff]  }
 0x97e   : > { %v2406_v10 = vadd.f32 %v6198_v3, %v2405_v16  ;;  %v6040_v16 = vld [vmem:[#allocation13 + $0x78] sm:$0xff]  }
 0x980   : > { %v2407_v8 = vadd.f32 %v6200_v37, %v2406_v10  ;;  %v6043_v10 = vld [vmem:[#allocation11 + $0x104] ss:$8 sps:$4 sm:$0xff]  }
 0x981   : > { %3065 = vmatprep.subr.bf16.mxu0 %v6043_v10 }
 0x982   : > { %v2408_v56 = vadd.f32 %v6202_v44, %v2407_v8  ;;  %v6044_v8 = vld [vmem:[#allocation11 + $0x110] ss:$8 sps:$4 sm:$0xff]  }
 0x984   : > { %v2409_v17 = vrot.slane %v2408_v56, 4 }
 0x986   : > { %v2410_v15 = vadd.f32 %v2409_v17, %v2408_v56  ;;  %v6047_v56 = vld [vmem:[#allocation11 + $0x120] ss:$8 sps:$4 sm:$0xff]   ;;  %v6052_v17 = vld [vmem:[#allocation11 + $0x134] ss:$8 sps:$4 sm:$0xff]  }
 0x988   : > { %v2411_v29 = vrot.slane %v2410_v15, 2 }
 0x98a   : > { %v2412_v22 = vadd.f32 %v2411_v29, %v2410_v15  ;;  %v6050_v15 = vld [vmem:[#allocation11 + $0x130] ss:$8 sps:$4 sm:$0xff]   ;;  %v6055_v29 = vld [vmem:[#allocation11 + $0x144] ss:$8 sps:$4 sm:$0xff]  }
 0x98c   : > { %v2413_v21 = vrot.slane %v2412_v22, 1 }
 0x98e   : > { %v2414_v5 = vadd.f32 %v2413_v21, %v2412_v22  ;;  %v6053_v22 = vld [vmem:[#allocation11 + $0x140] ss:$8 sps:$4 sm:$0xff]  }
 0x990   : > { %6203 = vrcp.f32 %v2414_v5 }
 0x99a   : > { %v6204_v46 = vpop.eup %6203 }
 0x99b   : > { %v2417_v31 = vmul.f32 %v6204_v46, %v6174_v47  ;;  %v2416_v13 = vmul.f32 %v6204_v46, %v6172_v38  ;;  %v2418_v45 = vmul.f32 %v6204_v46, %v6176_v26  ;;  %v2419_v55 = vmul.f32 %v6204_v46, %v6178_v33 }
 0x99c   : > { %v2420_v41 = vmul.f32 %v6204_v46, %v6180_v48  ;;  %v2421_v49 = vmul.f32 %v6204_v46, %v6182_v57  ;;  %v2422_v52 = vmul.f32 %v6204_v46, %v6184_v61  ;;  %v2423_v58 = vmul.f32 %v6204_v46, %v6186_v11  ;;  %v6033_v11 = vld [vmem:[#allocation13 + $0x40] sm:$0xff]  }
 0x99d   : > { %2434 = vadd.xlane.f32.xlu0 %v2417_v31  ;;  %2432 = vadd.xlane.f32.xlu1 %v2416_v13  ;;  %v2464_v23 = vpack.c.bf16 %v2417_v31, %v2416_v13  ;;  %v2465_v63 = vpack.c.bf16 %v2419_v55, %v2418_v45  ;;  %v2424_v0 = vmul.f32 %v6204_v46, %v6188_v32  ;;  %v6034_v32 = vld [vmem:[#allocation13 + $0x48] sm:$0xff]  }
 0x99e   : > { %v2466_v14 = vpack.c.bf16 %v2421_v49, %v2420_v41  ;;  %v2467_v19 = vpack.c.bf16 %v2423_v58, %v2422_v52  ;;  %v2425_v7 = vmul.f32 %v6204_v46, %v6190_v18  ;;  %v2426_v30 = vmul.f32 %v6204_v46, %v6192_v35  ;;  %5623 = vmatprep.subr.bf16.mxu1 %v6033_v11  ;;  %v6035_v18 = vld [vmem:[#allocation13 + $0x50] sm:$0xff]   ;;  %v6036_v35 = vld [vmem:[#allocation13 + $0x58] sm:$0xff]  }
 0x99f   : > { %5607 = vmatprep.mubr.bf16.mxu0 %v2464_v23  ;;  %v2427_v62 = vmul.f32 %v6204_v46, %v6194_v34  ;;  %v2428_v1 = vmul.f32 %v6204_v46, %v6196_v43  ;;  %v2429_v47 = vmul.f32 %v6204_v46, %v6198_v3  ;;  %v2430_v38 = vmul.f32 %v6204_v46, %v6200_v37  ;;  %v6037_v34 = vld [vmem:[#allocation13 + $0x60] sm:$0xff]   ;;  %v6039_v43 = vld [vmem:[#allocation13 + $0x70] sm:$0xff]  }
 0x9a0   : > { %5608 = vmatmul.mubr.bf16.vlgmr.msra.gmra.mrb[96].mxu0 %v2465_v63  ;;  %v2468_v26 = vpack.c.bf16 %v2425_v7, %v2424_v0  ;;  %v2431_v33 = vmul.f32 %v6204_v46, %v6202_v44  ;;  %5624 = vmatpush3.bf16.msra.mxu1 %v6033_v11  ;;  %v6041_v3 = vld [vmem:[#allocation11 + $0x100] ss:$8 sps:$4 sm:$0xff]   ;;  %v6046_v37 = vld [vmem:[#allocation11 + $0x114] ss:$8 sps:$4 sm:$0xff]   ;;  %v6049_v44 = vld [vmem:[#allocation11 + $0x124] ss:$8 sps:$4 sm:$0xff]  }
 0x9a1   : > { %2438 = vadd.xlane.f32.xlu0 %v2419_v55  ;;  %2436 = vadd.xlane.f32.xlu1 %v2418_v45  ;;  %v2469_v48 = vpack.c.bf16 %v2427_v62, %v2426_v30  ;;  %v2470_v57 = vpack.c.bf16 %v2429_v47, %v2428_v1 }
 0x9a2   : > { %5611 = vmatprep.mubr.bf16.mxu0 %v2466_v14  ;;  %v2471_v61 = vpack.c.bf16 %v2431_v33, %v2430_v38  ;;  %5625 = vmatprep.subr.bf16.mxu1 %v6034_v32 }
 0x9a3   : > { %3066 = vmatpush1.bf16.msra.mxu0 %v6041_v3 }
 0x9a4   : > { %5626 = vmatpush3.bf16.msra.mxu1 %v6034_v32  ;;  %3067 = vmatprep.subr.bf16.mxu0 %v6046_v37 }
 0x9a5   : > { %2442 = vadd.xlane.f32.xlu0 %v2421_v49  ;;  %2440 = vadd.xlane.f32.xlu1 %v2420_v41 }
 0x9a6   : > { %5627 = vmatprep.subr.bf16.mxu1 %v6035_v18 }
 0x9a7   : > { %3068 = vmatpush1.bf16.msra.mxu0 %v6044_v8 }
 0x9a8   : > { %5612 = vmatmul.mubr.bf16.gmra.mrb[100].mxu0 %v2467_v19  ;;  %5628 = vmatpush3.bf16.msra.mxu1 %v6035_v18 }
 0x9a9   : > { %2446 = vadd.xlane.f32.xlu0 %v2423_v58  ;;  %2444 = vadd.xlane.f32.xlu1 %v2422_v52 }
 0x9aa   : > { %5615 = vmatprep.mubr.bf16.mxu0 %v2468_v26  ;;  %5629 = vmatprep.subr.bf16.mxu1 %v6036_v35 }
 0x9ab   : > { %3069 = vmatprep.subr.bf16.mxu0 %v6049_v44 }
 0x9ac   : > { %5630 = vmatpush3.bf16.msra.mxu1 %v6036_v35  ;;  %3070 = vmatpush1.bf16.msra.mxu0 %v6047_v56 }
 0x9ad   : > { %2450 = vadd.xlane.f32.xlu0 %v2425_v7  ;;  %2448 = vadd.xlane.f32.xlu1 %v2424_v0 }
 0x9ae   : > { %5631 = vmatprep.subr.bf16.mxu1 %v6037_v34  ;;  %3071 = vmatprep.subr.bf16.mxu0 %v6052_v17 }
 0x9b0   : > { %5616 = vmatmul.mubr.bf16.gmra.mrb[104].mxu0 %v2469_v48  ;;  %5632 = vmatpush3.bf16.msra.mxu1 %v6037_v34 }
 0x9b1   : > { %2454 = vadd.xlane.f32.xlu0 %v2427_v62  ;;  %2452 = vadd.xlane.f32.xlu1 %v2426_v30 }
 0x9b2   : > { %5619 = vmatprep.mubr.bf16.mxu0 %v2470_v57  ;;  %5633 = vmatprep.subr.bf16.mxu1 %v6038_v53 }
 0x9b3   : > { %3072 = vmatpush1.bf16.msra.mxu0 %v6050_v15 }
 0x9b4   : > { %5634 = vmatpush3.bf16.msra.mxu1 %v6038_v53  ;;  %3073 = vmatprep.subr.bf16.mxu0 %v6055_v29 }
 0x9b5   : > { %2458 = vadd.xlane.f32.xlu0 %v2429_v47  ;;  %2456 = vadd.xlane.f32.xlu1 %v2428_v1 }
 0x9b6   : > { %5635 = vmatprep.subr.bf16.mxu1 %v6039_v43 }
 0x9b7   : > { %3074 = vmatpush1.bf16.msra.mxu0 %v6053_v22 }
 0x9b8   : > { %5620 = vmatmul.mubr.bf16.gmra.mrb[108].mxu0 %v2471_v61  ;;  %5636 = vmatpush3.bf16.msra.mxu1 %v6039_v43 }
 0x9b9   : > { %2462 = vadd.xlane.f32.xlu0 %v2431_v33  ;;  %2460 = vadd.xlane.f32.xlu1 %v2430_v38 }
 0x9ba   : > { %3097 = vmatprep.mubr.bf16.mxu0 %v8239_v60  ;;  %5637 = vmatprep.subr.bf16.mxu1 %v6040_v16 }
 0x9bc   : > { %5638 = vmatpush3.bf16.msra.mxu1 %v6040_v16 }
 0xa2a   : > { %v2433_v21 = vpop.xlane.xlu1 %2432  ;;  %v2435_v5 = vpop.xlane.xlu0 %2434 }
 0xa2b   : > { %v2577_v52 = vadd.f32 1e-09, %v2433_v21  ;;  %v2578_v23 = vadd.f32 1e-09, %v2435_v5 }
 0xa2e   : > { %v2437_v46 = vpop.xlane.xlu1 %2436  ;;  %v2439_v31 = vpop.xlane.xlu0 %2438 }
 0xa2f   : > { %v2579_v49 = vadd.f32 1e-09, %v2437_v46  ;;  %v2580_v58 = vadd.f32 1e-09, %v2439_v31 }
 0xa31   : > { %6205 = vrcp.f32 %v2579_v49 }
 0xa32   : > { %v2441_v13 = vpop.xlane.xlu1 %2440  ;;  %v2443_v45 = vpop.xlane.xlu0 %2442  ;;  %6207 = vrcp.f32 %v2577_v52 }
 0xa33   : > { %6209 = vrcp.f32 %v2580_v58  ;;  %v2581_v19 = vadd.f32 1e-09, %v2441_v13  ;;  %v2582_v62 = vadd.f32 1e-09, %v2443_v45 }
 0xa34   : > { %6211 = vrcp.f32 %v2578_v23 }
 0xa36   : > { %v2445_v55 = vpop.xlane.xlu1 %2444  ;;  %v2447_v41 = vpop.xlane.xlu0 %2446 }
 0xa37   : > { %v2583_v14 = vadd.f32 1e-09, %v2445_v55  ;;  %v2584_v30 = vadd.f32 1e-09, %v2447_v41 }
 0xa39   : > { %6213 = vrcp.f32 %v2583_v14 }
 0xa3a   : > { %v2449_v63 = vpop.xlane.xlu1 %2448  ;;  %v2451_v0 = vpop.xlane.xlu0 %2450  ;;  %6215 = vrcp.f32 %v2581_v19 }
 0xa3b   : > { %v6206_v47 = vpop.eup %6205  ;;  %6217 = vrcp.f32 %v2584_v30  ;;  %v2585_v34 = vadd.f32 1e-09, %v2449_v63  ;;  %v2586_v37 = vadd.f32 1e-09, %v2451_v0 }
 0xa3c   : > { %v6208_v26 = vpop.eup %6207  ;;  %6219 = vrcp.f32 %v2582_v62 }
 0xa3d   : > { %v6210_v61 = vpop.eup %6209 }
 0xa3e   : > { %v2453_v7 = vpop.xlane.xlu1 %2452  ;;  %v2455_v1 = vpop.xlane.xlu0 %2454 }
 0xa3f   : > { %v2587_v11 = vadd.f32 1e-09, %v2453_v7  ;;  %v6212_v35 = vpop.eup %6211  ;;  %v2588_v3 = vadd.f32 1e-09, %v2455_v1 }
 0xa41   : > { %6221 = vrcp.f32 %v2587_v11 }
 0xa42   : > { %v2457_v33 = vpop.xlane.xlu1 %2456  ;;  %v2459_v53 = vpop.xlane.xlu0 %2458  ;;  %6223 = vrcp.f32 %v2585_v34 }
 0xa43   : > { %v6214_v22 = vpop.eup %6213  ;;  %6225 = vrcp.f32 %v2588_v3  ;;  %v2589_v23 = vadd.f32 1e-09, %v2457_v33  ;;  %v2590_v7 = vadd.f32 1e-09, %v2459_v53 }
 0xa44   : > { %v6216_v46 = vpop.eup %6215  ;;  %6227 = vrcp.f32 %v2586_v37 }
 0xa45   : > { %v6218_v55 = vpop.eup %6217 }
 0xa46   : > { %v2461_v15 = vpop.xlane.xlu1 %2460  ;;  %v2463_v31 = vpop.xlane.xlu0 %2462 }
 0xa47   : > { %v2591_v41 = vadd.f32 1e-09, %v2461_v15  ;;  %v6220_v58 = vpop.eup %6219  ;;  %v2592_v14 = vadd.f32 1e-09, %v2463_v31 }
 0xa49   : > { %6229 = vrcp.f32 %v2591_v41 }
 0xa4a   : > { %6231 = vrcp.f32 %v2589_v23 }
 0xa4b   : > { %6233 = vrcp.f32 %v2592_v14  ;;  %v6056_v14 = vld [vmem:[#allocation11 + $0x150] ss:$8 sps:$4 sm:$0xff]  }
 0xa4c   : > { %6235 = vrcp.f32 %v2590_v7  ;;  %v6061_v7 = vld [vmem:[#allocation11 + $0x164] ss:$8 sps:$4 sm:$0xff]  }
 0xa73   : > { %v5609_v38 = vpop.f32.mrb[96].mxu0 }
 0xa74   : > { %v2611_v48 = vmul.f32 %v6206_v47, %v5609_v38  ;;  %v2514_v57 = vpop.f32.mrb[97].mxu0 }
 0xa75   : > { %v2609_v32 = vmul.f32 %v6208_v26, %v2514_v57  ;;  %v5610_v18 = vpop.f32.mrb[98].mxu0  ;;  %v6222_v26 = vpop.eup %6221 }
 0xa76   : > { %v2612_v43 = vmul.f32 %v6210_v61, %v5610_v18  ;;  %v2517_v16 = vpop.f32.mrb[99].mxu0  ;;  %v2627_v8 = vsub.f32 %v7322_v9, %v2611_v48  ;;  %v6224_v57 = vpop.eup %6223 }
 0xa77   : > { %v2610_v10 = vmul.f32 %v6212_v35, %v2517_v16  ;;  %v2625_v56 = vsub.f32 %v7304_v36, %v2609_v32  ;;  %v6226_v32 = vpop.eup %6225 }
 0xa78   : > { %v2628_v44 = vsub.f32 %v7317_v24, %v2612_v43  ;;  %v6228_v34 = vpop.eup %6227 }
 0xa79   : > { %v2626_v17 = vsub.f32 %v7307_v39, %v2610_v10 }
 0xa7a   : > { %v2659_v29 = vpack.c.bf16 %v2628_v44, %v2627_v8 }
 0xa7b   : > { %v5613_v21 = vpop.f32.mrb[100].mxu0  ;;  %v2658_v5 = vpack.c.bf16 %v2626_v17, %v2625_v56  ;;  %v6230_v56 = vpop.eup %6229 }
 0xa7c   : > { %v2615_v13 = vmul.f32 %v6214_v22, %v5613_v21  ;;  %v2530_v45 = vpop.f32.mrb[101].mxu0 }
 0xa7d   : > { %v2613_v49 = vmul.f32 %v6216_v46, %v2530_v45  ;;  %v5614_v52 = vpop.f32.mrb[102].mxu0  ;;  %5639 = vmatprep.mubr.bf16.mxu1 %v2658_v5 }
 0xa7e   : > { %v2616_v63 = vmul.f32 %v6218_v55, %v5614_v52  ;;  %v2533_v0 = vpop.f32.mrb[103].mxu0  ;;  %5640 = vmatmul.mubr.bf16.vlgmr.msra.gmra.mrb[64].mxu1 %v2659_v29  ;;  %v2631_v30 = vsub.f32 %v7352_v42, %v2615_v13  ;;  %v6232_v29 = vpop.eup %6231 }
 0xa7f   : > { %v2614_v19 = vmul.f32 %v6220_v58, %v2533_v0  ;;  %v2629_v1 = vsub.f32 %v7338_v25, %v2613_v49  ;;  %v6234_v5 = vpop.eup %6233 }
 0xa80   : > { %v2632_v62 = vsub.f32 %v7347_v12, %v2616_v63  ;;  %v6236_v13 = vpop.eup %6235 }
 0xa81   : > { %v2630_v47 = vsub.f32 %v7333_v50, %v2614_v19  ;;  %v6058_v19 = vld [vmem:[#allocation11 + $0x154] ss:$8 sps:$4 sm:$0xff]  }
 0xa82   : > { %v2661_v38 = vpack.c.bf16 %v2632_v62, %v2631_v30  ;;  %3075 = vmatprep.subr.bf16.mxu0 %v6058_v19  ;;  %v6059_v30 = vld [vmem:[#allocation11 + $0x160] ss:$8 sps:$4 sm:$0xff]   ;;  %v6062_v62 = vld [vmem:[#allocation11 + $0x170] ss:$8 sps:$4 sm:$0xff]  }
 0xa83   : > { %v5617_v33 = vpop.f32.mrb[104].mxu0  ;;  %v2660_v48 = vpack.c.bf16 %v2630_v47, %v2629_v1  ;;  %3076 = vmatpush1.bf16.msra.mxu0 %v6056_v14  ;;  %v6064_v1 = vld [vmem:[#allocation11 + $0x174] ss:$8 sps:$4 sm:$0xff]  }
 0xa84   : > { %v2619_v61 = vmul.f32 %v6222_v26, %v5617_v33  ;;  %v2546_v11 = vpop.f32.mrb[105].mxu0  ;;  %3077 = vmatprep.subr.bf16.mxu0 %v6061_v7  ;;  %v7510_v47 = vld [vmem:[%s8308_s20 + $0x1] ss:$0 sm:$0xff] }
 0xa85   : > { %v2617_v18 = vmul.f32 %v6224_v57, %v2546_v11  ;;  %v5618_v35 = vpop.f32.mrb[106].mxu0  ;;  %5643 = vmatprep.mubr.bf16.mxu1 %v2660_v48  ;;  %v7515_v26 = vld [vmem:[%s8309_s5 + $0x1] ss:$0 sm:$0xff] }
 0xa86   : > { %v2620_v53 = vmul.f32 %v6226_v32, %v5618_v35  ;;  %v2549_v43 = vpop.f32.mrb[107].mxu0  ;;  %5644 = vmatmul.mubr.bf16.gmra.mrb[68].mxu1 %v2661_v38  ;;  %v2635_v3 = vsub.f32 %v7382_v4, %v2619_v61  ;;  %v7522_v11 = vld [vmem:[%s8310_s11 + $0x1] ss:$0 sm:$0xff] }
 0xa87   : > { %v2618_v16 = vmul.f32 %v6228_v34, %v2549_v43  ;;  %v2633_v37 = vsub.f32 %v7368_v51, %v2617_v18  ;;  %3078 = vmatpush1.bf16.msra.mxu0 %v6059_v30 }
 0xa88   : > { %v2636_v10 = vsub.f32 %v7377_v2, %v2620_v53  ;;  %3079 = vmatprep.subr.bf16.mxu0 %v6064_v1 }
 0xa89   : > { %v2634_v8 = vsub.f32 %v7363_v54, %v2618_v16 }
 0xa8a   : > { %v2663_v44 = vpack.c.bf16 %v2636_v10, %v2635_v3 }
 0xa8b   : > { %v5621_v17 = vpop.f32.mrb[108].mxu0  ;;  %v2662_v15 = vpack.c.bf16 %v2634_v8, %v2633_v37  ;;  %3080 = vmatpush1.bf16.msra.mxu0 %v6062_v62 }
 0xa8c   : > { %v2623_v22 = vmul.f32 %v6230_v56, %v5621_v17  ;;  %v2562_v21 = vpop.f32.mrb[109].mxu0 }
 0xa8d   : > { %v2621_v46 = vmul.f32 %v6232_v29, %v2562_v21  ;;  %v5622_v31 = vpop.f32.mrb[110].mxu0  ;;  %5647 = vmatprep.mubr.bf16.mxu1 %v2662_v15 }
 0xa8e   : > { %v2624_v45 = vmul.f32 %v6234_v5, %v5622_v31  ;;  %v2565_v55 = vpop.f32.mrb[111].mxu0  ;;  %5648 = vmatmul.mubr.bf16.gmra.mrb[72].mxu1 %v2663_v44  ;;  %v2639_v49 = vsub.f32 %v7406_v59, %v2623_v22 }
 0xa8f   : > { %v2622_v41 = vmul.f32 %v6236_v13, %v2565_v55  ;;  %v2637_v58 = vsub.f32 %v7397_v20, %v2621_v46 }
 0xa90   : > { %v2640_v52 = vsub.f32 %v7403_v40, %v2624_v45 }
 0xa91   : > { %v2638_v23 = vsub.f32 %v7393_v6, %v2622_v41 }
 0xa92   : > { %v2665_v63 = vpack.c.bf16 %v2640_v52, %v2639_v49 }
 0xa93   : > { %v2664_v0 = vpack.c.bf16 %v2638_v23, %v2637_v58 }
 0xa95   : > { %5651 = vmatprep.mubr.bf16.mxu1 %v2664_v0 }
 0xa96   : > { %5652 = vmatmul.mubr.bf16.gmra.mrb[76].mxu1 %v2665_v63 }
 0xb51   : > { %v5641_v38 = vpop.f32.mrb[64].mxu1 }
 0xb52   : > { %v2756_v33 = vpop.f32.mrb[65].mxu1  ;;  %v2765_v61 = vadd.f32 %v5641_v38, %v7510_v47 }
 0xb53   : > { %v2757_v48 = vadd.f32 %v7510_v47, %v2756_v33  ;;  %v5642_v57 = vpop.f32.mrb[66].mxu1 }
 0xb54   : > { %v2768_v32 = vadd.f32 %v5642_v57, %v7510_v47  ;;  %v2759_v18 = vpop.f32.mrb[67].mxu1  ;;  %v2829_v3 = vmul.f32 %v7515_v26, %v2765_v61 }
 0xb55   : > { %v2827_v35 = vmul.f32 %v7515_v26, %v2757_v48  ;;  %v2760_v34 = vadd.f32 %v7510_v47, %v2759_v18 }
 0xb56   : > { %v2830_v43 = vmul.f32 %v7515_v26, %v2768_v32  ;;  %v2853_v29 = vadd.f32 %v7522_v11, %v2829_v3 }
 0xb57   : > { %v2851_v53 = vadd.f32 %v7522_v11, %v2827_v35  ;;  %v2828_v16 = vmul.f32 %v7515_v26, %v2760_v34 }
 0xb58   : > { %v2854_v56 = vadd.f32 %v7522_v11, %v2830_v43  ;;  %v2869_v41 = vmax.f32 %v2853_v29, 0.0 }
 0xb59   : > { %v2867_v10 = vmax.f32 %v2851_v53, 0.0  ;;  %v2852_v37 = vadd.f32 %v7522_v11, %v2828_v16  ;;  %v5645_v8 = vpop.f32.mrb[68].mxu1 }
 0xb5a   : > { %v2772_v44 = vpop.f32.mrb[69].mxu1  ;;  %v2870_v13 = vmax.f32 %v2854_v56, 0.0  ;;  %v7553_v7 = vadd.f32 %v2869_v41, %v7322_v9  ;;  %v2781_v30 = vadd.f32 %v5645_v8, %v7510_v47 }
 0xb5b   : > { %v2868_v17 = vmax.f32 %v2852_v37, 0.0  ;;  %v5646_v15 = vpop.f32.mrb[70].mxu1  ;;  %v7535_v21 = vadd.f32 %v2867_v10, %v7304_v36  ;;  %v2773_v46 = vadd.f32 %v7510_v47, %v2772_v44 }
 0xb5c   : > { %v2775_v22 = vpop.f32.mrb[71].mxu1  ;;  %v7548_v23 = vadd.f32 %v2870_v13, %v7317_v24  ;;  %v2784_v63 = vadd.f32 %v5646_v15, %v7510_v47  ;;  %v2833_v48 = vmul.f32 %v7515_v26, %v2781_v30 }
 0xb5d   : > { %v7538_v5 = vadd.f32 %v2868_v17, %v7307_v39  ;;  %v2776_v31 = vadd.f32 %v7510_v47, %v2775_v22  ;;  %v2831_v49 = vmul.f32 %v7515_v26, %v2773_v46 }
 0xb5e   : > { %v2834_v1 = vmul.f32 %v7515_v26, %v2784_v63  ;;  %v2965_v33 = vpack.c.bf16 %v7548_v23, %v7553_v7  ;;  %v2857_v16 = vadd.f32 %v7522_v11, %v2833_v48 }
 0xb5f   : > { %v2832_v45 = vmul.f32 %v7515_v26, %v2776_v31  ;;  %v2964_v55 = vpack.c.bf16 %v7538_v5, %v7535_v21  ;;  %v2855_v62 = vadd.f32 %v7522_v11, %v2831_v49 }
 0xb60   : > { %v2858_v18 = vadd.f32 %v7522_v11, %v2834_v1  ;;  %v2873_v56 = vmax.f32 %v2857_v16, 0.0 }
 0xb61   : > { %v5649_v52 = vpop.f32.mrb[72].mxu1  ;;  %3098 = vmatmul.mubr.bf16.vlgmr.msra.gmra.mrb[112].mxu0 %v2964_v55  ;;  %v2856_v0 = vadd.f32 %v7522_v11, %v2832_v45  ;;  %v2871_v57 = vmax.f32 %v2855_v62, 0.0 }
 0xb62   : > { %v2788_v58 = vpop.f32.mrb[73].mxu1  ;;  %3107 = vmatprep.mubr.bf16.mxu0 %v8239_v60  ;;  %v2874_v37 = vmax.f32 %v2858_v18, 0.0  ;;  %v7583_v46 = vadd.f32 %v2873_v56, %v7352_v42  ;;  %v2797_v31 = vadd.f32 %v5649_v52, %v7510_v47 }
 0xb63   : > { %v5650_v14 = vpop.f32.mrb[74].mxu1  ;;  %v2872_v38 = vmax.f32 %v2856_v0, 0.0  ;;  %v7569_v3 = vadd.f32 %v2871_v57, %v7338_v25  ;;  %v2789_v10 = vadd.f32 %v7510_v47, %v2788_v58 }
 0xb64   : > { %v2791_v19 = vpop.f32.mrb[75].mxu1  ;;  %v7578_v15 = vadd.f32 %v2874_v37, %v7347_v12  ;;  %v2800_v29 = vadd.f32 %v5650_v14, %v7510_v47  ;;  %v2837_v49 = vmul.f32 %v7515_v26, %v2797_v31 }
 0xb65   : > { %v7564_v35 = vadd.f32 %v2872_v38, %v7333_v50  ;;  %v2792_v34 = vadd.f32 %v7510_v47, %v2791_v19  ;;  %v2835_v17 = vmul.f32 %v7515_v26, %v2789_v10 }
 0xb66   : > { %v2838_v45 = vmul.f32 %v7515_v26, %v2800_v29  ;;  %v2967_v41 = vpack.c.bf16 %v7578_v15, %v7583_v46  ;;  %v2861_v14 = vadd.f32 %v7522_v11, %v2837_v49 }
 0xb67   : > { %v2836_v8 = vmul.f32 %v7515_v26, %v2792_v34  ;;  %v2966_v44 = vpack.c.bf16 %v7564_v35, %v7569_v3  ;;  %v2859_v13 = vadd.f32 %v7522_v11, %v2835_v17 }
 0xb68   : > { %v2862_v63 = vadd.f32 %v7522_v11, %v2838_v45  ;;  %v5106_v45 = vld [vmem:[%s8307_s10 + $0x4] sm:$0x3] }
 0xb69   : > { %v5653_v61 = vpop.f32.mrb[76].mxu1  ;;  %3108 = vmatmul.mubr.bf16.gmra.mrb[116].mxu0 %v2965_v33  ;;  %v2860_v22 = vadd.f32 %v7522_v11, %v2836_v8  ;;  %v2875_v58 = vmax.f32 %v2859_v13, 0.0  ;;  %v2877_v33 = vmax.f32 %v2861_v14, 0.0  ;;  %v7648_v49 = vrot.slane %v5106_v45, %v7180_v28 }
 0xb6a   : > { %v2804_v32 = vpop.f32.mrb[77].mxu1  ;;  %3117 = vmatprep.mubr.bf16.mxu0 %v8239_v60  ;;  %v2878_v62 = vmax.f32 %v2862_v63, 0.0 }
 0xb6b   : > { %v5654_v53 = vpop.f32.mrb[78].mxu1  ;;  %v2876_v55 = vmax.f32 %v2860_v22, 0.0  ;;  %v7599_v19 = vadd.f32 %v2875_v58, %v7368_v51  ;;  %v2805_v30 = vadd.f32 %v7510_v47, %v2804_v32  ;;  %v7613_v32 = vadd.f32 %v2877_v33, %v7382_v4 }
 0xb6c   : > { %v2807_v43 = vpop.f32.mrb[79].mxu1  ;;  %v7608_v57 = vadd.f32 %v2878_v62, %v7377_v2  ;;  %v2816_v18 = vadd.f32 %v5654_v53, %v7510_v47 }
 0xb6d   : > { %v7594_v0 = vadd.f32 %v2876_v55, %v7363_v54  ;;  %v2808_v52 = vadd.f32 %v7510_v47, %v2807_v43  ;;  %v2839_v48 = vmul.f32 %v7515_v26, %v2805_v30  ;;  %v2813_v43 = vadd.f32 %v5653_v61, %v7510_v47 }
 0xb6e   : > { %v2842_v10 = vmul.f32 %v7515_v26, %v2816_v18  ;;  %v2969_v8 = vpack.c.bf16 %v7608_v57, %v7613_v32  ;;  %v7645_v55 = vrot.slane %v5106_v45, %v7175_v27 }
 0xb6f   : > { %v2840_v1 = vmul.f32 %v7515_v26, %v2808_v52  ;;  %v2968_v38 = vpack.c.bf16 %v7594_v0, %v7599_v19  ;;  %v2863_v16 = vadd.f32 %v7522_v11, %v2839_v48 }
 0xb70   : > { %v2866_v53 = vadd.f32 %v7522_v11, %v2842_v10 }
 0xb71   : > { %3118 = vmatmul.mubr.bf16.gmra.mrb[120].mxu0 %v2966_v44  ;;  %v2864_v34 = vadd.f32 %v7522_v11, %v2840_v1  ;;  %v2841_v44 = vmul.f32 %v7515_v26, %v2813_v43  ;;  %v2879_v56 = vmax.f32 %v2863_v16, 0.0 }
 0xb72   : > { %3127 = vmatprep.mubr.bf16.mxu0 %v8239_v60  ;;  %v2882_v29 = vmax.f32 %v2866_v53, 0.0 }
 0xb73   : > { %v2880_v37 = vmax.f32 %v2864_v34, 0.0  ;;  %v2865_v47 = vadd.f32 %v7522_v11, %v2841_v44  ;;  %v7628_v61 = vadd.f32 %v2879_v56, %v7397_v20 }
 0xb74   : > { %v7634_v26 = vadd.f32 %v2882_v29, %v7403_v40 }
 0xb75   : > { %v7624_v17 = vadd.f32 %v2880_v37, %v7393_v6  ;;  %v2881_v31 = vmax.f32 %v2865_v47, 0.0 }
 0xb77   : > { %v2970_v22 = vpack.c.bf16 %v7624_v17, %v7628_v61  ;;  %v7637_v13 = vadd.f32 %v2881_v31, %v7406_v59 }
 0xb79   : > { %3128 = vmatmul.mubr.bf16.gmra.mrb[124].mxu0 %v2967_v41  ;;  %v2971_v11 = vpack.c.bf16 %v7634_v26, %v7637_v13 }
 0xb7a   : > { %3137 = vmatprep.mubr.bf16.mxu0 %v8239_v60 }
 0xb81   : > { %3138 = vmatmul.mubr.bf16.gmra.mrb[128].mxu0 %v2968_v38 }
 0xb82   : > { %3147 = vmatprep.mubr.bf16.mxu0 %v8239_v60 }
 0xb89   : > { %3148 = vmatmul.mubr.bf16.gmra.mrb[132].mxu0 %v2969_v8 }
 0xb8a   : > { %3157 = vmatprep.mubr.bf16.mxu0 %v8239_v60 }
 0xb91   : > { %3158 = vmatmul.mubr.bf16.gmra.mrb[136].mxu0 %v2970_v22 }
 0xb92   : > { %3167 = vmatprep.mubr.bf16.mxu0 %v8239_v60 }
 0xb99   : > { %3168 = vmatmul.mubr.bf16.gmra.mrb[140].mxu0 %v2971_v11 }
 0xc34   : > { %v3099_v41 = vpop.f32.mrb[112].mxu0 }
 0xc35   : > { %v3101_v58 = vpop.f32.mrb[113].mxu0  ;;  %v3100_v52 = vadd.f32 %v3099_v41, %v7645_v55 }
 0xc36   : > { %v3103_v63 = vpop.f32.mrb[114].mxu0  ;;  %v3102_v62 = vadd.f32 %v3101_v58, %v7648_v49 }
 0xc37   : > { %v3104_v14 = vadd.f32 %v3103_v63, %v7645_v55  ;;  %v3105_v30 = vpop.f32.mrb[115].mxu0 }
 0xc38   : > { %v3106_v1 = vadd.f32 %v3105_v30, %v7648_v49 }
 0xc39   : > { %v3178_v38 = vpack.c.bf16 %v3104_v14, %v3100_v52 }
 0xc3a   : > { %v3430_v33 = vpack.c.bf16 %v3106_v1, %v3102_v62 }
 0xc3b   : > { %5655 = vmatprep.subr.bf16.mxu1 %v3178_v38  ;;  %5671 = vmatprep.mubr.bf16.mxu1 %v3178_v38 }
 0xc3c   : > { %v3109_v48 = vpop.f32.mrb[116].mxu0  ;;  %5656 = vmatpush3.bf16.xpose.msra.mxu1 %v3178_v38  ;;  %5687 = vmatprep.subr.bf16.mxu0 %v3430_v33 }
 0xc3d   : > { %v3111_v18 = vpop.f32.mrb[117].mxu0  ;;  %5688 = vmatpush3.bf16.msra.mxu0 %v3430_v33  ;;  %v3110_v43 = vadd.f32 %v3109_v48, %v7645_v55 }
 0xc3e   : > { %v3113_v34 = vpop.f32.mrb[118].mxu0  ;;  %v3112_v37 = vadd.f32 %v3111_v18, %v7648_v49 }
 0xc3f   : > { %v3114_v16 = vadd.f32 %v3113_v34, %v7645_v55  ;;  %v3115_v10 = vpop.f32.mrb[119].mxu0 }
 0xc40   : > { %v3116_v8 = vadd.f32 %v3115_v10, %v7648_v49 }
 0xc41   : > { %v7658_v44 = vpack.c.bf16 %v3114_v16, %v3110_v43 }
 0xc42   : > { %v3431_v56 = vpack.c.bf16 %v3116_v8, %v3112_v37 }
 0xc43   : > { %5657 = vmatprep.subr.bf16.mxu1 %v7658_v44 }
 0xc44   : > { %v3119_v53 = vpop.f32.mrb[120].mxu0  ;;  %5658 = vmatpush3.bf16.xpose.msra.mxu1 %v7658_v44  ;;  %5689 = vmatprep.subr.bf16.mxu0 %v3431_v56 }
 0xc45   : > { %v3121_v47 = vpop.f32.mrb[121].mxu0  ;;  %5690 = vmatpush3.bf16.msra.mxu0 %v3431_v56  ;;  %v3120_v22 = vadd.f32 %v3119_v53, %v7645_v55 }
 0xc46   : > { %v3123_v29 = vpop.f32.mrb[122].mxu0  ;;  %v3122_v45 = vadd.f32 %v3121_v47, %v7648_v49 }
 0xc47   : > { %v3124_v31 = vadd.f32 %v3123_v29, %v7645_v55  ;;  %v3125_v11 = vpop.f32.mrb[123].mxu0 }
 0xc48   : > { %v3126_v41 = vadd.f32 %v3125_v11, %v7648_v49 }
 0xc49   : > { %v7666_v58 = vpack.c.bf16 %v3124_v31, %v3120_v22 }
 0xc4a   : > { %v3432_v63 = vpack.c.bf16 %v3126_v41, %v3122_v45 }
 0xc4b   : > { %5659 = vmatprep.subr.bf16.mxu1 %v7666_v58 }
 0xc4c   : > { %v3129_v52 = vpop.f32.mrb[124].mxu0  ;;  %5660 = vmatpush3.bf16.xpose.msra.mxu1 %v7666_v58  ;;  %5691 = vmatprep.subr.bf16.mxu0 %v3432_v63 }
 0xc4d   : > { %v3131_v14 = vpop.f32.mrb[125].mxu0  ;;  %5692 = vmatpush3.bf16.msra.mxu0 %v3432_v63  ;;  %v3130_v62 = vadd.f32 %v3129_v52, %v7645_v55 }
 0xc4e   : > { %v3133_v30 = vpop.f32.mrb[126].mxu0  ;;  %v3132_v33 = vadd.f32 %v3131_v14, %v7648_v49 }
 0xc4f   : > { %v3134_v1 = vadd.f32 %v3133_v30, %v7645_v55  ;;  %v3135_v38 = vpop.f32.mrb[127].mxu0 }
 0xc50   : > { %v3136_v48 = vadd.f32 %v3135_v38, %v7648_v49 }
 0xc51   : > { %v7674_v18 = vpack.c.bf16 %v3134_v1, %v3130_v62 }
 0xc52   : > { %v3433_v34 = vpack.c.bf16 %v3136_v48, %v3132_v33 }
 0xc53   : > { %5661 = vmatprep.subr.bf16.mxu1 %v7674_v18 }
 0xc54   : > { %v3139_v43 = vpop.f32.mrb[128].mxu0  ;;  %5662 = vmatpush3.bf16.xpose.msra.mxu1 %v7674_v18  ;;  %5693 = vmatprep.subr.bf16.mxu0 %v3433_v34 }
 0xc55   : > { %v3141_v16 = vpop.f32.mrb[129].mxu0  ;;  %5694 = vmatpush3.bf16.msra.mxu0 %v3433_v34  ;;  %v3140_v37 = vadd.f32 %v3139_v43, %v7645_v55 }
 0xc56   : > { %v3143_v10 = vpop.f32.mrb[130].mxu0  ;;  %v3142_v53 = vadd.f32 %v3141_v16, %v7648_v49 }
 0xc57   : > { %v3144_v8 = vadd.f32 %v3143_v10, %v7645_v55  ;;  %v3145_v56 = vpop.f32.mrb[131].mxu0 }
 0xc58   : > { %v3146_v47 = vadd.f32 %v3145_v56, %v7648_v49 }
 0xc59   : > { %v3182_v29 = vpack.c.bf16 %v3144_v8, %v3140_v37 }
 0xc5a   : > { %v3434_v22 = vpack.c.bf16 %v3146_v47, %v3142_v53 }
 0xc5b   : > { %5663 = vmatprep.subr.bf16.mxu1 %v3182_v29 }
 0xc5c   : > { %v3149_v31 = vpop.f32.mrb[132].mxu0  ;;  %5664 = vmatpush3.bf16.xpose.msra.mxu1 %v3182_v29  ;;  %5695 = vmatprep.subr.bf16.mxu0 %v3434_v22 }
 0xc5d   : > { %v3151_v11 = vpop.f32.mrb[133].mxu0  ;;  %5696 = vmatpush3.bf16.msra.mxu0 %v3434_v22  ;;  %v3150_v41 = vadd.f32 %v3149_v31, %v7645_v55 }
 0xc5e   : > { %v3153_v45 = vpop.f32.mrb[134].mxu0  ;;  %v3152_v14 = vadd.f32 %v3151_v11, %v7648_v49 }
 0xc5f   : > { %v3154_v63 = vadd.f32 %v3153_v45, %v7645_v55  ;;  %v3155_v52 = vpop.f32.mrb[135].mxu0 }
 0xc60   : > { %v3156_v30 = vadd.f32 %v3155_v52, %v7648_v49 }
 0xc61   : > { %v3183_v62 = vpack.c.bf16 %v3154_v63, %v3150_v41 }
 0xc62   : > { %v3435_v1 = vpack.c.bf16 %v3156_v30, %v3152_v14 }
 0xc63   : > { %5665 = vmatprep.subr.bf16.mxu1 %v3183_v62 }
 0xc64   : > { %v3159_v38 = vpop.f32.mrb[136].mxu0  ;;  %5666 = vmatpush3.bf16.xpose.msra.mxu1 %v3183_v62  ;;  %5697 = vmatprep.subr.bf16.mxu0 %v3435_v1 }
 0xc65   : > { %v3161_v33 = vpop.f32.mrb[137].mxu0  ;;  %5698 = vmatpush3.bf16.msra.mxu0 %v3435_v1  ;;  %v3160_v34 = vadd.f32 %v3159_v38, %v7645_v55 }
 0xc66   : > { %v3163_v48 = vpop.f32.mrb[138].mxu0  ;;  %v3162_v10 = vadd.f32 %v3161_v33, %v7648_v49 }
 0xc67   : > { %v3164_v43 = vadd.f32 %v3163_v48, %v7645_v55  ;;  %v3165_v16 = vpop.f32.mrb[139].mxu0 }
 0xc68   : > { %v3166_v37 = vadd.f32 %v3165_v16, %v7648_v49 }
 0xc69   : > { %v3184_v8 = vpack.c.bf16 %v3164_v43, %v3160_v34 }
 0xc6a   : > { %v3436_v56 = vpack.c.bf16 %v3166_v37, %v3162_v10 }
 0xc6b   : > { %5667 = vmatprep.subr.bf16.mxu1 %v3184_v8 }
 0xc6c   : > { %v3169_v53 = vpop.f32.mrb[140].mxu0  ;;  %5668 = vmatpush3.bf16.xpose.msra.mxu1 %v3184_v8  ;;  %5699 = vmatprep.subr.bf16.mxu0 %v3436_v56 }
 0xc6d   : > { %v3171_v47 = vpop.f32.mrb[141].mxu0  ;;  %5700 = vmatpush3.bf16.msra.mxu0 %v3436_v56  ;;  %v3170_v31 = vadd.f32 %v3169_v53, %v7645_v55 }
 0xc6e   : > { %v3173_v22 = vpop.f32.mrb[142].mxu0  ;;  %v3172_v41 = vadd.f32 %v3171_v47, %v7648_v49 }
 0xc6f   : > { %v3174_v11 = vadd.f32 %v3173_v22, %v7645_v55  ;;  %v3175_v45 = vpop.f32.mrb[143].mxu0 }
 0xc70   : > { %v3176_v63 = vadd.f32 %v3175_v45, %v7648_v49 }
 0xc71   : > { %v3185_v52 = vpack.c.bf16 %v3174_v11, %v3170_v31 }
 0xc72   : > { %v3437_v14 = vpack.c.bf16 %v3176_v63, %v3172_v41 }
 0xc73   : > { %5669 = vmatprep.subr.bf16.mxu1 %v3185_v52 }
 0xc74   : > { %5670 = vmatpush3.bf16.xpose.msra.mxu1 %v3185_v52  ;;  %5701 = vmatprep.subr.bf16.mxu0 %v3437_v14 }
 0xc75   : > { %5702 = vmatpush3.bf16.msra.mxu0 %v3437_v14 }
 0xc7b   : > { %5672 = vmatmul.mubr.bf16.vlgmr.msra.gmra.mrb[80].mxu1 %v7658_v44 }
 0xc7c   : > { %5675 = vmatprep.mubr.bf16.mxu1 %v7666_v58 }
 0xc83   : > { %5676 = vmatmul.mubr.bf16.gmra.mrb[84].mxu1 %v7674_v18 }
 0xc84   : > { %5679 = vmatprep.mubr.bf16.mxu1 %v3182_v29 }
 0xc8b   : > { %5680 = vmatmul.mubr.bf16.gmra.mrb[88].mxu1 %v3183_v62 }
 0xc8c   : > { %5683 = vmatprep.mubr.bf16.mxu1 %v3184_v8 }
 0xc93   : > { %5684 = vmatmul.mubr.bf16.gmra.mrb[92].mxu1 %v3185_v52 }
 0xd4e   : > { %v5673_v55 = vpop.f32.mrb[80].mxu1 }
 0xd4f   : > { %v3220_v30 = vpop.f32.mrb[81].mxu1 }
 0xd50   : > { %v5674_v1 = vpop.f32.mrb[82].mxu1 }
 0xd51   : > { %v3223_v49 = vpop.f32.mrb[83].mxu1 }
 0xd56   : > { %v5677_v38 = vpop.f32.mrb[84].mxu1 }
 0xd57   : > { %v3285_v33 = vmax.f32 %v5673_v55, %v5677_v38  ;;  %v3236_v48 = vpop.f32.mrb[85].mxu1 }
 0xd58   : > { %v3283_v34 = vmax.f32 %v3220_v30, %v3236_v48  ;;  %v5678_v43 = vpop.f32.mrb[86].mxu1 }
 0xd59   : > { %v3286_v16 = vmax.f32 %v5674_v1, %v5678_v43  ;;  %v3239_v10 = vpop.f32.mrb[87].mxu1 }
 0xd5a   : > { %v3284_v44 = vmax.f32 %v3223_v49, %v3239_v10 }
 0xd5e   : > { %v7697_v37 = vpop.f32.mrb[88].mxu1 }
 0xd5f   : > { %v3289_v58 = vmax.f32 %v3285_v33, %v7697_v37  ;;  %v3252_v18 = vpop.f32.mrb[89].mxu1 }
 0xd60   : > { %v3287_v29 = vmax.f32 %v3283_v34, %v3252_v18  ;;  %v7700_v62 = vpop.f32.mrb[90].mxu1 }
 0xd61   : > { %v3290_v8 = vmax.f32 %v3286_v16, %v7700_v62  ;;  %v3255_v56 = vpop.f32.mrb[91].mxu1 }
 0xd62   : > { %v3288_v53 = vmax.f32 %v3284_v44, %v3255_v56 }
 0xd66   : > { %v7703_v47 = vpop.f32.mrb[92].mxu1 }
 0xd67   : > { %v3293_v22 = vmax.f32 %v3289_v58, %v7703_v47  ;;  %v7706_v31 = vpop.f32.mrb[93].mxu1 }
 0xd68   : > { %v3291_v11 = vmax.f32 %v3287_v29, %v7706_v31  ;;  %v7709_v45 = vpop.f32.mrb[94].mxu1 }
 0xd69   : > { %v3294_v41 = vmax.f32 %v3290_v8, %v7709_v45  ;;  %v7712_v63 = vpop.f32.mrb[95].mxu1 }
 0xd6a   : > { %v3292_v52 = vmax.f32 %v3288_v53, %v7712_v63 }
 0xd6b   : > { %v3296_v14 = vmax.f32 %v3293_v22, %v3294_v41 }
 0xd6c   : > { %v3295_v33 = vmax.f32 %v3291_v11, %v3292_v52 }
 0xd6e   : > { %v3297_v34 = vmax.f32 %v3295_v33, %v3296_v14 }
 0xd70   : > { %v3298_v16 = vrot.slane %v3297_v34, 4 }
 0xd72   : > { %v3299_v44 = vmax.f32 %v3297_v34, %v3298_v16 }
 0xd74   : > { %v3300_v60 = vrot.slane %v3299_v44, 2 }
 0xd76   : > { %v3301_v40 = vmax.f32 %v3299_v44, %v3300_v60 }
 0xd78   : > { %v3302_v58 = vrot.slane %v3301_v40, 1 }
 0xd7a   : > { %v3303_v59 = vmax.f32 %v3301_v40, %v3302_v58 }
 0xd7c   : > { %v3317_v6 = vsub.f32 %v7712_v63, %v3303_v59  ;;  %v3304_v29 = vsub.f32 %v3220_v30, %v3303_v59  ;;  %v3305_v20 = vsub.f32 %v3223_v49, %v3303_v59  ;;  %v3306_v2 = vsub.f32 %v5673_v55, %v3303_v59 }
 0xd7d   : > { %v3307_v4 = vsub.f32 %v5674_v1, %v3303_v59  ;;  %v3308_v8 = vsub.f32 %v3236_v48, %v3303_v59  ;;  %v3309_v54 = vsub.f32 %v3239_v10, %v3303_v59  ;;  %v3310_v51 = vsub.f32 %v5677_v38, %v3303_v59 }
 0xd7e   : > { %v3311_v12 = vsub.f32 %v5678_v43, %v3303_v59  ;;  %v3312_v53 = vsub.f32 %v3252_v18, %v3303_v59  ;;  %v3313_v22 = vsub.f32 %v3255_v56, %v3303_v59  ;;  %v3314_v11 = vsub.f32 %v7697_v37, %v3303_v59 }
 0xd7f   : > { %v3315_v41 = vsub.f32 %v7700_v62, %v3303_v59  ;;  %v3316_v60 = vsub.f32 %v7706_v31, %v3303_v59  ;;  %v3318_v40 = vsub.f32 %v7703_v47, %v3303_v59  ;;  %v3319_v63 = vsub.f32 %v7709_v45, %v3303_v59 }
 0xd80   : > { %v3320_v30 = vmul.f32 1.442695, %v3304_v29  ;;  %v3322_v49 = vmul.f32 1.442695, %v3305_v20  ;;  %v3324_v55 = vmul.f32 1.442695, %v3306_v2 }
 0xd81   : > { %v3326_v1 = vmul.f32 1.442695, %v3307_v4  ;;  %v3328_v38 = vmul.f32 1.442695, %v3308_v8  ;;  %v3330_v48 = vmul.f32 1.442695, %v3309_v54 }
 0xd82   : > { %6237 = vpow2.f32 %v3320_v30  ;;  %v3332_v43 = vmul.f32 1.442695, %v3310_v51  ;;  %v3334_v10 = vmul.f32 1.442695, %v3311_v12  ;;  %v3336_v62 = vmul.f32 1.442695, %v3312_v53 }
 0xd83   : > { %6239 = vpow2.f32 %v3322_v49  ;;  %v3338_v20 = vmul.f32 1.442695, %v3313_v22  ;;  %v3340_v4 = vmul.f32 1.442695, %v3314_v11  ;;  %v3342_v54 = vmul.f32 1.442695, %v3315_v41 }
 0xd84   : > { %6241 = vpow2.f32 %v3324_v55  ;;  %v3344_v12 = vmul.f32 1.442695, %v3316_v60  ;;  %v3346_v34 = vmul.f32 1.442695, %v3317_v6  ;;  %v3348_v58 = vmul.f32 1.442695, %v3318_v40 }
 0xd85   : > { %6243 = vpow2.f32 %v3326_v1  ;;  %v3350_v53 = vmul.f32 1.442695, %v3319_v63 }
 0xd86   : > { %6245 = vpow2.f32 %v3328_v38 }
 0xd87   : > { %6247 = vpow2.f32 %v3330_v48 }
 0xd88   : > { %6249 = vpow2.f32 %v3332_v43 }
 0xd89   : > { %6251 = vpow2.f32 %v3334_v10 }
 0xd8a   : > { %6253 = vpow2.f32 %v3336_v62 }
 0xd8b   : > { %6255 = vpow2.f32 %v3338_v20 }
 0xd8c   : > { %v6238_v37 = vpop.eup %6237  ;;  %6257 = vpow2.f32 %v3340_v4 }
 0xd8d   : > { %v6240_v18 = vpop.eup %6239  ;;  %6259 = vpow2.f32 %v3342_v54 }
 0xd8e   : > { %v3352_v56 = vadd.f32 %v6240_v18, %v6238_v37  ;;  %v6242_v59 = vpop.eup %6241  ;;  %6261 = vpow2.f32 %v3344_v12 }
 0xd8f   : > { %v6244_v47 = vpop.eup %6243  ;;  %6263 = vpow2.f32 %v3346_v34 }
 0xd90   : > { %v3353_v2 = vadd.f32 %v6242_v59, %v3352_v56  ;;  %v6246_v45 = vpop.eup %6245  ;;  %6265 = vpow2.f32 %v3348_v58 }
 0xd91   : > { %v6248_v51 = vpop.eup %6247  ;;  %6267 = vpow2.f32 %v3350_v53 }
 0xd92   : > { %v3354_v31 = vadd.f32 %v6244_v47, %v3353_v2  ;;  %v6250_v33 = vpop.eup %6249 }
 0xd93   : > { %v6252_v44 = vpop.eup %6251 }
 0xd94   : > { %v3355_v52 = vadd.f32 %v6246_v45, %v3354_v31  ;;  %v6254_v8 = vpop.eup %6253 }
 0xd95   : > { %v6256_v11 = vpop.eup %6255 }
 0xd96   : > { %v3356_v14 = vadd.f32 %v6248_v51, %v3355_v52  ;;  %v6258_v30 = vpop.eup %6257 }
 0xd97   : > { %v6260_v60 = vpop.eup %6259 }
 0xd98   : > { %v3357_v16 = vadd.f32 %v6250_v33, %v3356_v14  ;;  %v6262_v1 = vpop.eup %6261 }
 0xd99   : > { %v6264_v38 = vpop.eup %6263 }
 0xd9a   : > { %v3358_v29 = vadd.f32 %v6252_v44, %v3357_v16  ;;  %v6266_v43 = vpop.eup %6265 }
 0xd9b   : > { %v6268_v40 = vpop.eup %6267 }
 0xd9c   : > { %v3359_v22 = vadd.f32 %v6254_v8, %v3358_v29 }
 0xd9e   : > { %v3360_v41 = vadd.f32 %v6256_v11, %v3359_v22 }
 0xda0   : > { %v3361_v49 = vadd.f32 %v6258_v30, %v3360_v41 }
 0xda2   : > { %v3362_v55 = vadd.f32 %v6260_v60, %v3361_v49 }
 0xda4   : > { %v3363_v6 = vadd.f32 %v6262_v1, %v3362_v55 }
 0xda6   : > { %v3364_v48 = vadd.f32 %v6264_v38, %v3363_v6 }
 0xda8   : > { %v3365_v10 = vadd.f32 %v6266_v43, %v3364_v48 }
 0xdaa   : > { %v3366_v62 = vadd.f32 %v6268_v40, %v3365_v10 }
 0xdac   : > { %v3367_v56 = vrot.slane %v3366_v62, 4 }
 0xdae   : > { %v3368_v20 = vadd.f32 %v3367_v56, %v3366_v62 }
 0xdb0   : > { %v3369_v63 = vrot.slane %v3368_v20, 2 }
 0xdb2   : > { %v3370_v2 = vadd.f32 %v3369_v63, %v3368_v20  ;;  %v6073_v20 = vld [vmem:[#allocation11 + $0x180] ss:$8 sps:$4 sm:$0xff]   ;;  %v6075_v63 = vld [vmem:[#allocation11 + $0x184] ss:$8 sps:$4 sm:$0xff]  }
 0xdb3   : > { %4023 = vmatprep.subr.bf16.mxu0 %v6075_v63 }
 0xdb4   : > { %v3371_v4 = vrot.slane %v3370_v2, 1 }
 0xdb6   : > { %v3372_v31 = vadd.f32 %v3371_v4, %v3370_v2  ;;  %v6078_v2 = vld [vmem:[#allocation11 + $0x194] ss:$8 sps:$4 sm:$0xff]   ;;  %v6076_v4 = vld [vmem:[#allocation11 + $0x190] ss:$8 sps:$4 sm:$0xff]  }
 0xdb8   : > { %6269 = vrcp.f32 %v3372_v31  ;;  %v6081_v31 = vld [vmem:[#allocation11 + $0x1a4] ss:$8 sps:$4 sm:$0xff]  }
 0xdc2   : > { %v6270_v54 = vpop.eup %6269 }
 0xdc3   : > { %v3375_v52 = vmul.f32 %v6270_v54, %v6240_v18  ;;  %v3374_v12 = vmul.f32 %v6270_v54, %v6238_v37  ;;  %v3376_v14 = vmul.f32 %v6270_v54, %v6242_v59  ;;  %v3377_v34 = vmul.f32 %v6270_v54, %v6244_v47 }
 0xdc4   : > { %v3378_v16 = vmul.f32 %v6270_v54, %v6246_v45  ;;  %v3379_v58 = vmul.f32 %v6270_v54, %v6248_v51  ;;  %v3380_v29 = vmul.f32 %v6270_v54, %v6250_v33  ;;  %v3381_v53 = vmul.f32 %v6270_v54, %v6252_v44 }
 0xdc5   : > { %3392 = vadd.xlane.f32.xlu0 %v3375_v52  ;;  %3390 = vadd.xlane.f32.xlu1 %v3374_v12  ;;  %v3422_v22 = vpack.c.bf16 %v3375_v52, %v3374_v12  ;;  %v3423_v41 = vpack.c.bf16 %v3377_v34, %v3376_v14  ;;  %v3382_v49 = vmul.f32 %v6270_v54, %v6254_v8  ;;  %v8320_v44 = vmov 0   ;;  %v6065_v8 = vld [vmem:[#allocation13 + $0x80] sm:$0xff]   ;;  %v6084_v52 = vld [vmem:[#allocation11 + $0x1b4] ss:$8 sps:$4 sm:$0xff]   ;;  %v6082_v12 = vld [vmem:[#allocation11 + $0x1b0] ss:$8 sps:$4 sm:$0xff]  }
 0xdc6   : > { %v3424_v55 = vpack.c.bf16 %v3379_v58, %v3378_v16  ;;  %v3425_v6 = vpack.c.bf16 %v3381_v53, %v3380_v29  ;;  %v3383_v48 = vmul.f32 %v6270_v54, %v6256_v11  ;;  %v3384_v10 = vmul.f32 %v6270_v54, %v6258_v30  ;;  %v6066_v11 = vld [vmem:[#allocation13 + $0x88] sm:$0xff]   ;;  %5719 = vmatprep.subr.bf16.mxu1 %v6065_v8  ;;  %v6067_v30 = vld [vmem:[#allocation13 + $0x90] sm:$0xff]  }
 0xdc7   : > { %5703 = vmatprep.mubr.bf16.mxu0 %v3422_v22  ;;  %v3385_v62 = vmul.f32 %v6270_v54, %v6260_v60  ;;  %v3386_v56 = vmul.f32 %v6270_v54, %v6262_v1  ;;  %v3387_v18 = vmul.f32 %v6270_v54, %v6264_v38  ;;  %v3388_v37 = vmul.f32 %v6270_v54, %v6266_v43  ;;  %v6068_v60 = vld [vmem:[#allocation13 + $0x98] sm:$0xff]   ;;  %v6069_v1 = vld [vmem:[#allocation13 + $0xa0] sm:$0xff]   ;;  %v6070_v38 = vld [vmem:[#allocation13 + $0xa8] sm:$0xff]  }
 0xdc8   : > { %5704 = vmatmul.mubr.bf16.vlgmr.msra.gmra.mrb[144].mxu0 %v3423_v41  ;;  %v3426_v59 = vpack.c.bf16 %v3383_v48, %v3382_v49  ;;  %v3389_v47 = vmul.f32 %v6270_v54, %v6268_v40  ;;  %5720 = vmatpush3.bf16.msra.mxu1 %v6065_v8  ;;  %v6071_v43 = vld [vmem:[#allocation13 + $0xb0] sm:$0xff]   ;;  %v6072_v40 = vld [vmem:[#allocation13 + $0xb8] sm:$0xff]   ;;  %v6079_v54 = vld [vmem:[#allocation11 + $0x1a0] ss:$8 sps:$4 sm:$0xff]  }
 0xdc9   : > { %3396 = vadd.xlane.f32.xlu0 %v3377_v34  ;;  %3394 = vadd.xlane.f32.xlu1 %v3376_v14  ;;  %v3427_v45 = vpack.c.bf16 %v3385_v62, %v3384_v10  ;;  %v3428_v51 = vpack.c.bf16 %v3387_v18, %v3386_v56  ;;  %v6087_v14 = vld [vmem:[#allocation11 + $0x1c4] ss:$8 sps:$4 sm:$0xff]   ;;  %v6085_v34 = vld [vmem:[#allocation11 + $0x1c0] ss:$8 sps:$4 sm:$0xff]  }
 0xdca   : > { %5707 = vmatprep.mubr.bf16.mxu0 %v3424_v55  ;;  %v3429_v33 = vpack.c.bf16 %v3389_v47, %v3388_v37  ;;  %5721 = vmatprep.subr.bf16.mxu1 %v6066_v11 }
 0xdcb   : > { %4024 = vmatpush1.bf16.msra.mxu0 %v6073_v20 }
 0xdcc   : > { %5722 = vmatpush3.bf16.msra.mxu1 %v6066_v11  ;;  %4025 = vmatprep.subr.bf16.mxu0 %v6078_v2 }
 0xdcd   : > { %3400 = vadd.xlane.f32.xlu0 %v3379_v58  ;;  %3398 = vadd.xlane.f32.xlu1 %v3378_v16 }
 0xdce   : > { %5723 = vmatprep.subr.bf16.mxu1 %v6067_v30 }
 0xdcf   : > { %4026 = vmatpush1.bf16.msra.mxu0 %v6076_v4 }
 0xdd0   : > { %5708 = vmatmul.mubr.bf16.gmra.mrb[148].mxu0 %v3425_v6  ;;  %5724 = vmatpush3.bf16.msra.mxu1 %v6067_v30 }
 0xdd1   : > { %3404 = vadd.xlane.f32.xlu0 %v3381_v53  ;;  %3402 = vadd.xlane.f32.xlu1 %v3380_v29 }
 0xdd2   : > { %5711 = vmatprep.mubr.bf16.mxu0 %v3426_v59  ;;  %5725 = vmatprep.subr.bf16.mxu1 %v6068_v60 }
 0xdd3   : > { %4027 = vmatprep.subr.bf16.mxu0 %v6081_v31 }
 0xdd4   : > { %5726 = vmatpush3.bf16.msra.mxu1 %v6068_v60  ;;  %4028 = vmatpush1.bf16.msra.mxu0 %v6079_v54 }
 0xdd5   : > { %3408 = vadd.xlane.f32.xlu0 %v3383_v48  ;;  %3406 = vadd.xlane.f32.xlu1 %v3382_v49 }
 0xdd6   : > { %5727 = vmatprep.subr.bf16.mxu1 %v6069_v1  ;;  %4029 = vmatprep.subr.bf16.mxu0 %v6084_v52 }
 0xdd8   : > { %5712 = vmatmul.mubr.bf16.gmra.mrb[152].mxu0 %v3427_v45  ;;  %5728 = vmatpush3.bf16.msra.mxu1 %v6069_v1 }
 0xdd9   : > { %3412 = vadd.xlane.f32.xlu0 %v3385_v62  ;;  %3410 = vadd.xlane.f32.xlu1 %v3384_v10 }
 0xdda   : > { %5715 = vmatprep.mubr.bf16.mxu0 %v3428_v51  ;;  %5729 = vmatprep.subr.bf16.mxu1 %v6070_v38 }
 0xddb   : > { %4030 = vmatpush1.bf16.msra.mxu0 %v6082_v12 }
 0xddc   : > { %5730 = vmatpush3.bf16.msra.mxu1 %v6070_v38  ;;  %4031 = vmatprep.subr.bf16.mxu0 %v6087_v14 }
 0xddd   : > { %3416 = vadd.xlane.f32.xlu0 %v3387_v18  ;;  %3414 = vadd.xlane.f32.xlu1 %v3386_v56 }
 0xdde   : > { %5731 = vmatprep.subr.bf16.mxu1 %v6071_v43 }
 0xddf   : > { %4032 = vmatpush1.bf16.msra.mxu0 %v6085_v34 }
 0xde0   : > { %5716 = vmatmul.mubr.bf16.gmra.mrb[156].mxu0 %v3429_v33  ;;  %5732 = vmatpush3.bf16.msra.mxu1 %v6071_v43 }
 0xde1   : > { %3420 = vadd.xlane.f32.xlu0 %v3389_v47  ;;  %3418 = vadd.xlane.f32.xlu1 %v3388_v37 }
 0xde2   : > { %4055 = vmatprep.mubr.bf16.mxu0 %v8320_v44  ;;  %5733 = vmatprep.subr.bf16.mxu1 %v6072_v40 }
 0xde4   : > { %5734 = vmatpush3.bf16.msra.mxu1 %v6072_v40 }
 0xe52   : > { %v3391_v16 = vpop.xlane.xlu1 %3390  ;;  %v3393_v58 = vpop.xlane.xlu0 %3392 }
 0xe53   : > { %v3535_v48 = vadd.f32 1e-09, %v3391_v16  ;;  %v3536_v62 = vadd.f32 1e-09, %v3393_v58 }
 0xe56   : > { %v3395_v29 = vpop.xlane.xlu1 %3394  ;;  %v3397_v53 = vpop.xlane.xlu0 %3396 }
 0xe57   : > { %v3537_v6 = vadd.f32 1e-09, %v3395_v29  ;;  %v3538_v10 = vadd.f32 1e-09, %v3397_v53 }
 0xe59   : > { %6271 = vrcp.f32 %v3537_v6 }
 0xe5a   : > { %v3399_v22 = vpop.xlane.xlu1 %3398  ;;  %v3401_v41 = vpop.xlane.xlu0 %3400  ;;  %6273 = vrcp.f32 %v3535_v48 }
 0xe5b   : > { %6275 = vrcp.f32 %v3538_v10  ;;  %v3539_v59 = vadd.f32 1e-09, %v3399_v22  ;;  %v3540_v51 = vadd.f32 1e-09, %v3401_v41 }
 0xe5c   : > { %6277 = vrcp.f32 %v3536_v62 }
 0xe5e   : > { %v3403_v49 = vpop.xlane.xlu1 %3402  ;;  %v3405_v55 = vpop.xlane.xlu0 %3404 }
 0xe5f   : > { %v3541_v37 = vadd.f32 1e-09, %v3403_v49  ;;  %v3542_v45 = vadd.f32 1e-09, %v3405_v55 }
 0xe61   : > { %6279 = vrcp.f32 %v3541_v37 }
 0xe62   : > { %v3407_v56 = vpop.xlane.xlu1 %3406  ;;  %v3409_v18 = vpop.xlane.xlu0 %3408  ;;  %6281 = vrcp.f32 %v3539_v59 }
 0xe63   : > { %v6272_v8 = vpop.eup %6271  ;;  %6283 = vrcp.f32 %v3542_v45  ;;  %v3543_v4 = vadd.f32 1e-09, %v3407_v56  ;;  %v3544_v34 = vadd.f32 1e-09, %v3409_v18 }
 0xe64   : > { %v6274_v30 = vpop.eup %6273  ;;  %6285 = vrcp.f32 %v3540_v51 }
 0xe65   : > { %v6276_v43 = vpop.eup %6275 }
 0xe66   : > { %v3411_v47 = vpop.xlane.xlu1 %3410  ;;  %v3413_v33 = vpop.xlane.xlu0 %3412 }
 0xe67   : > { %v3545_v40 = vadd.f32 1e-09, %v3411_v47  ;;  %v6278_v2 = vpop.eup %6277  ;;  %v3546_v12 = vadd.f32 1e-09, %v3413_v33 }
 0xe69   : > { %6287 = vrcp.f32 %v3545_v40 }
 0xe6a   : > { %v3415_v60 = vpop.xlane.xlu1 %3414  ;;  %v3417_v31 = vpop.xlane.xlu0 %3416  ;;  %6289 = vrcp.f32 %v3543_v4 }
 0xe6b   : > { %v6280_v49 = vpop.eup %6279  ;;  %6291 = vrcp.f32 %v3546_v12  ;;  %v3547_v51 = vadd.f32 1e-09, %v3415_v60 }
 0xe6c   : > { %v6282_v48 = vpop.eup %6281  ;;  %6293 = vrcp.f32 %v3544_v34 }
 0xe6d   : > { %v6284_v18 = vpop.eup %6283 }
 0xe6e   : > { %v3419_v22 = vpop.xlane.xlu1 %3418  ;;  %v3421_v10 = vpop.xlane.xlu0 %3420 }
 0xe6f   : > { %v3549_v37 = vadd.f32 1e-09, %v3419_v22  ;;  %v6286_v45 = vpop.eup %6285 }
 0xe71   : > { %6295 = vrcp.f32 %v3549_v37 }
 0xe72   : > { %6297 = vrcp.f32 %v3547_v51 }
 0xe9b   : > { %v5705_v11 = vpop.f32.mrb[144].mxu0 }
 0xe9c   : > { %v3569_v1 = vmul.f32 %v6272_v8, %v5705_v11  ;;  %v3472_v38 = vpop.f32.mrb[145].mxu0  ;;  %v3550_v11 = vadd.f32 1e-09, %v3421_v10 }
 0xe9d   : > { %v3567_v20 = vmul.f32 %v6274_v30, %v3472_v38  ;;  %v5706_v63 = vpop.f32.mrb[146].mxu0 }
 0xe9e   : > { %v3570_v54 = vmul.f32 %v6276_v43, %v5706_v63  ;;  %v3475_v52 = vpop.f32.mrb[147].mxu0  ;;  %v3585_v16 = vsub.f32 %v7553_v7, %v3569_v1  ;;  %v3548_v1 = vadd.f32 1e-09, %v3417_v31  ;;  %6299 = vrcp.f32 %v3550_v11 }
 0xe9f   : > { %v3568_v14 = vmul.f32 %v6278_v2, %v3475_v52  ;;  %v3583_v29 = vsub.f32 %v7535_v21, %v3567_v20  ;;  %v6288_v2 = vpop.eup %6287 }
 0xea0   : > { %v3586_v58 = vsub.f32 %v7548_v23, %v3570_v54  ;;  %v6290_v54 = vpop.eup %6289  ;;  %6301 = vrcp.f32 %v3548_v1 }
 0xea1   : > { %v3584_v53 = vsub.f32 %v7538_v5, %v3568_v14  ;;  %v6292_v31 = vpop.eup %6291 }
 0xea2   : > { %v3617_v41 = vpack.c.bf16 %v3586_v58, %v3585_v16  ;;  %v6294_v16 = vpop.eup %6293 }
 0xea3   : > { %v5709_v55 = vpop.f32.mrb[148].mxu0  ;;  %v3616_v6 = vpack.c.bf16 %v3584_v53, %v3583_v29 }
 0xea4   : > { %v3573_v62 = vmul.f32 %v6280_v49, %v5709_v55  ;;  %v3488_v56 = vpop.f32.mrb[149].mxu0 }
 0xea5   : > { %v3571_v59 = vmul.f32 %v6282_v48, %v3488_v56  ;;  %v5710_v47 = vpop.f32.mrb[150].mxu0  ;;  %5735 = vmatprep.mubr.bf16.mxu1 %v3616_v6  ;;  %v6296_v48 = vpop.eup %6295 }
 0xea6   : > { %v3574_v33 = vmul.f32 %v6284_v18, %v5710_v47  ;;  %v3491_v8 = vpop.f32.mrb[151].mxu0  ;;  %5736 = vmatmul.mubr.bf16.vlgmr.msra.gmra.mrb[96].mxu1 %v3617_v41  ;;  %v3589_v38 = vsub.f32 %v7583_v46, %v3573_v62  ;;  %v6298_v56 = vpop.eup %6297 }
 0xea7   : > { %v3572_v30 = vmul.f32 %v6286_v45, %v3491_v8  ;;  %v3587_v40 = vsub.f32 %v7569_v3, %v3571_v59 }
 0xea8   : > { %v3590_v43 = vsub.f32 %v7578_v15, %v3574_v33  ;;  %v6300_v59 = vpop.eup %6299 }
 0xea9   : > { %v3588_v20 = vsub.f32 %v7564_v35, %v3572_v30 }
 0xeaa   : > { %v3619_v63 = vpack.c.bf16 %v3590_v43, %v3589_v38  ;;  %v6302_v51 = vpop.eup %6301 }
 0xeab   : > { %v5713_v60 = vpop.f32.mrb[152].mxu0  ;;  %v3618_v4 = vpack.c.bf16 %v3588_v20, %v3587_v40 }
 0xeac   : > { %v3577_v52 = vmul.f32 %v6288_v2, %v5713_v60  ;;  %v3504_v12 = vpop.f32.mrb[153].mxu0  ;;  %v6090_v2 = vld [vmem:[#allocation11 + $0x1d4] ss:$8 sps:$4 sm:$0xff]   ;;  %v6093_v60 = vld [vmem:[#allocation11 + $0x1e4] ss:$8 sps:$4 sm:$0xff]  }
 0xead   : > { %v3575_v14 = vmul.f32 %v6290_v54, %v3504_v12  ;;  %v5714_v34 = vpop.f32.mrb[154].mxu0  ;;  %5739 = vmatprep.mubr.bf16.mxu1 %v3618_v4  ;;  %4033 = vmatprep.subr.bf16.mxu0 %v6090_v2  ;;  %v6091_v4 = vld [vmem:[#allocation11 + $0x1e0] ss:$8 sps:$4 sm:$0xff]   ;;  %v6094_v54 = vld [vmem:[#allocation11 + $0x1f0] ss:$8 sps:$4 sm:$0xff]  }
 0xeae   : > { %v3578_v58 = vmul.f32 %v6292_v31, %v5714_v34  ;;  %v3507_v29 = vpop.f32.mrb[155].mxu0  ;;  %5740 = vmatmul.mubr.bf16.gmra.mrb[100].mxu1 %v3619_v63  ;;  %v3593_v22 = vsub.f32 %v7613_v32, %v3577_v52  ;;  %v6088_v63 = vld [vmem:[#allocation11 + $0x1d0] ss:$8 sps:$4 sm:$0xff]   ;;  %v6096_v52 = vld [vmem:[#allocation11 + $0x1f4] ss:$8 sps:$4 sm:$0xff]  }
 0xeaf   : > { %v3576_v53 = vmul.f32 %v6294_v16, %v3507_v29  ;;  %v3591_v49 = vsub.f32 %v7599_v19, %v3575_v14  ;;  %4034 = vmatpush1.bf16.msra.mxu0 %v6088_v63  ;;  %v7741_v12 = vld [vmem:[%s8308_s20 + $0x2] ss:$0 sm:$0xff] }
 0xeb0   : > { %v3594_v41 = vsub.f32 %v7608_v57, %v3578_v58  ;;  %4035 = vmatprep.subr.bf16.mxu0 %v6093_v60  ;;  %v7746_v14 = vld [vmem:[%s8309_s5 + $0x2] ss:$0 sm:$0xff] }
 0xeb1   : > { %v3592_v55 = vsub.f32 %v7594_v0, %v3576_v53  ;;  %v7753_v53 = vld [vmem:[%s8310_s11 + $0x2] ss:$0 sm:$0xff] }
 0xeb2   : > { %v3621_v6 = vpack.c.bf16 %v3594_v41, %v3593_v22 }
 0xeb3   : > { %v5717_v10 = vpop.f32.mrb[156].mxu0  ;;  %v3620_v62 = vpack.c.bf16 %v3592_v55, %v3591_v49  ;;  %4036 = vmatpush1.bf16.msra.mxu0 %v6091_v4 }
 0xeb4   : > { %v3581_v18 = vmul.f32 %v6296_v48, %v5717_v10  ;;  %v3520_v37 = vpop.f32.mrb[157].mxu0  ;;  %4037 = vmatprep.subr.bf16.mxu0 %v6096_v52 }
 0xeb5   : > { %v3579_v47 = vmul.f32 %v6298_v56, %v3520_v37  ;;  %v5718_v45 = vpop.f32.mrb[158].mxu0  ;;  %5743 = vmatprep.mubr.bf16.mxu1 %v3620_v62 }
 0xeb6   : > { %v3582_v33 = vmul.f32 %v6300_v59, %v5718_v45  ;;  %v3523_v8 = vpop.f32.mrb[159].mxu0  ;;  %5744 = vmatmul.mubr.bf16.gmra.mrb[104].mxu1 %v3621_v6  ;;  %v3597_v30 = vsub.f32 %v7637_v13, %v3581_v18 }
 0xeb7   : > { %v3580_v11 = vmul.f32 %v6302_v51, %v3523_v8  ;;  %v3595_v38 = vsub.f32 %v7628_v61, %v3579_v47  ;;  %4038 = vmatpush1.bf16.msra.mxu0 %v6094_v54 }
 0xeb8   : > { %v3598_v1 = vsub.f32 %v7634_v26, %v3582_v33 }
 0xeb9   : > { %v3596_v43 = vsub.f32 %v7624_v17, %v3580_v11 }
 0xeba   : > { %v3623_v40 = vpack.c.bf16 %v3598_v1, %v3597_v30 }
 0xebb   : > { %v3622_v20 = vpack.c.bf16 %v3596_v43, %v3595_v38 }
 0xebd   : > { %5747 = vmatprep.mubr.bf16.mxu1 %v3622_v20 }
 0xebe   : > { %5748 = vmatmul.mubr.bf16.gmra.mrb[108].mxu1 %v3623_v40 }
 0xf79   : > { %v5737_v31 = vpop.f32.mrb[96].mxu1 }
 0xf7a   : > { %v3714_v34 = vpop.f32.mrb[97].mxu1  ;;  %v3723_v29 = vadd.f32 %v5737_v31, %v7741_v12 }
 0xf7b   : > { %v3715_v16 = vadd.f32 %v7741_v12, %v3714_v34  ;;  %v5738_v58 = vpop.f32.mrb[98].mxu1 }
 0xf7c   : > { %v3726_v22 = vadd.f32 %v5738_v58, %v7741_v12  ;;  %v3717_v41 = vpop.f32.mrb[99].mxu1  ;;  %v3787_v62 = vmul.f32 %v7746_v14, %v3723_v29 }
 0xf7d   : > { %v3785_v49 = vmul.f32 %v7746_v14, %v3715_v16  ;;  %v3718_v55 = vadd.f32 %v7741_v12, %v3717_v41 }
 0xf7e   : > { %v3788_v48 = vmul.f32 %v7746_v14, %v3726_v22  ;;  %v3811_v33 = vadd.f32 %v7753_v53, %v3787_v62 }
 0xf7f   : > { %v3809_v6 = vadd.f32 %v7753_v53, %v3785_v49  ;;  %v3786_v10 = vmul.f32 %v7746_v14, %v3718_v55 }
 0xf80   : > { %v3812_v47 = vadd.f32 %v7753_v53, %v3788_v48  ;;  %v3827_v63 = vmax.f32 %v3811_v33, 0.0 }
 0xf81   : > { %v3825_v56 = vmax.f32 %v3809_v6, 0.0  ;;  %v3810_v18 = vadd.f32 %v7753_v53, %v3786_v10  ;;  %v5741_v37 = vpop.f32.mrb[100].mxu1 }
 0xf82   : > { %v3730_v59 = vpop.f32.mrb[101].mxu1  ;;  %v3828_v43 = vmax.f32 %v3812_v47, 0.0  ;;  %v7784_v58 = vadd.f32 %v3827_v63, %v7553_v7  ;;  %v3739_v29 = vadd.f32 %v5741_v37, %v7741_v12 }
 0xf83   : > { %v3826_v45 = vmax.f32 %v3810_v18, 0.0  ;;  %v5742_v51 = vpop.f32.mrb[102].mxu1  ;;  %v7766_v11 = vadd.f32 %v3825_v56, %v7535_v21  ;;  %v3731_v1 = vadd.f32 %v7741_v12, %v3730_v59 }
 0xf84   : > { %v3733_v8 = vpop.f32.mrb[103].mxu1  ;;  %v7779_v54 = vadd.f32 %v3828_v43, %v7548_v23  ;;  %v3742_v52 = vadd.f32 %v5742_v51, %v7741_v12  ;;  %8322 = vst [vmem:[#allocation30_spill] sm:$0xff] %v7784_v58  ;;  %v3791_v6 = vmul.f32 %v7746_v14, %v3739_v29 }
 0xf85   : > { %v7769_v30 = vadd.f32 %v3826_v45, %v7538_v5  ;;  %v3734_v38 = vadd.f32 %v7741_v12, %v3733_v8  ;;  %v3789_v2 = vmul.f32 %v7746_v14, %v3731_v1 }
 0xf86   : > { %8321 = vst [vmem:[#allocation29_spill] sm:$0xff] %v7779_v54  ;;  %v3792_v41 = vmul.f32 %v7746_v14, %v3742_v52  ;;  %v3923_v55 = vpack.c.bf16 %v7779_v54, %v7784_v58  ;;  %v3815_v45 = vadd.f32 %v7753_v53, %v3791_v6 }
 0xf87   : > { %v3790_v40 = vmul.f32 %v7746_v14, %v3734_v38  ;;  %v3922_v20 = vpack.c.bf16 %v7769_v30, %v7766_v11  ;;  %v3813_v22 = vadd.f32 %v7753_v53, %v3789_v2 }
 0xf88   : > { %v3816_v56 = vadd.f32 %v7753_v53, %v3792_v41  ;;  %v3831_v43 = vmax.f32 %v3815_v45, 0.0 }
 0xf89   : > { %v5745_v60 = vpop.f32.mrb[104].mxu1  ;;  %4056 = vmatmul.mubr.bf16.vlgmr.msra.gmra.mrb[160].mxu0 %v3922_v20  ;;  %v3814_v31 = vadd.f32 %v7753_v53, %v3790_v40  ;;  %v3829_v48 = vmax.f32 %v3813_v22, 0.0 }
 0xf8a   : > { %v3746_v4 = vpop.f32.mrb[105].mxu1  ;;  %4065 = vmatprep.mubr.bf16.mxu0 %v8320_v44  ;;  %v3832_v8 = vmax.f32 %v3816_v56, 0.0  ;;  %v3755_v52 = vadd.f32 %v5745_v60, %v7741_v12 }
 0xf8b   : > { %v5746_v34 = vpop.f32.mrb[106].mxu1  ;;  %v3830_v49 = vmax.f32 %v3814_v31, 0.0  ;;  %v7800_v51 = vadd.f32 %v3829_v48, %v7569_v3  ;;  %v3747_v33 = vadd.f32 %v7741_v12, %v3746_v4  ;;  %v7814_v4 = vadd.f32 %v3831_v43, %v7583_v46 }
 0xf8c   : > { %v3749_v16 = vpop.f32.mrb[107].mxu1  ;;  %v7809_v20 = vadd.f32 %v3832_v8, %v7578_v15  ;;  %v3758_v63 = vadd.f32 %v5746_v34, %v7741_v12  ;;  %v3795_v41 = vmul.f32 %v7746_v14, %v3755_v52 }
 0xf8d   : > { %v7795_v18 = vadd.f32 %v3830_v49, %v7564_v35  ;;  %v3750_v37 = vadd.f32 %v7741_v12, %v3749_v16  ;;  %8324 = vst [vmem:[#allocation32_spill] sm:$0xff] %v7800_v51  ;;  %v3793_v40 = vmul.f32 %v7746_v14, %v3747_v33  ;;  %8326 = vst [vmem:[#allocation34_spill] sm:$0xff] %v7814_v4 }
 0xf8e   : > { %8325 = vst [vmem:[#allocation33_spill] sm:$0xff] %v7809_v20  ;;  %v3796_v16 = vmul.f32 %v7746_v14, %v3758_v63  ;;  %v3925_v22 = vpack.c.bf16 %v7809_v20, %v7814_v4  ;;  %v3819_v6 = vadd.f32 %v7753_v53, %v3795_v41 }
 0xf8f   : > { %8323 = vst [vmem:[#allocation31_spill] sm:$0xff] %v7795_v18  ;;  %v3794_v1 = vmul.f32 %v7746_v14, %v3750_v37  ;;  %v3924_v38 = vpack.c.bf16 %v7795_v18, %v7800_v51  ;;  %v3817_v31 = vadd.f32 %v7753_v53, %v3793_v40 }
 0xf90   : > { %v3820_v34 = vadd.f32 %v7753_v53, %v3796_v16  ;;  %v3835_v8 = vmax.f32 %v3819_v6, 0.0  ;;  %v5137_v6 = vld [vmem:[%s8307_s10 + $0x6] sm:$0x3] }
 0xf91   : > { %v5749_v10 = vpop.f32.mrb[108].mxu1  ;;  %4066 = vmatmul.mubr.bf16.gmra.mrb[164].mxu0 %v3923_v55  ;;  %v3818_v2 = vadd.f32 %v7753_v53, %v3794_v1  ;;  %v3833_v49 = vmax.f32 %v3817_v31, 0.0 }
 0xf92   : > { %v3762_v62 = vpop.f32.mrb[109].mxu1  ;;  %4075 = vmatprep.mubr.bf16.mxu0 %v8320_v44  ;;  %v3836_v37 = vmax.f32 %v3820_v34, 0.0  ;;  %v3771_v40 = vadd.f32 %v5749_v10, %v7741_v12 }
 0xf93   : > { %v5750_v59 = vpop.f32.mrb[110].mxu1  ;;  %v3834_v29 = vmax.f32 %v3818_v2, 0.0  ;;  %v7830_v48 = vadd.f32 %v3833_v49, %v7599_v19  ;;  %v3763_v56 = vadd.f32 %v7741_v12, %v3762_v62  ;;  %v7844_v62 = vadd.f32 %v3835_v8, %v7613_v32 }
 0xf94   : > { %v3765_v47 = vpop.f32.mrb[111].mxu1  ;;  %v3799_v16 = vmul.f32 %v7746_v14, %v3771_v40 }
 0xf95   : > { %v7825_v55 = vadd.f32 %v3834_v29, %v7594_v0  ;;  %v3766_v60 = vadd.f32 %v7741_v12, %v3765_v47  ;;  %8328 = vst [vmem:[#allocation36_spill] sm:$0xff] %v7830_v48  ;;  %v3797_v1 = vmul.f32 %v7746_v14, %v3763_v56  ;;  %v7839_v47 = vadd.f32 %v3836_v37, %v7608_v57 }
 0xf96   : > { %8330 = vst [vmem:[#allocation38_spill] sm:$0xff] %v7844_v62  ;;  %v7876_v56 = vrot.slane %v5137_v6, %v7175_v27 }
 0xf97   : > { %8327 = vst [vmem:[#allocation35_spill] sm:$0xff] %v7825_v55  ;;  %v3798_v45 = vmul.f32 %v7746_v14, %v3766_v60  ;;  %v3926_v33 = vpack.c.bf16 %v7825_v55, %v7830_v48  ;;  %8329 = vst [vmem:[#allocation37_spill] sm:$0xff] %v7839_v47  ;;  %v3821_v63 = vadd.f32 %v7753_v53, %v3797_v1 }
 0xf98   : > { %v3927_v31 = vpack.c.bf16 %v7839_v47, %v7844_v62 }
 0xf99   : > { %4076 = vmatmul.mubr.bf16.gmra.mrb[168].mxu0 %v3924_v38  ;;  %v3774_v38 = vadd.f32 %v5750_v59, %v7741_v12  ;;  %v3822_v43 = vadd.f32 %v7753_v53, %v3798_v45  ;;  %v3837_v29 = vmax.f32 %v3821_v63, 0.0  ;;  %v3823_v12 = vadd.f32 %v7753_v53, %v3799_v16 }
 0xf9a   : > { %4085 = vmatprep.mubr.bf16.mxu0 %v8320_v44 }
 0xf9b   : > { %v3800_v2 = vmul.f32 %v7746_v14, %v3774_v38  ;;  %v3838_v52 = vmax.f32 %v3822_v43, 0.0  ;;  %v7859_v10 = vadd.f32 %v3837_v29, %v7628_v61  ;;  %v3839_v34 = vmax.f32 %v3823_v12, 0.0 }
 0xf9d   : > { %v3824_v59 = vadd.f32 %v7753_v53, %v3800_v2  ;;  %8332 = vst [vmem:[#allocation40_spill] sm:$0xff] %v7859_v10  ;;  %v7868_v60 = vadd.f32 %v3839_v34, %v7637_v13 }
 0xf9f   : > { %v3840_v41 = vmax.f32 %v3824_v59, 0.0  ;;  %8334 = vst [vmem:[#allocation42_spill] sm:$0xff] %v7868_v60 }
 0xfa1   : > { %4086 = vmatmul.mubr.bf16.gmra.mrb[172].mxu0 %v3925_v22  ;;  %v7855_v22 = vadd.f32 %v3838_v52, %v7624_v17  ;;  %v7865_v14 = vadd.f32 %v3840_v41, %v7634_v26 }
 0xfa2   : > { %4095 = vmatprep.mubr.bf16.mxu0 %v8320_v44 }
 0xfa3   : > { %8331 = vst [vmem:[#allocation39_spill] sm:$0xff] %v7855_v22  ;;  %v3928_v49 = vpack.c.bf16 %v7855_v22, %v7859_v10  ;;  %8333 = vst [vmem:[#allocation41_spill] sm:$0xff] %v7865_v14  ;;  %v3929_v53 = vpack.c.bf16 %v7865_v14, %v7868_v60 }
 0xfa9   : > { %4096 = vmatmul.mubr.bf16.gmra.mrb[176].mxu0 %v3926_v33 }
 0xfaa   : > { %4105 = vmatprep.mubr.bf16.mxu0 %v8320_v44 }
 0xfb1   : > { %4106 = vmatmul.mubr.bf16.gmra.mrb[180].mxu0 %v3927_v31 }
 0xfb2   : > { %4115 = vmatprep.mubr.bf16.mxu0 %v8320_v44 }
 0xfb9   : > { %4116 = vmatmul.mubr.bf16.gmra.mrb[184].mxu0 %v3928_v49 }
 0xfba   : > { %4125 = vmatprep.mubr.bf16.mxu0 %v8320_v44  ;;  %v7879_v44 = vrot.slane %v5137_v6, %v7180_v28 }
 0xfc1   : > { %4126 = vmatmul.mubr.bf16.gmra.mrb[188].mxu0 %v3929_v53 }
0x105c   : > { %v4057_v37 = vpop.f32.mrb[160].mxu0 }
0x105d   : > { %v4059_v45 = vpop.f32.mrb[161].mxu0  ;;  %v4058_v8 = vadd.f32 %v4057_v37, %v7876_v56 }
0x105e   : > { %v4061_v33 = vpop.f32.mrb[162].mxu0  ;;  %v4060_v43 = vadd.f32 %v4059_v45, %v7879_v44 }
0x105f   : > { %v4062_v1 = vadd.f32 %v4061_v33, %v7876_v56  ;;  %v4063_v38 = vpop.f32.mrb[163].mxu0 }
0x1060   : > { %v4064_v40 = vadd.f32 %v4063_v38, %v7879_v44 }
0x1061   : > { %v4136_v63 = vpack.c.bf16 %v4062_v1, %v4058_v8 }
0x1062   : > { %v4388_v2 = vpack.c.bf16 %v4064_v40, %v4060_v43 }
0x1063   : > { %5751 = vmatprep.subr.bf16.mxu1 %v4136_v63  ;;  %5767 = vmatprep.mubr.bf16.mxu1 %v4136_v63 }
0x1064   : > { %v4067_v27 = vpop.f32.mrb[164].mxu0  ;;  %5752 = vmatpush3.bf16.xpose.msra.mxu1 %v4136_v63  ;;  %5783 = vmatprep.subr.bf16.mxu0 %v4388_v2 }
0x1065   : > { %v4069_v28 = vpop.f32.mrb[165].mxu0  ;;  %5784 = vmatpush3.bf16.msra.mxu0 %v4388_v2  ;;  %v4068_v31 = vadd.f32 %v4067_v27, %v7876_v56 }
0x1066   : > { %v4071_v52 = vpop.f32.mrb[166].mxu0  ;;  %v4070_v59 = vadd.f32 %v4069_v28, %v7879_v44 }
0x1067   : > { %v4072_v16 = vadd.f32 %v4071_v52, %v7876_v56  ;;  %v4073_v29 = vpop.f32.mrb[167].mxu0 }
0x1068   : > { %v4074_v12 = vadd.f32 %v4073_v29, %v7879_v44 }
0x1069   : > { %v7889_v41 = vpack.c.bf16 %v4072_v16, %v4068_v31 }
0x106a   : > { %v4389_v49 = vpack.c.bf16 %v4074_v12, %v4070_v59 }
0x106b   : > { %5753 = vmatprep.subr.bf16.mxu1 %v7889_v41 }
0x106c   : > { %v4077_v34 = vpop.f32.mrb[168].mxu0  ;;  %5754 = vmatpush3.bf16.xpose.msra.mxu1 %v7889_v41  ;;  %5785 = vmatprep.subr.bf16.mxu0 %v4389_v49 }
0x106d   : > { %v4079_v53 = vpop.f32.mrb[169].mxu0  ;;  %5786 = vmatpush3.bf16.msra.mxu0 %v4389_v49  ;;  %v4078_v37 = vadd.f32 %v4077_v34, %v7876_v56 }
0x106e   : > { %v4081_v6 = vpop.f32.mrb[170].mxu0  ;;  %v4080_v8 = vadd.f32 %v4079_v53, %v7879_v44 }
0x106f   : > { %v4082_v45 = vadd.f32 %v4081_v6, %v7876_v56  ;;  %v4083_v33 = vpop.f32.mrb[171].mxu0 }
0x1070   : > { %v4084_v1 = vadd.f32 %v4083_v33, %v7879_v44 }
0x1071   : > { %v7897_v38 = vpack.c.bf16 %v4082_v45, %v4078_v37 }
0x1072   : > { %v4390_v43 = vpack.c.bf16 %v4084_v1, %v4080_v8 }
0x1073   : > { %5755 = vmatprep.subr.bf16.mxu1 %v7897_v38 }
0x1074   : > { %v4087_v40 = vpop.f32.mrb[172].mxu0  ;;  %5756 = vmatpush3.bf16.xpose.msra.mxu1 %v7897_v38  ;;  %5787 = vmatprep.subr.bf16.mxu0 %v4390_v43 }
0x1075   : > { %v4089_v63 = vpop.f32.mrb[173].mxu0  ;;  %5788 = vmatpush3.bf16.msra.mxu0 %v4390_v43  ;;  %v4088_v27 = vadd.f32 %v4087_v40, %v7876_v56 }
0x1076   : > { %v4091_v2 = vpop.f32.mrb[174].mxu0  ;;  %v4090_v31 = vadd.f32 %v4089_v63, %v7879_v44 }
0x1077   : > { %v4092_v28 = vadd.f32 %v4091_v2, %v7876_v56  ;;  %v4093_v52 = vpop.f32.mrb[175].mxu0 }
0x1078   : > { %v4094_v16 = vadd.f32 %v4093_v52, %v7879_v44 }
0x1079   : > { %v7905_v29 = vpack.c.bf16 %v4092_v28, %v4088_v27 }
0x107a   : > { %v4391_v59 = vpack.c.bf16 %v4094_v16, %v4090_v31 }
0x107b   : > { %5757 = vmatprep.subr.bf16.mxu1 %v7905_v29 }
0x107c   : > { %v4097_v12 = vpop.f32.mrb[176].mxu0  ;;  %5758 = vmatpush3.bf16.xpose.msra.mxu1 %v7905_v29  ;;  %5789 = vmatprep.subr.bf16.mxu0 %v4391_v59 }
0x107d   : > { %v4099_v49 = vpop.f32.mrb[177].mxu0  ;;  %5790 = vmatpush3.bf16.msra.mxu0 %v4391_v59  ;;  %v4098_v53 = vadd.f32 %v4097_v12, %v7876_v56 }
0x107e   : > { %v4101_v34 = vpop.f32.mrb[178].mxu0  ;;  %v4100_v45 = vadd.f32 %v4099_v49, %v7879_v44 }
0x107f   : > { %v4102_v6 = vadd.f32 %v4101_v34, %v7876_v56  ;;  %v4103_v37 = vpop.f32.mrb[179].mxu0 }
0x1080   : > { %v4104_v33 = vadd.f32 %v4103_v37, %v7879_v44 }
0x1081   : > { %v4140_v8 = vpack.c.bf16 %v4102_v6, %v4098_v53 }
0x1082   : > { %v4392_v1 = vpack.c.bf16 %v4104_v33, %v4100_v45 }
0x1083   : > { %5759 = vmatprep.subr.bf16.mxu1 %v4140_v8 }
0x1084   : > { %v4107_v43 = vpop.f32.mrb[180].mxu0  ;;  %5760 = vmatpush3.bf16.xpose.msra.mxu1 %v4140_v8  ;;  %5791 = vmatprep.subr.bf16.mxu0 %v4392_v1 }
0x1085   : > { %v4109_v40 = vpop.f32.mrb[181].mxu0  ;;  %5792 = vmatpush3.bf16.msra.mxu0 %v4392_v1  ;;  %v4108_v2 = vadd.f32 %v4107_v43, %v7876_v56 }
0x1086   : > { %v4111_v63 = vpop.f32.mrb[182].mxu0  ;;  %v4110_v52 = vadd.f32 %v4109_v40, %v7879_v44 }
0x1087   : > { %v4112_v27 = vadd.f32 %v4111_v63, %v7876_v56  ;;  %v4113_v28 = vpop.f32.mrb[183].mxu0 }
0x1088   : > { %v4114_v31 = vadd.f32 %v4113_v28, %v7879_v44 }
0x1089   : > { %v4141_v16 = vpack.c.bf16 %v4112_v27, %v4108_v2 }
0x108a   : > { %v4393_v59 = vpack.c.bf16 %v4114_v31, %v4110_v52 }
0x108b   : > { %5761 = vmatprep.subr.bf16.mxu1 %v4141_v16 }
0x108c   : > { %v4117_v12 = vpop.f32.mrb[184].mxu0  ;;  %5762 = vmatpush3.bf16.xpose.msra.mxu1 %v4141_v16  ;;  %5793 = vmatprep.subr.bf16.mxu0 %v4393_v59 }
0x108d   : > { %v4119_v49 = vpop.f32.mrb[185].mxu0  ;;  %5794 = vmatpush3.bf16.msra.mxu0 %v4393_v59  ;;  %v4118_v53 = vadd.f32 %v4117_v12, %v7876_v56 }
0x108e   : > { %v4121_v34 = vpop.f32.mrb[186].mxu0  ;;  %v4120_v45 = vadd.f32 %v4119_v49, %v7879_v44 }
0x108f   : > { %v4122_v6 = vadd.f32 %v4121_v34, %v7876_v56  ;;  %v4123_v37 = vpop.f32.mrb[187].mxu0 }
0x1090   : > { %v4124_v33 = vadd.f32 %v4123_v37, %v7879_v44 }
0x1091   : > { %v4142_v1 = vpack.c.bf16 %v4122_v6, %v4118_v53 }
0x1092   : > { %v4394_v43 = vpack.c.bf16 %v4124_v33, %v4120_v45 }
0x1093   : > { %5763 = vmatprep.subr.bf16.mxu1 %v4142_v1 }
0x1094   : > { %v4127_v40 = vpop.f32.mrb[188].mxu0  ;;  %5764 = vmatpush3.bf16.xpose.msra.mxu1 %v4142_v1  ;;  %5795 = vmatprep.subr.bf16.mxu0 %v4394_v43 }
0x1095   : > { %v4129_v63 = vpop.f32.mrb[189].mxu0  ;;  %5796 = vmatpush3.bf16.msra.mxu0 %v4394_v43  ;;  %v4128_v27 = vadd.f32 %v4127_v40, %v7876_v56 }
0x1096   : > { %v4131_v2 = vpop.f32.mrb[190].mxu0  ;;  %v4130_v31 = vadd.f32 %v4129_v63, %v7879_v44 }
0x1097   : > { %v4132_v28 = vadd.f32 %v4131_v2, %v7876_v56  ;;  %v4133_v52 = vpop.f32.mrb[191].mxu0 }
0x1098   : > { %v4134_v59 = vadd.f32 %v4133_v52, %v7879_v44 }
0x1099   : > { %v4143_v12 = vpack.c.bf16 %v4132_v28, %v4128_v27 }
0x109a   : > { %v4395_v49 = vpack.c.bf16 %v4134_v59, %v4130_v31 }
0x109b   : > { %5765 = vmatprep.subr.bf16.mxu1 %v4143_v12 }
0x109c   : > { %5766 = vmatpush3.bf16.xpose.msra.mxu1 %v4143_v12  ;;  %5797 = vmatprep.subr.bf16.mxu0 %v4395_v49 }
0x109d   : > { %5798 = vmatpush3.bf16.msra.mxu0 %v4395_v49 }
0x10a3   : > { %5768 = vmatmul.mubr.bf16.vlgmr.msra.gmra.mrb[112].mxu1 %v7889_v41 }
0x10a4   : > { %5771 = vmatprep.mubr.bf16.mxu1 %v7897_v38 }
0x10ab   : > { %5772 = vmatmul.mubr.bf16.gmra.mrb[116].mxu1 %v7905_v29 }
0x10ac   : > { %5775 = vmatprep.mubr.bf16.mxu1 %v4140_v8 }
0x10b3   : > { %5776 = vmatmul.mubr.bf16.gmra.mrb[120].mxu1 %v4141_v16 }
0x10b4   : > { %5779 = vmatprep.mubr.bf16.mxu1 %v4142_v1 }
0x10bb   : > { %5780 = vmatmul.mubr.bf16.gmra.mrb[124].mxu1 %v4143_v12 }
0x1176   : > { %v5769_v56 = vpop.f32.mrb[112].mxu1 }
0x1177   : > { %v4178_v34 = vpop.f32.mrb[113].mxu1 }
0x1178   : > { %v5770_v53 = vpop.f32.mrb[114].mxu1 }
0x1179   : > { %v4181_v44 = vpop.f32.mrb[115].mxu1 }
0x117e   : > { %v5773_v6 = vpop.f32.mrb[116].mxu1 }
0x117f   : > { %v4243_v37 = vmax.f32 %v5769_v56, %v5773_v6  ;;  %v4194_v45 = vpop.f32.mrb[117].mxu1 }
0x1180   : > { %v4241_v33 = vmax.f32 %v4178_v34, %v4194_v45  ;;  %v5774_v43 = vpop.f32.mrb[118].mxu1 }
0x1181   : > { %v4244_v40 = vmax.f32 %v5770_v53, %v5774_v43  ;;  %v4197_v63 = vpop.f32.mrb[119].mxu1 }
0x1182   : > { %v4242_v41 = vmax.f32 %v4181_v44, %v4197_v63 }
0x1186   : > { %v7928_v2 = vpop.f32.mrb[120].mxu1 }
0x1187   : > { %v4247_v38 = vmax.f32 %v4243_v37, %v7928_v2  ;;  %v4210_v29 = vpop.f32.mrb[121].mxu1 }
0x1188   : > { %v4245_v8 = vmax.f32 %v4241_v33, %v4210_v29  ;;  %v7931_v16 = vpop.f32.mrb[122].mxu1 }
0x1189   : > { %v4248_v1 = vmax.f32 %v4244_v40, %v7931_v16  ;;  %v4213_v27 = vpop.f32.mrb[123].mxu1 }
0x118a   : > { %v4246_v28 = vmax.f32 %v4242_v41, %v4213_v27 }
0x118e   : > { %v7934_v52 = vpop.f32.mrb[124].mxu1 }
0x118f   : > { %v4251_v31 = vmax.f32 %v4247_v38, %v7934_v52  ;;  %v7937_v59 = vpop.f32.mrb[125].mxu1 }
0x1190   : > { %v4249_v12 = vmax.f32 %v4245_v8, %v7937_v59  ;;  %v7940_v49 = vpop.f32.mrb[126].mxu1 }
0x1191   : > { %v4252_v37 = vmax.f32 %v4248_v1, %v7940_v49  ;;  %v7943_v14 = vpop.f32.mrb[127].mxu1 }
0x1192   : > { %v4250_v33 = vmax.f32 %v4246_v28, %v7943_v14 }
0x1193   : > { %v4254_v60 = vmax.f32 %v4251_v31, %v4252_v37 }
0x1194   : > { %v4253_v40 = vmax.f32 %v4249_v12, %v4250_v33 }
0x1196   : > { %v4255_v22 = vmax.f32 %v4253_v40, %v4254_v60 }
0x1198   : > { %v4256_v41 = vrot.slane %v4255_v22, 4 }
0x119a   : > { %v4257_v10 = vmax.f32 %v4255_v22, %v4256_v41 }
0x119c   : > { %v4258_v47 = vrot.slane %v4257_v10, 2 }
0x119e   : > { %v4259_v62 = vmax.f32 %v4257_v10, %v4258_v47 }
0x11a0   : > { %v4260_v38 = vrot.slane %v4259_v62, 1 }
0x11a2   : > { %v4261_v55 = vmax.f32 %v4259_v62, %v4260_v38 }
0x11a4   : > { %v4275_v48 = vsub.f32 %v7943_v14, %v4261_v55  ;;  %v4262_v8 = vsub.f32 %v4178_v34, %v4261_v55  ;;  %v4263_v20 = vsub.f32 %v4181_v44, %v4261_v55  ;;  %v4264_v4 = vsub.f32 %v5769_v56, %v4261_v55 }
0x11a5   : > { %v4265_v18 = vsub.f32 %v5770_v53, %v4261_v55  ;;  %v4266_v1 = vsub.f32 %v4194_v45, %v4261_v55  ;;  %v4267_v51 = vsub.f32 %v4197_v63, %v4261_v55  ;;  %v4268_v54 = vsub.f32 %v5773_v6, %v4261_v55 }
0x11a6   : > { %v4269_v58 = vsub.f32 %v5774_v43, %v4261_v55  ;;  %v4270_v28 = vsub.f32 %v4210_v29, %v4261_v55  ;;  %v4271_v31 = vsub.f32 %v4213_v27, %v4261_v55  ;;  %v4272_v60 = vsub.f32 %v7928_v2, %v4261_v55 }
0x11a7   : > { %v4273_v22 = vsub.f32 %v7931_v16, %v4261_v55  ;;  %v4274_v47 = vsub.f32 %v7937_v59, %v4261_v55  ;;  %v4276_v62 = vsub.f32 %v7934_v52, %v4261_v55  ;;  %v4277_v10 = vsub.f32 %v7940_v49, %v4261_v55 }
0x11a8   : > { %v4278_v14 = vmul.f32 1.442695, %v4262_v8  ;;  %v4280_v34 = vmul.f32 1.442695, %v4263_v20  ;;  %v4282_v56 = vmul.f32 1.442695, %v4264_v4 }
0x11a9   : > { %v4284_v53 = vmul.f32 1.442695, %v4265_v18  ;;  %v4286_v44 = vmul.f32 1.442695, %v4266_v1  ;;  %v4288_v6 = vmul.f32 1.442695, %v4267_v51 }
0x11aa   : > { %6303 = vpow2.f32 %v4278_v14  ;;  %v4290_v45 = vmul.f32 1.442695, %v4268_v54  ;;  %v4292_v43 = vmul.f32 1.442695, %v4269_v58  ;;  %v4294_v29 = vmul.f32 1.442695, %v4270_v28 }
0x11ab   : > { %6305 = vpow2.f32 %v4280_v34  ;;  %v4296_v20 = vmul.f32 1.442695, %v4271_v31  ;;  %v4298_v18 = vmul.f32 1.442695, %v4272_v60  ;;  %v4300_v51 = vmul.f32 1.442695, %v4273_v22 }
0x11ac   : > { %6307 = vpow2.f32 %v4282_v56  ;;  %v4302_v58 = vmul.f32 1.442695, %v4274_v47  ;;  %v4304_v33 = vmul.f32 1.442695, %v4275_v48  ;;  %v4306_v38 = vmul.f32 1.442695, %v4276_v62 }
0x11ad   : > { %6309 = vpow2.f32 %v4284_v53  ;;  %v4308_v28 = vmul.f32 1.442695, %v4277_v10 }
0x11ae   : > { %6311 = vpow2.f32 %v4286_v44 }
0x11af   : > { %6313 = vpow2.f32 %v4288_v6 }
0x11b0   : > { %6315 = vpow2.f32 %v4290_v45 }
0x11b1   : > { %6317 = vpow2.f32 %v4292_v43 }
0x11b2   : > { %6319 = vpow2.f32 %v4294_v29 }
0x11b3   : > { %6321 = vpow2.f32 %v4296_v20 }
0x11b4   : > { %v6304_v63 = vpop.eup %6303  ;;  %6323 = vpow2.f32 %v4298_v18 }
0x11b5   : > { %v6306_v2 = vpop.eup %6305  ;;  %6325 = vpow2.f32 %v4300_v51 }
0x11b6   : > { %v4310_v16 = vadd.f32 %v6306_v2, %v6304_v63  ;;  %v6308_v55 = vpop.eup %6307  ;;  %6327 = vpow2.f32 %v4302_v58 }
0x11b7   : > { %v6310_v27 = vpop.eup %6309  ;;  %6329 = vpow2.f32 %v4304_v33 }
0x11b8   : > { %v4311_v4 = vadd.f32 %v6308_v55, %v4310_v16  ;;  %v6312_v59 = vpop.eup %6311  ;;  %6331 = vpow2.f32 %v4306_v38 }
0x11b9   : > { %v6314_v54 = vpop.eup %6313  ;;  %6333 = vpow2.f32 %v4308_v28 }
0x11ba   : > { %v4312_v52 = vadd.f32 %v6310_v27, %v4311_v4  ;;  %v6316_v37 = vpop.eup %6315 }
0x11bb   : > { %v6318_v41 = vpop.eup %6317 }
0x11bc   : > { %v4313_v12 = vadd.f32 %v6312_v59, %v4312_v52  ;;  %v6320_v1 = vpop.eup %6319 }
0x11bd   : > { %v6322_v60 = vpop.eup %6321 }
0x11be   : > { %v4314_v49 = vadd.f32 %v6314_v54, %v4313_v12  ;;  %v6324_v14 = vpop.eup %6323 }
0x11bf   : > { %v6326_v47 = vpop.eup %6325 }
0x11c0   : > { %v4315_v40 = vadd.f32 %v6316_v37, %v4314_v49  ;;  %v6328_v53 = vpop.eup %6327 }
0x11c1   : > { %v6330_v44 = vpop.eup %6329 }
0x11c2   : > { %v4316_v8 = vadd.f32 %v6318_v41, %v4315_v40  ;;  %v6332_v45 = vpop.eup %6331 }
0x11c3   : > { %v6334_v62 = vpop.eup %6333 }
0x11c4   : > { %v4317_v31 = vadd.f32 %v6320_v1, %v4316_v8 }
0x11c6   : > { %v4318_v22 = vadd.f32 %v6322_v60, %v4317_v31 }
0x11c8   : > { %v4319_v34 = vadd.f32 %v6324_v14, %v4318_v22 }
0x11ca   : > { %v4320_v56 = vadd.f32 %v6326_v47, %v4319_v34 }
0x11cc   : > { %v4321_v48 = vadd.f32 %v6328_v53, %v4320_v56 }
0x11ce   : > { %v4322_v6 = vadd.f32 %v6330_v44, %v4321_v48 }
0x11d0   : > { %v4323_v43 = vadd.f32 %v6332_v45, %v4322_v6 }
0x11d2   : > { %v4324_v29 = vadd.f32 %v6334_v62, %v4323_v43 }
0x11d4   : > { %v4325_v16 = vrot.slane %v4324_v29, 4 }
0x11d6   : > { %v4326_v20 = vadd.f32 %v4325_v16, %v4324_v29 }
0x11d8   : > { %v4327_v10 = vrot.slane %v4326_v20, 2 }
0x11da   : > { %v4328_v4 = vadd.f32 %v4327_v10, %v4326_v20  ;;  %v8355_v20 = vld [vmem:[#allocation39_spill] sm:$0xff] }
0x11dc   : > { %v4329_v18 = vrot.slane %v4328_v4, 1 }
0x11de   : > { %v4330_v52 = vadd.f32 %v4329_v18, %v4328_v4  ;;  %v8356_v18 = vld [vmem:[#allocation42_spill] sm:$0xff] }
0x11e0   : > { %6335 = vrcp.f32 %v4330_v52 }
0x11ea   : > { %v6336_v51 = vpop.eup %6335 }
0x11eb   : > { %v4333_v12 = vmul.f32 %v6336_v51, %v6306_v2  ;;  %v4332_v58 = vmul.f32 %v6336_v51, %v6304_v63  ;;  %v4334_v49 = vmul.f32 %v6336_v51, %v6308_v55  ;;  %v4335_v33 = vmul.f32 %v6336_v51, %v6310_v27 }
0x11ec   : > { %v4336_v40 = vmul.f32 %v6336_v51, %v6312_v59  ;;  %v4337_v38 = vmul.f32 %v6336_v51, %v6314_v54  ;;  %v4338_v8 = vmul.f32 %v6336_v51, %v6316_v37  ;;  %v4339_v28 = vmul.f32 %v6336_v51, %v6318_v41  ;;  %v6097_v41 = vld [vmem:[#allocation13 + $0xc0] sm:$0xff]  }
0x11ed   : > { %4350 = vadd.xlane.f32.xlu0 %v4333_v12  ;;  %4348 = vadd.xlane.f32.xlu1 %v4332_v58  ;;  %v4380_v31 = vpack.c.bf16 %v4333_v12, %v4332_v58  ;;  %v4381_v22 = vpack.c.bf16 %v4335_v33, %v4334_v49  ;;  %v4340_v34 = vmul.f32 %v6336_v51, %v6320_v1  ;;  %v6098_v1 = vld [vmem:[#allocation13 + $0xc8] sm:$0xff]  }
0x11ee   : > { %v4382_v56 = vpack.c.bf16 %v4337_v38, %v4336_v40  ;;  %v4383_v48 = vpack.c.bf16 %v4339_v28, %v4338_v8  ;;  %v4341_v6 = vmul.f32 %v6336_v51, %v6322_v60  ;;  %v4342_v43 = vmul.f32 %v6336_v51, %v6324_v14  ;;  %5815 = vmatprep.subr.bf16.mxu1 %v6097_v41  ;;  %v6099_v60 = vld [vmem:[#allocation13 + $0xd0] sm:$0xff]   ;;  %v6100_v14 = vld [vmem:[#allocation13 + $0xd8] sm:$0xff]  }
0x11ef   : > { %5799 = vmatprep.mubr.bf16.mxu0 %v4380_v31  ;;  %v4343_v29 = vmul.f32 %v6336_v51, %v6326_v47  ;;  %v4344_v16 = vmul.f32 %v6336_v51, %v6328_v53  ;;  %v4345_v2 = vmul.f32 %v6336_v51, %v6330_v44  ;;  %v4346_v63 = vmul.f32 %v6336_v51, %v6332_v45  ;;  %v6101_v47 = vld [vmem:[#allocation13 + $0xe0] sm:$0xff]   ;;  %v6102_v53 = vld [vmem:[#allocation13 + $0xe8] sm:$0xff]  }
0x11f0   : > { %5800 = vmatmul.mubr.bf16.vlgmr.msra.gmra.mrb[192].mxu0 %v4381_v22  ;;  %v4384_v55 = vpack.c.bf16 %v4341_v6, %v4340_v34  ;;  %v4347_v27 = vmul.f32 %v6336_v51, %v6334_v62  ;;  %5816 = vmatpush3.bf16.msra.mxu1 %v6097_v41  ;;  %v8354_v45 = vld [vmem:[#allocation40_spill] sm:$0xff]  ;;  %v8357_v51 = vld [vmem:[#allocation41_spill] sm:$0xff] }
0x11f1   : > { %4354 = vadd.xlane.f32.xlu0 %v4335_v33  ;;  %4352 = vadd.xlane.f32.xlu1 %v4334_v49  ;;  %v4385_v59 = vpack.c.bf16 %v4343_v29, %v4342_v43  ;;  %v4386_v54 = vpack.c.bf16 %v4345_v2, %v4344_v16 }
0x11f2   : > { %5803 = vmatprep.mubr.bf16.mxu0 %v4382_v56  ;;  %v4387_v37 = vpack.c.bf16 %v4347_v27, %v4346_v63  ;;  %5817 = vmatprep.subr.bf16.mxu1 %v6098_v1 }
0x11f4   : > { %5818 = vmatpush3.bf16.msra.mxu1 %v6098_v1 }
0x11f5   : > { %4358 = vadd.xlane.f32.xlu0 %v4337_v38  ;;  %4356 = vadd.xlane.f32.xlu1 %v4336_v40 }
0x11f6   : > { %5819 = vmatprep.subr.bf16.mxu1 %v6099_v60 }
0x11f8   : > { %5804 = vmatmul.mubr.bf16.gmra.mrb[196].mxu0 %v4383_v48  ;;  %5820 = vmatpush3.bf16.msra.mxu1 %v6099_v60 }
0x11f9   : > { %4362 = vadd.xlane.f32.xlu0 %v4339_v28  ;;  %4360 = vadd.xlane.f32.xlu1 %v4338_v8 }
0x11fa   : > { %5807 = vmatprep.mubr.bf16.mxu0 %v4384_v55  ;;  %5821 = vmatprep.subr.bf16.mxu1 %v6100_v14 }
0x11fc   : > { %5822 = vmatpush3.bf16.msra.mxu1 %v6100_v14 }
0x11fd   : > { %4366 = vadd.xlane.f32.xlu0 %v4341_v6  ;;  %4364 = vadd.xlane.f32.xlu1 %v4340_v34 }
0x11fe   : > { %5823 = vmatprep.subr.bf16.mxu1 %v6101_v47 }
0x1200   : > { %5808 = vmatmul.mubr.bf16.gmra.mrb[200].mxu0 %v4385_v59  ;;  %5824 = vmatpush3.bf16.msra.mxu1 %v6101_v47 }
0x1201   : > { %4370 = vadd.xlane.f32.xlu0 %v4343_v29  ;;  %4368 = vadd.xlane.f32.xlu1 %v4342_v43 }
0x1202   : > { %5811 = vmatprep.mubr.bf16.mxu0 %v4386_v54  ;;  %5825 = vmatprep.subr.bf16.mxu1 %v6102_v53 }
0x1204   : > { %5826 = vmatpush3.bf16.msra.mxu1 %v6102_v53 }
0x1205   : > { %4374 = vadd.xlane.f32.xlu0 %v4345_v2  ;;  %4372 = vadd.xlane.f32.xlu1 %v4344_v16 }
0x1208   : > { %5812 = vmatmul.mubr.bf16.gmra.mrb[204].mxu0 %v4387_v37 }
0x1209   : > { %4378 = vadd.xlane.f32.xlu0 %v4347_v27  ;;  %4376 = vadd.xlane.f32.xlu1 %v4346_v63 }
0x1236   : > { %2899 = vxpose.xlu0.b32.start [1/16] %v7535_v21, 128  ;;  %v6103_v21 = vld [vmem:[#allocation13 + $0xf0] sm:$0xff]  }
0x1237   : > { %5827 = vmatprep.subr.bf16.mxu1 %v6103_v21 }
0x1238   : > { %5828 = vmatpush3.bf16.msra.mxu1 %v6103_v21 }
0x123a   : > { %2900 = vxpose.xlu0.b32.cont [2/16] %v7538_v5, 128  ;;  %v6104_v5 = vld [vmem:[#allocation13 + $0xf8] sm:$0xff]  }
0x123b   : > { %5829 = vmatprep.subr.bf16.mxu1 %v6104_v5 }
0x123c   : > { %1941 = vxpose.xlu1.b32.start [1/16] %v7304_v36, 128  ;;  %5830 = vmatpush3.bf16.msra.mxu1 %v6104_v5  ;;  %v8335_v36 = vld [vmem:[#allocation20_spill] sm:$0xff] }
0x123e   : > { %2901 = vxpose.xlu0.b32.cont [3/16] %v7553_v7, 128  ;;  %v8343_v7 = vld [vmem:[#allocation27_spill] sm:$0xff] }
0x1240   : > { %1942 = vxpose.xlu1.b32.cont [2/16] %v7307_v39, 128  ;;  %v8336_v39 = vld [vmem:[#allocation22_spill] sm:$0xff] }
0x1242   : > { %2902 = vxpose.xlu0.b32.cont [4/16] %v7548_v23, 128  ;;  %v8342_v23 = vld [vmem:[#allocation28_spill] sm:$0xff] }
0x1244   : > { %1943 = vxpose.xlu1.b32.cont [3/16] %v7322_v9, 128  ;;  %v8338_v9 = vld [vmem:[#allocation24_spill] sm:$0xff] }
0x1246   : > { %2903 = vxpose.xlu0.b32.cont [5/16] %v7569_v3, 128  ;;  %v8345_v3 = vld [vmem:[#allocation29_spill] sm:$0xff] }
0x1248   : > { %1944 = vxpose.xlu1.b32.cont [4/16] %v7317_v24, 128  ;;  %v8337_v24 = vld [vmem:[#allocation21_spill] sm:$0xff] }
0x124a   : > { %2904 = vxpose.xlu0.b32.cont [6/16] %v7564_v35, 128  ;;  %v8344_v35 = vld [vmem:[#allocation30_spill] sm:$0xff] }
0x124c   : > { %1945 = vxpose.xlu1.b32.cont [5/16] %v7338_v25, 128  ;;  %v8340_v25 = vld [vmem:[#allocation26_spill] sm:$0xff] }
0x124e   : > { %2905 = vxpose.xlu0.b32.cont [7/16] %v7583_v46, 128  ;;  %v8347_v46 = vld [vmem:[#allocation31_spill] sm:$0xff] }
0x1250   : > { %1946 = vxpose.xlu1.b32.cont [6/16] %v7333_v50, 128  ;;  %v8339_v50 = vld [vmem:[#allocation23_spill] sm:$0xff] }
0x1252   : > { %2906 = vxpose.xlu0.b32.cont [8/16] %v7578_v15, 128  ;;  %v8346_v15 = vld [vmem:[#allocation32_spill] sm:$0xff] }
0x1254   : > { %1947 = vxpose.xlu1.b32.cont [7/16] %v7352_v42, 128  ;;  %v8341_v42 = vld [vmem:[#allocation25_spill] sm:$0xff] }
0x1256   : > { %2907 = vxpose.xlu0.b32.cont [9/16] %v7599_v19, 128  ;;  %v8349_v19 = vld [vmem:[#allocation33_spill] sm:$0xff] }
0x1258   : > { %1948 = vxpose.xlu1.b32.cont [8/16] %v8335_v36, 128 }
0x125a   : > { %2908 = vxpose.xlu0.b32.cont [10/16] %v7594_v0, 128  ;;  %v8348_v0 = vld [vmem:[#allocation34_spill] sm:$0xff] }
0x125c   : > { %1949 = vxpose.xlu1.b32.cont [9/16] %v8336_v39, 128 }
0x125e   : > { %2909 = vxpose.xlu0.b32.cont [11/16] %v7613_v32, 128  ;;  %v8351_v32 = vld [vmem:[#allocation35_spill] sm:$0xff] }
0x1260   : > { %1950 = vxpose.xlu1.b32.cont [10/16] %v8337_v24, 128 }
0x1262   : > { %2910 = vxpose.xlu0.b32.cont [12/16] %v7608_v57, 128  ;;  %v8350_v57 = vld [vmem:[#allocation36_spill] sm:$0xff] }
0x1264   : > { %1951 = vxpose.xlu1.b32.cont [11/16] %v8338_v9, 128 }
0x1266   : > { %2911 = vxpose.xlu0.b32.cont [13/16] %v7628_v61, 128 }
0x1268   : > { %1952 = vxpose.xlu1.b32.cont [12/16] %v8339_v50, 128 }
0x126a   : > { %2912 = vxpose.xlu0.b32.cont [14/16] %v7624_v17, 128  ;;  %v8352_v17 = vld [vmem:[#allocation38_spill] sm:$0xff] }
0x126c   : > { %1953 = vxpose.xlu1.b32.cont [13/16] %v8340_v25, 128 }
0x126e   : > { %2913 = vxpose.xlu0.b32.cont [15/16] %v7637_v13, 128  ;;  %v8353_v13 = vld [vmem:[#allocation37_spill] sm:$0xff] }
0x1270   : > { %1954 = vxpose.xlu1.b32.cont [14/16] %v8341_v42, 128 }
0x1272   : > { %2914 = vxpose.xlu0.b32.end [16/16] %v7634_v26, 128 }
0x1274   : > { %1955 = vxpose.xlu1.b32.cont [15/16] %v8342_v23, 128 }
0x1276   : > { %3857 = vxpose.xlu0.b32.start [1/16] %v7766_v11, 128 }
0x1278   : > { %1956 = vxpose.xlu1.b32.end [16/16] %v8343_v7, 128 }
0x127a   : > { %3858 = vxpose.xlu0.b32.cont [2/16] %v7769_v30, 128  ;;  %v4349_v61 = vpop.xlane.xlu1 %4348  ;;  %v4351_v26 = vpop.xlane.xlu0 %4350 }
0x127b   : > { %v4493_v49 = vadd.f32 1e-09, %v4349_v61  ;;  %v4494_v40 = vadd.f32 1e-09, %v4351_v26 }
0x127e   : > { %3859 = vxpose.xlu0.b32.cont [3/16] %v8344_v35, 128  ;;  %v4353_v44 = vpop.xlane.xlu1 %4352  ;;  %v4355_v62 = vpop.xlane.xlu0 %4354 }
0x127f   : > { %v4495_v58 = vadd.f32 1e-09, %v4353_v44  ;;  %v4496_v33 = vadd.f32 1e-09, %v4355_v62 }
0x1281   : > { %6337 = vrcp.f32 %v4495_v58 }
0x1282   : > { %3860 = vxpose.xlu0.b32.cont [4/16] %v8345_v3, 128  ;;  %v4357_v10 = vpop.xlane.xlu1 %4356  ;;  %v4359_v4 = vpop.xlane.xlu0 %4358  ;;  %6339 = vrcp.f32 %v4493_v49 }
0x1283   : > { %6341 = vrcp.f32 %v4496_v33  ;;  %v4497_v31 = vadd.f32 1e-09, %v4357_v10  ;;  %v4498_v56 = vadd.f32 1e-09, %v4359_v4 }
0x1284   : > { %6343 = vrcp.f32 %v4494_v40 }
0x1286   : > { %3861 = vxpose.xlu0.b32.cont [5/16] %v8346_v15, 128  ;;  %v4361_v52 = vpop.xlane.xlu1 %4360  ;;  %v4363_v12 = vpop.xlane.xlu0 %4362 }
0x1287   : > { %v4499_v28 = vadd.f32 1e-09, %v4361_v52  ;;  %v4500_v34 = vadd.f32 1e-09, %v4363_v12 }
0x1289   : > { %6345 = vrcp.f32 %v4499_v28 }
0x128a   : > { %3862 = vxpose.xlu0.b32.cont [6/16] %v8347_v46, 128  ;;  %v4365_v38 = vpop.xlane.xlu1 %4364  ;;  %v4367_v8 = vpop.xlane.xlu0 %4366  ;;  %6347 = vrcp.f32 %v4497_v31 }
0x128b   : > { %v6338_v6 = vpop.eup %6337  ;;  %6349 = vrcp.f32 %v4500_v34  ;;  %v4501_v41 = vadd.f32 1e-09, %v4365_v38  ;;  %v4502_v21 = vadd.f32 1e-09, %v4367_v8 }
0x128c   : > { %v6340_v29 = vpop.eup %6339  ;;  %6351 = vrcp.f32 %v4498_v56 }
0x128d   : > { %v6342_v55 = vpop.eup %6341 }
0x128e   : > { %3863 = vxpose.xlu0.b32.cont [7/16] %v8348_v0, 128  ;;  %v4369_v22 = vpop.xlane.xlu1 %4368  ;;  %v4371_v48 = vpop.xlane.xlu0 %4370 }
0x128f   : > { %v4503_v27 = vadd.f32 1e-09, %v4369_v22  ;;  %v6344_v37 = vpop.eup %6343  ;;  %v4504_v47 = vadd.f32 1e-09, %v4371_v48 }
0x1291   : > { %6353 = vrcp.f32 %v4503_v27 }
0x1292   : > { %3864 = vxpose.xlu0.b32.cont [8/16] %v8349_v19, 128  ;;  %v4373_v16 = vpop.xlane.xlu1 %4372  ;;  %v4375_v1 = vpop.xlane.xlu0 %4374  ;;  %6355 = vrcp.f32 %v4501_v41 }
0x1293   : > { %v6346_v25 = vpop.eup %6345  ;;  %6357 = vrcp.f32 %v4504_v47  ;;  %v4505_v58 = vadd.f32 1e-09, %v4373_v16  ;;  %v4506_v8 = vadd.f32 1e-09, %v4375_v1 }
0x1294   : > { %v6348_v7 = vpop.eup %6347  ;;  %6359 = vrcp.f32 %v4502_v21 }
0x1295   : > { %v6350_v62 = vpop.eup %6349 }
0x1296   : > { %3865 = vxpose.xlu0.b32.cont [9/16] %v8350_v57, 128  ;;  %v4377_v9 = vpop.xlane.xlu1 %4376  ;;  %v4379_v61 = vpop.xlane.xlu0 %4378 }
0x1297   : > { %v4507_v10 = vadd.f32 1e-09, %v4377_v9  ;;  %v6352_v12 = vpop.eup %6351  ;;  %v4508_v40 = vadd.f32 1e-09, %v4379_v61 }
0x1299   : > { %6361 = vrcp.f32 %v4507_v10 }
0x129a   : > { %3866 = vxpose.xlu0.b32.cont [10/16] %v8351_v32, 128  ;;  %6363 = vrcp.f32 %v4505_v58 }
0x129b   : > { %v6354_v48 = vpop.eup %6353  ;;  %6365 = vrcp.f32 %v4508_v40 }
0x129c   : > { %6367 = vrcp.f32 %v4506_v8 }
0x129e   : > { %3867 = vxpose.xlu0.b32.cont [11/16] %v8352_v17, 128 }
0x12a2   : > { %3868 = vxpose.xlu0.b32.cont [12/16] %v8353_v13, 128 }
0x12a6   : > { %3869 = vxpose.xlu0.b32.cont [13/16] %v8354_v45, 128 }
0x12aa   : > { %3870 = vxpose.xlu0.b32.cont [14/16] %v8355_v20, 128 }
0x12ae   : > { %3871 = vxpose.xlu0.b32.cont [15/16] %v8356_v18, 128 }
0x12b2   : > { %3872 = vxpose.xlu0.b32.end [16/16] %v8357_v51, 128 }
0x12b6   : > { %v2915_v58 = vpop.trf.xlu0 }
0x12b7   : > { %2931 = vst [vmem:[%s8017_s15 + $0x80] sm:$0xff] %v2915_v58 }
0x12c3   : > { %v5801_v43 = vpop.f32.mrb[192].mxu0 }
0x12c4   : > { %v4527_v2 = vmul.f32 %v6338_v6, %v5801_v43  ;;  %v4430_v63 = vpop.f32.mrb[193].mxu0 }
0x12c5   : > { %v4525_v59 = vmul.f32 %v6340_v29, %v4430_v63  ;;  %v5802_v54 = vpop.f32.mrb[194].mxu0  ;;  %v6356_v29 = vpop.eup %6355 }
0x12c6   : > { %v4528_v60 = vmul.f32 %v6342_v55, %v5802_v54  ;;  %v4433_v14 = vpop.f32.mrb[195].mxu0  ;;  %v4543_v5 = vsub.f32 %v8344_v35, %v4527_v2  ;;  %v6358_v63 = vpop.eup %6357 }
0x12c7   : > { %v4526_v53 = vmul.f32 %v6344_v37, %v4433_v14  ;;  %v4541_v39 = vsub.f32 %v7766_v11, %v4525_v59  ;;  %v6360_v59 = vpop.eup %6359 }
0x12c8   : > { %v4544_v36 = vsub.f32 %v8345_v3, %v4528_v60  ;;  %v6362_v21 = vpop.eup %6361 }
0x12c9   : > { %v4542_v24 = vsub.f32 %v7769_v30, %v4526_v53 }
0x12ca   : > { %v4575_v50 = vpack.c.bf16 %v4544_v36, %v4543_v5 }
0x12cb   : > { %v5805_v42 = vpop.f32.mrb[196].mxu0  ;;  %v4574_v23 = vpack.c.bf16 %v4542_v24, %v4541_v39  ;;  %v6364_v39 = vpop.eup %6363 }
0x12cc   : > { %v4531_v26 = vmul.f32 %v6346_v25, %v5805_v42  ;;  %v4446_v44 = vpop.f32.mrb[197].mxu0 }
0x12cd   : > { %v4529_v4 = vmul.f32 %v6348_v7, %v4446_v44  ;;  %v5806_v52 = vpop.f32.mrb[198].mxu0  ;;  %5831 = vmatprep.mubr.bf16.mxu1 %v4574_v23 }
0x12ce   : > { %v4532_v49 = vmul.f32 %v6350_v62, %v5806_v52  ;;  %v4449_v33 = vpop.f32.mrb[199].mxu0  ;;  %5832 = vmatmul.mubr.bf16.vlgmr.msra.gmra.mrb[128].mxu1 %v4575_v50  ;;  %v4547_v28 = vsub.f32 %v8348_v0, %v4531_v26  ;;  %v6366_v50 = vpop.eup %6365 }
0x12cf   : > { %v4530_v38 = vmul.f32 %v6352_v12, %v4449_v33  ;;  %v4545_v22 = vsub.f32 %v8346_v15, %v4529_v4  ;;  %v6368_v23 = vpop.eup %6367  ;;  %v2916_v33 = vpop.trf.xlu0 }
0x12d0   : > { %v4548_v31 = vsub.f32 %v8349_v19, %v4532_v49  ;;  %v1957_v49 = vpop.trf.xlu1  ;;  %2932 = vst [vmem:[%s8017_s15 + $0x88] sm:$0xff] %v2916_v33 }
0x12d1   : > { %v4546_v34 = vsub.f32 %v8347_v46, %v4530_v38  ;;  %1973 = vst [vmem:[%s8017_s15] sm:$0xff] %v1957_v49 }
0x12d2   : > { %v4577_v56 = vpack.c.bf16 %v4548_v31, %v4547_v28 }
0x12d3   : > { %v5809_v6 = vpop.f32.mrb[200].mxu0  ;;  %v4576_v43 = vpack.c.bf16 %v4546_v34, %v4545_v22  ;;  %v2917_v38 = vpop.trf.xlu0 }
0x12d4   : > { %v4535_v16 = vmul.f32 %v6354_v48, %v5809_v6  ;;  %v4462_v2 = vpop.f32.mrb[201].mxu0  ;;  %v1958_v40 = vpop.trf.xlu1  ;;  %2933 = vst [vmem:[%s8017_s15 + $0x90] sm:$0xff] %v2917_v38 }
0x12d5   : > { %v4533_v55 = vmul.f32 %v6356_v29, %v4462_v2  ;;  %v5810_v27 = vpop.f32.mrb[202].mxu0  ;;  %5835 = vmatprep.mubr.bf16.mxu1 %v4576_v43  ;;  %1974 = vst [vmem:[%s8017_s15 + $0x8] sm:$0xff] %v1958_v40 }
0x12d6   : > { %v4536_v54 = vmul.f32 %v6358_v63, %v5810_v27  ;;  %v4465_v37 = vpop.f32.mrb[203].mxu0  ;;  %5836 = vmatmul.mubr.bf16.gmra.mrb[132].mxu1 %v4577_v56  ;;  %v4551_v1 = vsub.f32 %v8352_v17, %v4535_v16 }
0x12d7   : > { %v4534_v41 = vmul.f32 %v6360_v59, %v4465_v37  ;;  %v4549_v14 = vsub.f32 %v8350_v57, %v4533_v55  ;;  %v2918_v28 = vpop.trf.xlu0 }
0x12d8   : > { %v4552_v60 = vsub.f32 %v8353_v13, %v4536_v54  ;;  %v1959_v8 = vpop.trf.xlu1  ;;  %2934 = vst [vmem:[%s8017_s15 + $0x98] sm:$0xff] %v2918_v28 }
0x12d9   : > { %v4550_v47 = vsub.f32 %v8351_v32, %v4534_v41  ;;  %1975 = vst [vmem:[%s8017_s15 + $0x10] sm:$0xff] %v1959_v8 }
0x12da   : > { %v4579_v53 = vpack.c.bf16 %v4552_v60, %v4551_v1 }
0x12db   : > { %v5813_v5 = vpop.f32.mrb[204].mxu0  ;;  %v4578_v36 = vpack.c.bf16 %v4550_v47, %v4549_v14  ;;  %v2919_v22 = vpop.trf.xlu0 }
0x12dc   : > { %v4539_v24 = vmul.f32 %v6362_v21, %v5813_v5  ;;  %v4478_v9 = vpop.f32.mrb[205].mxu0  ;;  %v1960_v31 = vpop.trf.xlu1  ;;  %2935 = vst [vmem:[%s8017_s15 + $0xa0] sm:$0xff] %v2919_v22 }
0x12dd   : > { %v4537_v25 = vmul.f32 %v6364_v39, %v4478_v9  ;;  %v5814_v42 = vpop.f32.mrb[206].mxu0  ;;  %5839 = vmatprep.mubr.bf16.mxu1 %v4578_v36  ;;  %1976 = vst [vmem:[%s8017_s15 + $0x18] sm:$0xff] %v1960_v31  ;;  %v8056_v39 = vld [vmem:[%s8309_s5 + $0x3] ss:$0 sm:$0xff] }
0x12de   : > { %v4540_v7 = vmul.f32 %v6366_v50, %v5814_v42  ;;  %v4481_v61 = vpop.f32.mrb[207].mxu0  ;;  %5840 = vmatmul.mubr.bf16.gmra.mrb[136].mxu1 %v4579_v53  ;;  %v4555_v44 = vsub.f32 %v8356_v18, %v4539_v24  ;;  %v8050_v53 = vld [vmem:[%s8308_s20 + $0x3] ss:$0 sm:$0xff] }
0x12df   : > { %v4538_v26 = vmul.f32 %v6368_v23, %v4481_v61  ;;  %v4553_v10 = vsub.f32 %v8354_v45, %v4537_v25  ;;  %v2920_v56 = vpop.trf.xlu0  ;;  %v8064_v42 = vld [vmem:[%s8310_s11 + $0x3] ss:$0 sm:$0xff] }
0x12e0   : > { %v4556_v62 = vsub.f32 %v8357_v51, %v4540_v7  ;;  %v1961_v34 = vpop.trf.xlu1  ;;  %2936 = vst [vmem:[%s8017_s15 + $0xa8] sm:$0xff] %v2920_v56 }
0x12e1   : > { %v4554_v4 = vsub.f32 %v8355_v20, %v4538_v26  ;;  %1977 = vst [vmem:[%s8017_s15 + $0x20] sm:$0xff] %v1961_v34 }
0x12e2   : > { %v4581_v52 = vpack.c.bf16 %v4556_v62, %v4555_v44 }
0x12e3   : > { %v4580_v12 = vpack.c.bf16 %v4554_v4, %v4553_v10  ;;  %v2921_v6 = vpop.trf.xlu0 }
0x12e4   : > { %v1962_v48 = vpop.trf.xlu1  ;;  %2937 = vst [vmem:[%s8017_s15 + $0xb0] sm:$0xff] %v2921_v6 }
0x12e5   : > { %5843 = vmatprep.mubr.bf16.mxu1 %v4580_v12  ;;  %1978 = vst [vmem:[%s8017_s15 + $0x28] sm:$0xff] %v1962_v48 }
0x12e6   : > { %5844 = vmatmul.mubr.bf16.gmra.mrb[140].mxu1 %v4581_v52 }
0x12e7   : > { %v2922_v29 = vpop.trf.xlu0 }
0x12e8   : > { %v1963_v43 = vpop.trf.xlu1  ;;  %2938 = vst [vmem:[%s8017_s15 + $0xb8] sm:$0xff] %v2922_v29 }
0x12e9   : > { %1979 = vst [vmem:[%s8017_s15 + $0x30] sm:$0xff] %v1963_v43 }
0x12eb   : > { %v2923_v2 = vpop.trf.xlu0 }
0x12ec   : > { %v1964_v16 = vpop.trf.xlu1  ;;  %2939 = vst [vmem:[%s8017_s15 + $0xc0] sm:$0xff] %v2923_v2 }
0x12ed   : > { %1980 = vst [vmem:[%s8017_s15 + $0x38] sm:$0xff] %v1964_v16 }
0x12ef   : > { %v2924_v55 = vpop.trf.xlu0 }
0x12f0   : > { %v1965_v63 = vpop.trf.xlu1  ;;  %2940 = vst [vmem:[%s8017_s15 + $0xc8] sm:$0xff] %v2924_v55 }
0x12f1   : > { %1981 = vst [vmem:[%s8017_s15 + $0x40] sm:$0xff] %v1965_v63 }
0x12f3   : > { %v2925_v59 = vpop.trf.xlu0 }
0x12f4   : > { %v1966_v27 = vpop.trf.xlu1  ;;  %2941 = vst [vmem:[%s8017_s15 + $0xd0] sm:$0xff] %v2925_v59 }
0x12f5   : > { %1982 = vst [vmem:[%s8017_s15 + $0x48] sm:$0xff] %v1966_v27 }
0x12f7   : > { %v2926_v37 = vpop.trf.xlu0 }
0x12f8   : > { %v1967_v54 = vpop.trf.xlu1  ;;  %2942 = vst [vmem:[%s8017_s15 + $0xd8] sm:$0xff] %v2926_v37 }
0x12f9   : > { %1983 = vst [vmem:[%s8017_s15 + $0x50] sm:$0xff] %v1967_v54 }
0x12fb   : > { %v2927_v1 = vpop.trf.xlu0 }
0x12fc   : > { %v1968_v41 = vpop.trf.xlu1  ;;  %2943 = vst [vmem:[%s8017_s15 + $0xe0] sm:$0xff] %v2927_v1 }
0x12fd   : > { %1984 = vst [vmem:[%s8017_s15 + $0x58] sm:$0xff] %v1968_v41 }
0x12ff   : > { %v2928_v14 = vpop.trf.xlu0 }
0x1300   : > { %v1969_v60 = vpop.trf.xlu1  ;;  %2944 = vst [vmem:[%s8017_s15 + $0xe8] sm:$0xff] %v2928_v14 }
0x1301   : > { %1985 = vst [vmem:[%s8017_s15 + $0x60] sm:$0xff] %v1969_v60 }
0x1303   : > { %v2929_v5 = vpop.trf.xlu0 }
0x1304   : > { %v1970_v47 = vpop.trf.xlu1  ;;  %2945 = vst [vmem:[%s8017_s15 + $0xf0] sm:$0xff] %v2929_v5 }
0x1305   : > { %1986 = vst [vmem:[%s8017_s15 + $0x68] sm:$0xff] %v1970_v47 }
0x1307   : > { %v2930_v26 = vpop.trf.xlu0 }
0x1308   : > { %v1971_v9 = vpop.trf.xlu1  ;;  %2946 = vst [vmem:[%s8017_s15 + $0xf8] sm:$0xff] %v2930_v26 }
0x1309   : > { %1987 = vst [vmem:[%s8017_s15 + $0x70] sm:$0xff] %v1971_v9 }
0x130b   : > { %v3873_v33 = vpop.trf.xlu0 }
0x130c   : > { %v1972_v62 = vpop.trf.xlu1  ;;  %3889 = vst [vmem:[%s8017_s15 + $0x100] sm:$0xff] %v3873_v33 }
0x130d   : > { %1988 = vst [vmem:[%s8017_s15 + $0x78] sm:$0xff] %v1972_v62 }
0x130f   : > { %v3874_v6 = vpop.trf.xlu0 }
0x1310   : > { %3890 = vst [vmem:[%s8017_s15 + $0x108] sm:$0xff] %v3874_v6 }
0x13a1   : > { %v5833_v21 = vpop.f32.mrb[128].mxu1 }
0x13a2   : > { %v4681_v36 = vadd.f32 %v5833_v21, %v8050_v53  ;;  %v4672_v24 = vpop.f32.mrb[129].mxu1 }
0x13a3   : > { %v4673_v50 = vadd.f32 %v8050_v53, %v4672_v24  ;;  %v5834_v25 = vpop.f32.mrb[130].mxu1 }
0x13a4   : > { %v4675_v23 = vpop.f32.mrb[131].mxu1  ;;  %v4745_v44 = vmul.f32 %v8056_v39, %v4681_v36  ;;  %v4684_v4 = vadd.f32 %v5834_v25, %v8050_v53 }
0x13a5   : > { %v4743_v7 = vmul.f32 %v8056_v39, %v4673_v50  ;;  %v4676_v61 = vadd.f32 %v8050_v53, %v4675_v23 }
0x13a6   : > { %v4769_v40 = vadd.f32 %v8064_v42, %v4745_v44  ;;  %v4746_v8 = vmul.f32 %v8056_v39, %v4684_v4 }
0x13a7   : > { %v4767_v10 = vadd.f32 %v8064_v42, %v4743_v7  ;;  %v4744_v52 = vmul.f32 %v8056_v39, %v4676_v61 }
0x13a8   : > { %v4785_v48 = vmax.f32 %v4769_v40, 0.0  ;;  %v4770_v43 = vadd.f32 %v8064_v42, %v4746_v8 }
0x13a9   : > { %v4783_v12 = vmax.f32 %v4767_v10, 0.0  ;;  %v4768_v58 = vadd.f32 %v8064_v42, %v4744_v52  ;;  %v5837_v49 = vpop.f32.mrb[132].mxu1 }
0x13aa   : > { %v4688_v38 = vpop.f32.mrb[133].mxu1  ;;  %v4697_v55 = vadd.f32 %v5837_v49, %v8050_v53  ;;  %v4786_v59 = vmax.f32 %v4770_v43, 0.0  ;;  %v4801_v1 = vadd.f32 %v4785_v48, %v8344_v35 }
0x13ab   : > { %v4784_v28 = vmax.f32 %v4768_v58, 0.0  ;;  %v4689_v31 = vadd.f32 %v8050_v53, %v4688_v38  ;;  %v5838_v22 = vpop.f32.mrb[134].mxu1  ;;  %v4799_v34 = vadd.f32 %v4783_v12, %v7766_v11  ;;  %v3875_v11 = vpop.trf.xlu0 }
0x13ac   : > { %v4691_v56 = vpop.f32.mrb[135].mxu1  ;;  %3891 = vst [vmem:[%s8017_s15 + $0x110] sm:$0xff] %v3875_v11  ;;  %v4700_v21 = vadd.f32 %v5838_v22, %v8050_v53  ;;  %v4802_v36 = vadd.f32 %v4786_v59, %v8345_v3 }
0x13ad   : > { %4815 = vxpose.xlu1.b32.start [1/16] %v4799_v34, 128  ;;  %v4747_v29 = vmul.f32 %v8056_v39, %v4689_v31  ;;  %v4692_v16 = vadd.f32 %v8050_v53, %v4691_v56  ;;  %v4800_v2 = vadd.f32 %v4784_v28, %v7769_v30  ;;  %v4749_v30 = vmul.f32 %v8056_v39, %v4697_v55 }
0x13ae   : > { %v4750_v25 = vmul.f32 %v8056_v39, %v4700_v21 }
0x13af   : > { %v4771_v54 = vadd.f32 %v8064_v42, %v4747_v29  ;;  %v4748_v37 = vmul.f32 %v8056_v39, %v4692_v16  ;;  %v3876_v14 = vpop.trf.xlu0  ;;  %v4773_v9 = vadd.f32 %v8064_v42, %v4749_v30 }
0x13b0   : > { %3892 = vst [vmem:[%s8017_s15 + $0x118] sm:$0xff] %v3876_v14  ;;  %v4774_v10 = vadd.f32 %v8064_v42, %v4750_v25 }
0x13b1   : > { %4816 = vxpose.xlu1.b32.cont [2/16] %v4800_v2, 128  ;;  %v5841_v63 = vpop.f32.mrb[136].mxu1  ;;  %v4787_v47 = vmax.f32 %v4771_v54, 0.0  ;;  %v4772_v5 = vadd.f32 %v8064_v42, %v4748_v37  ;;  %v4789_v3 = vmax.f32 %v4773_v9, 0.0 }
0x13b2   : > { %v4704_v27 = vpop.f32.mrb[137].mxu1  ;;  %v4713_v58 = vadd.f32 %v5841_v63, %v8050_v53  ;;  %v4790_v49 = vmax.f32 %v4774_v10, 0.0 }
0x13b3   : > { %v5842_v41 = vpop.f32.mrb[138].mxu1  ;;  %v3877_v50 = vpop.trf.xlu0  ;;  %v4788_v23 = vmax.f32 %v4772_v5, 0.0  ;;  %v4705_v7 = vadd.f32 %v8050_v53, %v4704_v27  ;;  %v4803_v26 = vadd.f32 %v4787_v47, %v8346_v15  ;;  %v4805_v38 = vadd.f32 %v4789_v3, %v8348_v0 }
0x13b4   : > { %v4707_v60 = vpop.f32.mrb[139].mxu1  ;;  %3893 = vst [vmem:[%s8017_s15 + $0x120] sm:$0xff] %v3877_v50  ;;  %v4753_v8 = vmul.f32 %v8056_v39, %v4713_v58  ;;  %v4716_v31 = vadd.f32 %v5842_v41, %v8050_v53  ;;  %v4806_v34 = vadd.f32 %v4790_v49, %v8349_v19 }
0x13b5   : > { %4817 = vxpose.xlu1.b32.cont [3/16] %v4801_v1, 128  ;;  %v4751_v4 = vmul.f32 %v8056_v39, %v4705_v7  ;;  %v4708_v52 = vadd.f32 %v8050_v53, %v4707_v60  ;;  %v4804_v12 = vadd.f32 %v4788_v23, %v8347_v46 }
0x13b6   : > { %v4777_v56 = vadd.f32 %v8064_v42, %v4753_v8  ;;  %v4754_v0 = vmul.f32 %v8056_v39, %v4716_v31 }
0x13b7   : > { %v3878_v62 = vpop.trf.xlu0  ;;  %v4775_v33 = vadd.f32 %v8064_v42, %v4751_v4  ;;  %v4752_v40 = vmul.f32 %v8056_v39, %v4708_v52 }
0x13b8   : > { %3894 = vst [vmem:[%s8017_s15 + $0x128] sm:$0xff] %v3878_v62  ;;  %v4793_v16 = vmax.f32 %v4777_v56, 0.0  ;;  %v4778_v19 = vadd.f32 %v8064_v42, %v4754_v0 }
0x13b9   : > { %4818 = vxpose.xlu1.b32.cont [4/16] %v4802_v36, 128  ;;  %v5845_v24 = vpop.f32.mrb[140].mxu1  ;;  %v4791_v46 = vmax.f32 %v4775_v33, 0.0  ;;  %v4776_v22 = vadd.f32 %v8064_v42, %v4752_v40 }
0x13ba   : > { %v4720_v35 = vpop.f32.mrb[141].mxu1  ;;  %v4729_v11 = vadd.f32 %v5845_v24, %v8050_v53  ;;  %v4809_v41 = vadd.f32 %v4793_v16, %v8352_v17 }
0x13bb   : > { %v5846_v61 = vpop.f32.mrb[142].mxu1  ;;  %v3879_v15 = vpop.trf.xlu0  ;;  %v4792_v6 = vmax.f32 %v4776_v22, 0.0  ;;  %v4721_v43 = vadd.f32 %v8050_v53, %v4720_v35  ;;  %v4807_v29 = vadd.f32 %v4791_v46, %v8350_v57  ;;  %v4794_v57 = vmax.f32 %v4778_v19, 0.0 }
0x13bc   : > { %v4723_v44 = vpop.f32.mrb[143].mxu1  ;;  %3895 = vst [vmem:[%s8017_s15 + $0x130] sm:$0xff] %v3879_v15  ;;  %v4757_v1 = vmul.f32 %v8056_v39, %v4729_v11  ;;  %v4732_v30 = vadd.f32 %v5846_v61, %v8050_v53 }
0x13bd   : > { %4819 = vxpose.xlu1.b32.cont [5/16] %v4803_v26, 128  ;;  %v4755_v63 = vmul.f32 %v8056_v39, %v4721_v43  ;;  %v4724_v55 = vadd.f32 %v8050_v53, %v4723_v44  ;;  %v4808_v27 = vadd.f32 %v4792_v6, %v8351_v32  ;;  %v4810_v47 = vadd.f32 %v4794_v57, %v8353_v13 }
0x13be   : > { %v4781_v17 = vadd.f32 %v8064_v42, %v4757_v1  ;;  %v4758_v5 = vmul.f32 %v8056_v39, %v4732_v30 }
0x13bf   : > { %v3880_v28 = vpop.trf.xlu0  ;;  %v4779_v54 = vadd.f32 %v8064_v42, %v4755_v63  ;;  %v4756_v37 = vmul.f32 %v8056_v39, %v4724_v55 }
0x13c0   : > { %3896 = vst [vmem:[%s8017_s15 + $0x138] sm:$0xff] %v3880_v28  ;;  %v4797_v9 = vmax.f32 %v4781_v17, 0.0  ;;  %v4782_v35 = vadd.f32 %v8064_v42, %v4758_v5 }
0x13c1   : > { %4820 = vxpose.xlu1.b32.cont [6/16] %v4804_v12, 128  ;;  %v4795_v32 = vmax.f32 %v4779_v54, 0.0  ;;  %v4780_v14 = vadd.f32 %v8064_v42, %v4756_v37 }
0x13c2   : > { %v4798_v39 = vmax.f32 %v4782_v35, 0.0  ;;  %v4813_v25 = vadd.f32 %v4797_v9, %v8356_v18 }
0x13c3   : > { %v3881_v48 = vpop.trf.xlu0  ;;  %v4796_v36 = vmax.f32 %v4780_v14, 0.0  ;;  %v4811_v24 = vadd.f32 %v4795_v32, %v8354_v45 }
0x13c4   : > { %3897 = vst [vmem:[%s8017_s15 + $0x140] sm:$0xff] %v3881_v48  ;;  %v4814_v23 = vadd.f32 %v4798_v39, %v8357_v51 }
0x13c5   : > { %4821 = vxpose.xlu1.b32.cont [7/16] %v4805_v38, 128  ;;  %v4812_v13 = vadd.f32 %v4796_v36, %v8355_v20 }
0x13c7   : > { %v3882_v2 = vpop.trf.xlu0 }
0x13c8   : > { %3898 = vst [vmem:[%s8017_s15 + $0x148] sm:$0xff] %v3882_v2 }
0x13c9   : > { %4822 = vxpose.xlu1.b32.cont [8/16] %v4806_v34, 128 }
0x13cb   : > { %v3883_v59 = vpop.trf.xlu0 }
0x13cc   : > { %3899 = vst [vmem:[%s8017_s15 + $0x150] sm:$0xff] %v3883_v59 }
0x13cd   : > { %4823 = vxpose.xlu1.b32.cont [9/16] %v4807_v29, 128 }
0x13cf   : > { %v3884_v60 = vpop.trf.xlu0 }
0x13d0   : > { %3900 = vst [vmem:[%s8017_s15 + $0x158] sm:$0xff] %v3884_v60 }
0x13d1   : > { %4824 = vxpose.xlu1.b32.cont [10/16] %v4808_v27, 128 }
0x13d3   : > { %v3885_v21 = vpop.trf.xlu0 }
0x13d4   : > { %3901 = vst [vmem:[%s8017_s15 + $0x160] sm:$0xff] %v3885_v21 }
0x13d5   : > { %4825 = vxpose.xlu1.b32.cont [11/16] %v4809_v41, 128 }
0x13d7   : > { %v3886_v53 = vpop.trf.xlu0 }
0x13d8   : > { %3902 = vst [vmem:[%s8017_s15 + $0x168] sm:$0xff] %v3886_v53 }
0x13d9   : > { %4826 = vxpose.xlu1.b32.cont [12/16] %v4810_v47, 128 }
0x13db   : > { %v3887_v50 = vpop.trf.xlu0 }
0x13dc   : > { %3903 = vst [vmem:[%s8017_s15 + $0x170] sm:$0xff] %v3887_v50 }
0x13dd   : > { %4827 = vxpose.xlu1.b32.cont [13/16] %v4811_v24, 128 }
0x13df   : > { %v3888_v45 = vpop.trf.xlu0 }
0x13e0   : > { %3904 = vst [vmem:[%s8017_s15 + $0x178] sm:$0xff] %v3888_v45 }
0x13e1   : > { %4828 = vxpose.xlu1.b32.cont [14/16] %v4812_v13, 128 }
0x13e5   : > { %4829 = vxpose.xlu1.b32.cont [15/16] %v4813_v25, 128 }
0x13e9   : > { %4830 = vxpose.xlu1.b32.end [16/16] %v4814_v23, 128 }
0x142d   : > { %v4831_v20 = vpop.trf.xlu1 }
0x142e   : > { %4847 = vst [vmem:[%s8017_s15 + $0x180] sm:$0xff] %v4831_v20 }
0x1431   : > { %v4832_v42 = vpop.trf.xlu1 }
0x1432   : > { %4848 = vst [vmem:[%s8017_s15 + $0x188] sm:$0xff] %v4832_v42 }
0x1435   : > { %v4833_v7 = vpop.trf.xlu1 }
0x1436   : > { %4849 = vst [vmem:[%s8017_s15 + $0x190] sm:$0xff] %v4833_v7 }
0x1439   : > { %v4834_v18 = vpop.trf.xlu1 }
0x143a   : > { %4850 = vst [vmem:[%s8017_s15 + $0x198] sm:$0xff] %v4834_v18 }
0x143d   : > { %v4835_v61 = vpop.trf.xlu1 }
0x143e   : > { %4851 = vst [vmem:[%s8017_s15 + $0x1a0] sm:$0xff] %v4835_v61 }
0x1441   : > { %v4836_v51 = vpop.trf.xlu1 }
0x1442   : > { %4852 = vst [vmem:[%s8017_s15 + $0x1a8] sm:$0xff] %v4836_v51 }
0x1445   : > { %v4837_v26 = vpop.trf.xlu1 }
0x1446   : > { %4853 = vst [vmem:[%s8017_s15 + $0x1b0] sm:$0xff] %v4837_v26 }
0x1449   : > { %v4838_v44 = vpop.trf.xlu1 }
0x144a   : > { %4854 = vst [vmem:[%s8017_s15 + $0x1b8] sm:$0xff] %v4838_v44 }
0x144d   : > { %v4839_v3 = vpop.trf.xlu1 }
0x144e   : > { %4855 = vst [vmem:[%s8017_s15 + $0x1c0] sm:$0xff] %v4839_v3 }
0x1451   : > { %v4840_v62 = vpop.trf.xlu1 }
0x1452   : > { %4856 = vst [vmem:[%s8017_s15 + $0x1c8] sm:$0xff] %v4840_v62 }
0x1455   : > { %v4841_v10 = vpop.trf.xlu1 }
0x1456   : > { %4857 = vst [vmem:[%s8017_s15 + $0x1d0] sm:$0xff] %v4841_v10 }
0x1459   : > { %v4842_v4 = vpop.trf.xlu1 }
0x145a   : > { %4858 = vst [vmem:[%s8017_s15 + $0x1d8] sm:$0xff] %v4842_v4 }
0x145d   : > { %v4843_v52 = vpop.trf.xlu1 }
0x145e   : > { %4859 = vst [vmem:[%s8017_s15 + $0x1e0] sm:$0xff] %v4843_v52 }
0x1461   : > { %v4844_v12 = vpop.trf.xlu1 }
0x1462   : > { %4860 = vst [vmem:[%s8017_s15 + $0x1e8] sm:$0xff] %v4844_v12 }
0x1465   : > { %v4845_v58 = vpop.trf.xlu1 }
0x1466   : > { %4861 = vst [vmem:[%s8017_s15 + $0x1f0] sm:$0xff] %v4845_v58 }
0x1469   : > { %v4846_v15 = vpop.trf.xlu1 }
0x146a   : > { %4862 = vst [vmem:[%s8017_s15 + $0x1f8] sm:$0xff] %v4846_v15 }
0x146b   : > { %6580 = shalt.err (!%p6577_p8)
}
0x146c   : > { %s6581_s15 = scalar_lea.hbm %s8166_s1, 8192  ;;  %s6585_s8 = scalar_lea.hbm %s8358_s22, 16384 }
0x146d   : > { %p6582_p4 = scmp.ne.s32.totalorder %s8166_s1, %s6581_s15  ;;  %p6586_p3 = scmp.lt.u32.totalorder %s8166_s1, %s8358_s22 }
0x146e   : > { %p6587_p5 = scmp.lt.u32.totalorder %s6585_s8, %s6581_s15  ;;  %p6589_p6 = scmp.lt.u32.totalorder %s6581_s15, %s8166_s1 }
0x146f   : > { %p6583_p10 = pnand %p6582_p4, %p8359_p9 }
0x1470   : > { %p6588_p7 = por %p6587_p5, %p6586_p3 }
0x1471   : > { %p6584_p11 = pneg %p6583_p10 }
0x1472   : > { %p6590_p12 = por %p6589_p6, %p6588_p7 }
0x1474   : > { %p6591_p1 = pnand %p6590_p12, %p6584_p11 }
0x1476   : > { %6594 = shalt.err (!%p6591_p1)
}
0x1477   : > { %s6660_s0 = smov 128   ;;  %s6661_s23 = smov 8  }
0x1478   : > { %5873 = dma.vmem_to_hbm [thread:$0]  (%p8359_p9), %s8168_s21, 8192, %s8166_s1, %s4864_s18, %s6660_s0, %s6660_s0, %s6661_s23  }
0x1479 PF: > { %s4892_s19 = sand.u32 1, %s6633_s25   ;;  %p8360_p13 = scmp.ne.s32.totalorder %s8297_s30, 0 }
0x147a   : > { %p8361_p0 = scmp.ge.s32.totalorder %s6645_s28, 2  ;;  %s4893_s15 = scalar_lea.sflag [#allocation4], %s4892_s19 }
0x147c   : > { %p5899_p2 = pnand %p8361_p0, %p8360_p13 }
0x147e   : > { %6628 = dma.done.wait (!%p5899_p2), %s4893_s15, 8192  }
0x147f   : > { %6630 = vsyncadd (!%p5899_p2), %s4893_s15, 4294959104  ;;  %p29_p8 = scmp.ge.s32.totalorder %s6921_s16, 4   ;;  %s8362_s25 = smov %s6637_s26 }
0x1480   : > { %s8363_s26 = smov %s6641_s27  ;;  %s8364_s27 = smov %s6932_s29 }
0x1481   : > { %s8365_s28 = smov %s6921_s16  ;;  %31 = sbr.rel (!%p29_p8) target bundleno = 17 (0x11), region = 159 }
0x1488   :  { %4898 = vsyncpa [#allocation3], 1 }
0x1489   :  { %4900 = vsyncpa [#allocation3 + $0x1], 1 }
0x148a   :  { %4901 = vsyncpa [#allocation6], 1 }
0x148b   :  { %4902 = vsyncpa [#allocation9], 1 }
0x148c   :  { %4903 = vsyncpa [#allocation12], 1 }
0x148d   :  { %4904 = vsyncpa [#allocation4], 1 }
0x148e   :  { %4906 = vsyncpa [#allocation4 + $0x1], 1 }

</bundles_post_ra>
